<compile_context>
chip_gen: v7x
topology: tpu7x:2x2x1
jax: 0.10.0
libtpu: 0.0.40
codegen_flags: <defaults>
</compile_context>

<pallas_src>
import functools
import math

import jax
import jax.numpy as jnp
from jax import lax
from jax.experimental import pallas as pl
from jax.experimental.pallas import tpu as pltpu

_NEG_INF = -1e30


# --------------------------- per-generation config ---------------------------

def _chip_config():
    """Tile sizes + VMEM limit per TPU generation (perf-review items)."""
    kind = jax.devices()[0].device_kind.lower()
    mib = 1024 * 1024
    if "v7" in kind:   # 64 MiB VMEM/TC, 2x256 MXU: big tiles, leave Mosaic headroom
        return dict(tm=256, tq=256, tk=256, vmem=56 * mib)
    if "v6" in kind:   # 128 MiB VMEM, 2x256 MXU
        return dict(tm=256, tq=256, tk=256, vmem=100 * mib)
    if "v5" in kind:   # 128 MiB VMEM, 4x128 MXU: keep 128-tiles, use the VMEM
        return dict(tm=128, tq=128, tk=128, vmem=100 * mib)
    return dict(tm=256, tq=128, tk=128, vmem=64 * mib)     # unknown: conservative


def _fit_tile(n, t):
    """Largest divisor of n that is <= t (prefer sublane-friendly multiples of 8)."""
    t = max(1, min(t, n))
    while n % t or (t % 8 and t != n):
        t -= 1
    return t


# --------------------------- QKV projection (row-tiled) ----------------------

def _qkv_kernel(x_ref, w_ref, b_ref, q_ref, k_ref, v_ref, *, scale):
    c = x_ref.shape[1]
    x = x_ref[...].astype(jnp.bfloat16)                                 # (tm, C)
    qkv = jnp.dot(x, w_ref[...], preferred_element_type=jnp.float32) + b_ref[...]
    # fold 1/sqrt(Dh) into q instead of scaling the (T, T) score matrix
    q_ref[...] = (qkv[:, 0 * c:1 * c] * scale).astype(q_ref.dtype)
    k_ref[...] = qkv[:, 1 * c:2 * c].astype(k_ref.dtype)
    v_ref[...] = qkv[:, 2 * c:3 * c].astype(v_ref.dtype)


def _qkv_forward(x_flat, w_qkv, b_qkv, *, scale, tm, vmem):
    n, c = x_flat.shape
    row = pl.BlockSpec((tm, c), lambda i: (i, 0))
    out_sd = jax.ShapeDtypeStruct((n, c), jnp.bfloat16)
    return pl.pallas_call(
        functools.partial(_qkv_kernel, scale=scale),
        grid=(n // tm,),
        in_specs=[row,
                  pl.BlockSpec((c, 3 * c), lambda i: (0, 0)),    # resident weight
                  pl.BlockSpec((1, 3 * c), lambda i: (0, 0))],
        out_specs=(row, row, row),
        out_shape=(out_sd, out_sd, out_sd),
        compiler_params=pltpu.CompilerParams(
            dimension_semantics=("parallel",), vmem_limit_bytes=vmem),
    )(x_flat, w_qkv, b_qkv)


# --------------------------- attention: single-pass (tk = T) -----------------

def _attn_single_kernel(q_ref, k_ref, v_ref, o_ref, *, dh, grp, tq):
    # q_ref/o_ref: (tq, grp*dh), k_ref/v_ref: (T, grp*dh); heads packed on lanes.
    q_start = pl.program_id(2) * tq
    t = k_ref.shape[0]
    rows = q_start + lax.broadcasted_iota(jnp.int32, (tq, t), 0)
    cols = lax.broadcasted_iota(jnp.int32, (tq, t), 1)
    causal = rows >= cols                                  # built once per block
    outs = []
    for h in range(grp):                                   # static unroll over packed heads
        d0 = h * dh
        q = q_ref[:, d0:d0 + dh]                           # (tq, dh) bf16, pre-scaled
        k = k_ref[:, d0:d0 + dh]
        v = v_ref[:, d0:d0 + dh]
        s = lax.dot_general(q, k, (((1,), (1,)), ((), ())),
                            preferred_element_type=jnp.float32)      # (tq, T)
        s = jnp.where(causal, s, _NEG_INF)
        m = jnp.max(s, axis=-1, keepdims=True)
        p = jnp.exp(s - m)
        l = jnp.sum(p, axis=-1, keepdims=True)
        o = jnp.dot(p.astype(jnp.bfloat16), v, preferred_element_type=jnp.float32)
        outs.append(o * pl.reciprocal(l, approx=True))
    o_val = outs[0] if grp == 1 else jnp.concatenate(outs, axis=-1)
    o_ref[...] = o_val.astype(o_ref.dtype)                 # one lane-dense store


def _attn_single(q, k, v, *, dh, grp, tq, vmem):
    b, t, c = q.shape
    w = grp * dh
    hg = c // w
    q_spec = pl.BlockSpec((None, tq, w), lambda bi, g, i: (bi, i, g))
    kv_spec = pl.BlockSpec((None, t, w), lambda bi, g, i: (bi, 0, g))
    return pl.pallas_call(
        functools.partial(_attn_single_kernel, dh=dh, grp=grp, tq=tq),
        grid=(b, hg, t // tq),
        in_specs=[q_spec, kv_spec, kv_spec],
        out_specs=q_spec,
        out_shape=jax.ShapeDtypeStruct((b, t, c), jnp.bfloat16),
        compiler_params=pltpu.CompilerParams(
            dimension_semantics=("parallel", "parallel", "parallel"),
            vmem_limit_bytes=vmem),
    )(q, k, v)


# --------------------------- attention: kv-tiled flash (online softmax) ------

def _attn_flash_kernel(q_ref, k_ref, v_ref, o_ref, m_sc, l_sc, acc_sc,
                       *, dh, grp, tq, tk):
    kj = pl.program_id(3)
    q_start = pl.program_id(2) * tq
    k_start = kj * tk
    q_last = q_start + tq - 1
    k_last = k_start + tk - 1

    @pl.when(kj == 0)
    def _():
        m_sc[...] = jnp.full(m_sc.shape, -jnp.inf, jnp.float32)
        l_sc[...] = jnp.zeros(l_sc.shape, jnp.float32)
        acc_sc[...] = jnp.zeros(acc_sc.shape, jnp.float32)

    def tile_step(masked):
        for h in range(grp):                               # static unroll over packed heads
            d0 = h * dh
            q = q_ref[:, d0:d0 + dh]
            k = k_ref[:, d0:d0 + dh]
            v = v_ref[:, d0:d0 + dh]
            s = lax.dot_general(q, k, (((1,), (1,)), ((), ())),
                                preferred_element_type=jnp.float32)   # (tq, tk)
            if masked:   # only diagonal-intersecting tiles build iota/cmp/select
                rows = q_start + lax.broadcasted_iota(jnp.int32, (tq, tk), 0)
                cols = k_start + lax.broadcasted_iota(jnp.int32, (tq, tk), 1)
                s = jnp.where(rows >= cols, s, _NEG_INF)
            m_prev = m_sc[h]
            m_new = jnp.maximum(m_prev, jnp.max(s, axis=-1, keepdims=True))
            alpha = jnp.exp(m_prev - m_new)
            p = jnp.exp(s - m_new)
            l_sc[h] = alpha * l_sc[h] + jnp.sum(p, axis=-1, keepdims=True)
            acc_sc[h] = alpha * acc_sc[h] + jnp.dot(
                p.astype(jnp.bfloat16), v, preferred_element_type=jnp.float32)
            m_sc[h] = m_new

    # Interior (fully causal-valid) tiles: no mask work at all.
    @pl.when(k_last <= q_start)
    def _():
        tile_step(masked=False)

    # Diagonal tiles: masked.  Fully-masked tiles (k_start > q_last) are skipped;
    # their kv block index is clamped to the diagonal block so no DMA is re-issued.
    @pl.when(jnp.logical_and(k_last > q_start, k_start <= q_last))
    def _():
        tile_step(masked=True)

    # NOTE (load-bearing): this fires on the LAST kv grid step even if that step's
    # compute was skipped -- acc/l/m hold the state of the last intersecting tile,
    # which is exactly the finished softmax state for this q tile.
    @pl.when(kj == pl.num_programs(3) - 1)
    def _():
        outs = [acc_sc[h] * pl.reciprocal(l_sc[h], approx=True) for h in range(grp)]
        o_val = outs[0] if grp == 1 else jnp.concatenate(outs, axis=-1)
        o_ref[...] = o_val.astype(o_ref.dtype)             # one lane-dense store


def _attn_flash(q, k, v, *, dh, grp, tq, tk, vmem):
    b, t, c = q.shape
    w = grp * dh
    hg = c // w

    def kv_map(bi, g, i, j):
        # Clamp fully-masked (upper-triangular) kv tiles to the diagonal block:
        # the block index repeats, so the pipeline skips the re-DMA for them.
        last_needed = (i * tq + tq - 1) // tk
        return (bi, jnp.minimum(j, last_needed), g)

    q_spec = pl.BlockSpec((None, tq, w), lambda bi, g, i, j: (bi, i, g))
    kv_spec = pl.BlockSpec((None, tk, w), kv_map)
    return pl.pallas_call(
        functools.partial(_attn_flash_kernel, dh=dh, grp=grp, tq=tq, tk=tk),
        grid=(b, hg, t // tq, t // tk),
        in_specs=[q_spec, kv_spec, kv_spec],
        out_specs=q_spec,
        out_shape=jax.ShapeDtypeStruct((b, t, c), jnp.bfloat16),
        scratch_shapes=[pltpu.VMEM((grp, tq, 1), jnp.float32),     # m
                        pltpu.VMEM((grp, tq, 1), jnp.float32),     # l
                        pltpu.VMEM((grp, tq, dh), jnp.float32)],   # acc
        compiler_params=pltpu.CompilerParams(
            dimension_semantics=("parallel", "parallel", "parallel", "arbitrary"),
            vmem_limit_bytes=vmem),
    )(q, k, v)


# --------------------------- output projection (row-tiled) -------------------

def _proj_kernel(a_ref, w_ref, b_ref, y_ref):
    y = jnp.dot(a_ref[...], w_ref[...],
                preferred_element_type=jnp.float32) + b_ref[...]
    y_ref[...] = y.astype(y_ref.dtype)


def _proj_forward(a_flat, w_proj, b_proj, *, tm, vmem, out_dtype):
    n, c = a_flat.shape
    row = pl.BlockSpec((tm, c), lambda i: (i, 0))
    return pl.pallas_call(
        _proj_kernel,
        grid=(n // tm,),
        in_specs=[row,
                  pl.BlockSpec((c, c), lambda i: (0, 0)),        # resident weight
                  pl.BlockSpec((1, c), lambda i: (0, 0))],
        out_specs=row,
        out_shape=jax.ShapeDtypeStruct((n, c), out_dtype),
        compiler_params=pltpu.CompilerParams(
            dimension_semantics=("parallel",), vmem_limit_bytes=vmem),
    )(a_flat, w_proj, b_proj)


# --------------------------- module forward ----------------------------------

def causal_self_attention(x, params, *, n_head, use_flash_kv=None, tq=None, tk=None):
    """x: (B, T, C) float32 -> (B, T, C) float32.  dropout = 0 (inference)."""
    b, t, c = x.shape
    assert c % n_head == 0
    dh = c // n_head
    assert dh % 128 == 0 or 128 % dh == 0, "head_dim must pack to 128 lanes"
    grp = 1 if dh >= 128 else 128 // dh        # heads packed per lane-dense block
    assert n_head % grp == 0

    cfg = _chip_config()
    tm = _fit_tile(b * t, cfg["tm"])
    tq = _fit_tile(t, cfg["tq"] if tq is None else tq)
    tk = _fit_tile(t, cfg["tk"] if tk is None else tk)
    scale = 1.0 / math.sqrt(dh)

    # fc_qkv (scale folded into q); q/k/v stay in (B, T, C) -- no head transposes.
    q, k, v = _qkv_forward(x.reshape(b * t, c), params["w_qkv"], params["b_qkv"],
                           scale=scale, tm=tm, vmem=cfg["vmem"])
    q = q.reshape(b, t, c)
    k = k.reshape(b, t, c)
    v = v.reshape(b, t, c)

    if use_flash_kv is None:
        use_flash_kv = t > 1024       # short T: full-T K/V is essentially free VMEM
    if use_flash_kv:
        o = _attn_flash(q, k, v, dh=dh, grp=grp, tq=tq, tk=tk, vmem=cfg["vmem"])
    else:
        o = _attn_single(q, k, v, dh=dh, grp=grp, tq=tq, vmem=cfg["vmem"])

    # fc_proj over the (already concatenated, (B,T,C)-contiguous) heads.
    y = _proj_forward(o.reshape(b * t, c), params["w_proj"], params["b_proj"],
                      tm=tm, vmem=cfg["vmem"], out_dtype=x.dtype)
    # TODO(synk): attn_dropout / resid_dropout (p > 0 training mode) not implemented.
    return y.reshape(b, t, c)


# --------------------------- pure-JAX reference (matched casts) --------------

def causal_self_attention_ref(x, params, *, n_head):
    b, t, c = x.shape
    h, dh = n_head, c // n_head
    f32 = jnp.float32
    scale = 1.0 / math.sqrt(dh)
    xb = x.astype(jnp.bfloat16).astype(f32)
    qkv = xb @ params["w_qkv"].astype(f32) + params["b_qkv"]
    q, k, v = jnp.split(qkv, 3, axis=-1)
    q = (q * scale).astype(jnp.bfloat16).astype(f32)
    k = k.astype(jnp.bfloat16).astype(f32)
    v = v.astype(jnp.bfloat16).astype(f32)

    def heads(a):
        return a.reshape(b, t, h, dh).transpose(0, 2, 1, 3)

    s = jnp.einsum("bhqd,bhkd->bhqk", heads(q), heads(k))
    causal = jnp.tril(jnp.ones((t, t), bool))
    s = jnp.where(causal[None, None], s, _NEG_INF)
    p = jax.nn.softmax(s, axis=-1)
    o = jnp.einsum("bhqk,bhkd->bhqd", p.astype(jnp.bfloat16).astype(f32), heads(v))
    o = o.transpose(0, 2, 1, 3).reshape(b, t, c).astype(jnp.bfloat16).astype(f32)
    return o @ params["w_proj"].astype(f32) + params["b_proj"]


# --------------------------- params ------------------------------------------

def init_attention_params(key, n_embd, n_head):
    del n_head
    std = 0.02
    k1, k2, k3, k4 = jax.random.split(key, 4)

    def nrm(k, shape, dtype):
        return (std * jax.random.normal(k, shape, jnp.float32)).astype(dtype)

    return {
        "w_qkv": nrm(k1, (n_embd, 3 * n_embd), jnp.bfloat16),
        "b_qkv": nrm(k2, (1, 3 * n_embd), jnp.float32),
        "w_proj": nrm(k3, (n_embd, n_embd), jnp.bfloat16),
        "b_proj": nrm(k4, (1, n_embd), jnp.float32),
    }


# --------------------------- main ---------------------------------------------

if __name__ == "__main__":
    key = jax.random.PRNGKey(0)
    kp, kx1, kx2 = jax.random.split(key, 3)

    n_embd, n_head = 256, 4          # head_dim = 64 -> 2 heads per 128-lane block
    params = init_attention_params(kp, n_embd, n_head)

    # Config A: short T -> single-pass softmax kernel (tk = T), packed heads.
    b, t = 2, 128
    x = jax.random.normal(kx1, (b, t, n_embd), jnp.float32)
    fwd = jax.jit(functools.partial(causal_self_attention, n_head=n_head))
    y = jax.block_until_ready(fwd(x, params))
    assert y.shape == (b, t, n_embd) and y.dtype == jnp.float32
    err = float(jnp.max(jnp.abs(y - causal_self_attention_ref(x, params, n_head=n_head))))
    assert bool(jnp.isfinite(y).all()) and err < 5e-2, err

    # Config B: longer T, forced kv-tiled flash path (online softmax, clamped causal
    # kv index_map, diagonal-only masking).
    b2, t2 = 1, 512
    x2 = jax.random.normal(kx2, (b2, t2, n_embd), jnp.float32)
    fwd2 = jax.jit(functools.partial(causal_self_attention, n_head=n_head,
                                     use_flash_kv=True, tq=128, tk=128))
    y2 = jax.block_until_ready(fwd2(x2, params))
    err2 = float(jnp.max(jnp.abs(y2 - causal_self_attention_ref(x2, params, n_head=n_head))))
    assert bool(jnp.isfinite(y2).all()) and err2 < 5e-2, err2

    print("KERNEL_OK")
</pallas_src>

<mosaic_0001>
module attributes {stable_mosaic.version = 11 : i64} {
  func.func @_proj_kernel(%arg0: i32, %arg1: memref<256x256xbf16, #tpu.memory_space<vmem>>, %arg2: memref<256x256xbf16, #tpu.memory_space<vmem>>, %arg3: memref<1x256xf32, #tpu.memory_space<vmem>>, %arg4: memref<256x256xf32, #tpu.memory_space<vmem>>) attributes {dimension_semantics = [#tpu.dimension_semantics<parallel>], iteration_bounds = array<i64: 1>, scalar_prefetch = 0 : i64, scratch_operands = 0 : i64, tpu.core_type = #tpu.core_type<tc>, window_params = [{transform_indices = @transform_0, window_bounds = array<i64: 256, 256>}, {pipeline_mode = #tpu.pipeline_mode<synchronous>, transform_indices = @transform_1, window_bounds = array<i64: 256, 256>}, {pipeline_mode = #tpu.pipeline_mode<synchronous>, transform_indices = @transform_2, window_bounds = array<i64: 1, 256>}, {transform_indices = @transform_3, window_bounds = array<i64: 256, 256>}]} {
    %c0 = arith.constant 0 : index
    %c0_0 = arith.constant 0 : index
    %0 = vector.load %arg1[%c0, %c0_0] : memref<256x256xbf16, #tpu.memory_space<vmem>>, vector<256x256xbf16>
    %c0_1 = arith.constant 0 : index
    %c0_2 = arith.constant 0 : index
    %1 = vector.load %arg2[%c0_1, %c0_2] : memref<256x256xbf16, #tpu.memory_space<vmem>>, vector<256x256xbf16>
    %cst = arith.constant dense<0.000000e+00> : vector<256x256xf32>
    %2 = tpu.matmul %0, %1, %cst {dimension_numbers = #tpu.dot_dimension_numbers<[1], [0], [0], [1], [0, 0, 1, 1], [], []>} : vector<256x256xbf16>, vector<256x256xbf16>, vector<256x256xf32> -> vector<256x256xf32>
    %c0_3 = arith.constant 0 : index
    %c0_4 = arith.constant 0 : index
    %3 = vector.load %arg3[%c0_3, %c0_4] : memref<1x256xf32, #tpu.memory_space<vmem>>, vector<1x256xf32>
    %4 = vector.broadcast %3 : vector<1x256xf32> to vector<256x256xf32>
    %5 = arith.addf %2, %4 : vector<256x256xf32>
    %c0_5 = arith.constant 0 : index
    %c0_6 = arith.constant 0 : index
    %6 = vector.load %arg4[%c0_5, %c0_6] : memref<256x256xf32, #tpu.memory_space<vmem>>, vector<256x256xf32>
    tpu.vector_store %arg4[%c0_5, %c0_6], %5 {strides = array<i32>} : memref<256x256xf32, #tpu.memory_space<vmem>>, vector<256x256xf32>,
    return
  }
  func.func @transform_0(%arg0: i32) -> (i32, i32) {
    %c0_i32 = arith.constant 0 : i32
    %c0_i32_0 = arith.constant 0 : i32
    return %arg0, %c0_i32 : i32, i32
  }
  func.func @transform_1(%arg0: i32) -> (i32, i32) {
    %c0_i32 = arith.constant 0 : i32
    %c0_i32_0 = arith.constant 0 : i32
    %c0_i32_1 = arith.constant 0 : i32
    return %c0_i32, %c0_i32_0 : i32, i32
  }
  func.func @transform_2(%arg0: i32) -> (i32, i32) {
    %c0_i32 = arith.constant 0 : i32
    %c0_i32_0 = arith.constant 0 : i32
    %c0_i32_1 = arith.constant 0 : i32
    return %c0_i32, %c0_i32_0 : i32, i32
  }
  func.func @transform_3(%arg0: i32) -> (i32, i32) {
    %c0_i32 = arith.constant 0 : i32
    %c0_i32_0 = arith.constant 0 : i32
    return %arg0, %c0_i32 : i32, i32
  }
}

module attributes {stable_mosaic.version = 11 : i64} {
  func.func @_qkv_kernel(%arg0: i32, %arg1: memref<256x256xf32, #tpu.memory_space<vmem>>, %arg2: memref<256x768xbf16, #tpu.memory_space<vmem>>, %arg3: memref<1x768xf32, #tpu.memory_space<vmem>>, %arg4: memref<256x256xbf16, #tpu.memory_space<vmem>>, %arg5: memref<256x256xbf16, #tpu.memory_space<vmem>>, %arg6: memref<256x256xbf16, #tpu.memory_space<vmem>>) attributes {dimension_semantics = [#tpu.dimension_semantics<parallel>], iteration_bounds = array<i64: 1>, scalar_prefetch = 0 : i64, scratch_operands = 0 : i64, tpu.core_type = #tpu.core_type<tc>, window_params = [{transform_indices = @transform_0, window_bounds = array<i64: 256, 256>}, {pipeline_mode = #tpu.pipeline_mode<synchronous>, transform_indices = @transform_1, window_bounds = array<i64: 256, 768>}, {pipeline_mode = #tpu.pipeline_mode<synchronous>, transform_indices = @transform_2, window_bounds = array<i64: 1, 768>}, {transform_indices = @transform_3, window_bounds = array<i64: 256, 256>}, {transform_indices = @transform_4, window_bounds = array<i64: 256, 256>}, {transform_indices = @transform_5, window_bounds = array<i64: 256, 256>}]} {
    %c0 = arith.constant 0 : index
    %c0_0 = arith.constant 0 : index
    %0 = vector.load %arg1[%c0, %c0_0] : memref<256x256xf32, #tpu.memory_space<vmem>>, vector<256x256xf32>
    %1 = arith.truncf %0 : vector<256x256xf32> to vector<256x256xbf16>
    %c0_1 = arith.constant 0 : index
    %c0_2 = arith.constant 0 : index
    %2 = vector.load %arg2[%c0_1, %c0_2] : memref<256x768xbf16, #tpu.memory_space<vmem>>, vector<256x768xbf16>
    %cst = arith.constant dense<0.000000e+00> : vector<256x768xf32>
    %3 = tpu.matmul %1, %2, %cst {dimension_numbers = #tpu.dot_dimension_numbers<[1], [0], [0], [1], [0, 0, 1, 1], [], []>} : vector<256x256xbf16>, vector<256x768xbf16>, vector<256x768xf32> -> vector<256x768xf32>
    %c0_3 = arith.constant 0 : index
    %c0_4 = arith.constant 0 : index
    %4 = vector.load %arg3[%c0_3, %c0_4] : memref<1x768xf32, #tpu.memory_space<vmem>>, vector<1x768xf32>
    %5 = vector.broadcast %4 : vector<1x768xf32> to vector<256x768xf32>
    %6 = arith.addf %3, %5 : vector<256x768xf32>
    %7 = vector.extract_strided_slice %6 {offsets = [0, 0], sizes = [256, 256], strides = [1, 1]} : vector<256x768xf32> to vector<256x256xf32>
    %cst_5 = arith.constant 1.250000e-01 : f32
    %8 = vector.broadcast %cst_5 : f32 to vector<256x256xf32>
    %9 = arith.mulf %7, %8 : vector<256x256xf32>
    %10 = arith.truncf %9 : vector<256x256xf32> to vector<256x256xbf16>
    %c0_6 = arith.constant 0 : index
    %c0_7 = arith.constant 0 : index
    %11 = vector.load %arg4[%c0_6, %c0_7] : memref<256x256xbf16, #tpu.memory_space<vmem>>, vector<256x256xbf16>
    tpu.vector_store %arg4[%c0_6, %c0_7], %10 {strides = array<i32>} : memref<256x256xbf16, #tpu.memory_space<vmem>>, vector<256x256xbf16>,
    %12 = vector.extract_strided_slice %6 {offsets = [0, 256], sizes = [256, 256], strides = [1, 1]} : vector<256x768xf32> to vector<256x256xf32>
    %13 = arith.truncf %12 : vector<256x256xf32> to vector<256x256xbf16>
    %c0_8 = arith.constant 0 : index
    %c0_9 = arith.constant 0 : index
    %14 = vector.load %arg5[%c0_8, %c0_9] : memref<256x256xbf16, #tpu.memory_space<vmem>>, vector<256x256xbf16>
    tpu.vector_store %arg5[%c0_8, %c0_9], %13 {strides = array<i32>} : memref<256x256xbf16, #tpu.memory_space<vmem>>, vector<256x256xbf16>,
    %15 = vector.extract_strided_slice %6 {offsets = [0, 512], sizes = [256, 256], strides = [1, 1]} : vector<256x768xf32> to vector<256x256xf32>
    %16 = arith.truncf %15 : vector<256x256xf32> to vector<256x256xbf16>
    %c0_10 = arith.constant 0 : index
    %c0_11 = arith.constant 0 : index
    %17 = vector.load %arg6[%c0_10, %c0_11] : memref<256x256xbf16, #tpu.memory_space<vmem>>, vector<256x256xbf16>
    tpu.vector_store %arg6[%c0_10, %c0_11], %16 {strides = array<i32>} : memref<256x256xbf16, #tpu.memory_space<vmem>>, vector<256x256xbf16>,
    return
  }
  func.func @transform_0(%arg0: i32) -> (i32, i32) {
    %c0_i32 = arith.constant 0 : i32
    %c0_i32_0 = arith.constant 0 : i32
    return %arg0, %c0_i32 : i32, i32
  }
  func.func @transform_1(%arg0: i32) -> (i32, i32) {
    %c0_i32 = arith.constant 0 : i32
    %c0_i32_0 = arith.constant 0 : i32
    %c0_i32_1 = arith.constant 0 : i32
    return %c0_i32, %c0_i32_0 : i32, i32
  }
  func.func @transform_2(%arg0: i32) -> (i32, i32) {
    %c0_i32 = arith.constant 0 : i32
    %c0_i32_0 = arith.constant 0 : i32
    %c0_i32_1 = arith.constant 0 : i32
    return %c0_i32, %c0_i32_0 : i32, i32
  }
  func.func @transform_3(%arg0: i32) -> (i32, i32) {
    %c0_i32 = arith.constant 0 : i32
    %c0_i32_0 = arith.constant 0 : i32
    return %arg0, %c0_i32 : i32, i32
  }
  func.func @transform_4(%arg0: i32) -> (i32, i32) {
    %c0_i32 = arith.constant 0 : i32
    %c0_i32_0 = arith.constant 0 : i32
    return %arg0, %c0_i32 : i32, i32
  }
  func.func @transform_5(%arg0: i32) -> (i32, i32) {
    %c0_i32 = arith.constant 0 : i32
    %c0_i32_0 = arith.constant 0 : i32
    return %arg0, %c0_i32 : i32, i32
  }
}

module attributes {stable_mosaic.version = 11 : i64} {
  func.func @_attn_single_kernel(%arg0: i32, %arg1: i32, %arg2: i32, %arg3: memref<1x128x128xbf16, #tpu.memory_space<vmem>>, %arg4: memref<1x128x128xbf16, #tpu.memory_space<vmem>>, %arg5: memref<1x128x128xbf16, #tpu.memory_space<vmem>>, %arg6: memref<1x128x128xbf16, #tpu.memory_space<vmem>>) attributes {dimension_semantics = [#tpu.dimension_semantics<parallel>, #tpu.dimension_semantics<parallel>, #tpu.dimension_semantics<parallel>], iteration_bounds = array<i64: 2, 2, 1>, scalar_prefetch = 0 : i64, scratch_operands = 0 : i64, tpu.core_type = #tpu.core_type<tc>, window_params = [{transform_indices = @transform_0, window_bounds = array<i64: 1, 128, 128>}, {transform_indices = @transform_1, window_bounds = array<i64: 1, 128, 128>}, {transform_indices = @transform_2, window_bounds = array<i64: 1, 128, 128>}, {transform_indices = @transform_3, window_bounds = array<i64: 1, 128, 128>}]} {
    %c128_i32 = arith.constant 128 : i32
    %0 = arith.muli %arg2, %c128_i32 : i32
    %1 = tpu.iota {dimensions = array<i32: 0>} : vector<128x128xi32>
    %2 = vector.broadcast %0 : i32 to vector<128x128xi32>
    %3 = arith.addi %2, %1 : vector<128x128xi32>
    %4 = tpu.iota {dimensions = array<i32: 1>} : vector<128x128xi32>
    %5 = arith.cmpi sge, %3, %4 : vector<128x128xi32>
    %c0 = arith.constant 0 : index
    %c0_0 = arith.constant 0 : index
    %c0_1 = arith.constant 0 : index
    %6 = vector.load %arg3[%c0, %c0_0, %c0_1] : memref<1x128x128xbf16, #tpu.memory_space<vmem>>, vector<1x128x64xbf16>
    %7 = vector.shape_cast %6 : vector<1x128x64xbf16> to vector<128x64xbf16>
    %c0_2 = arith.constant 0 : index
    %c0_3 = arith.constant 0 : index
    %c0_4 = arith.constant 0 : index
    %8 = vector.load %arg4[%c0_2, %c0_3, %c0_4] : memref<1x128x128xbf16, #tpu.memory_space<vmem>>, vector<1x128x64xbf16>
    %9 = vector.shape_cast %8 : vector<1x128x64xbf16> to vector<128x64xbf16>
    %c0_5 = arith.constant 0 : index
    %c0_6 = arith.constant 0 : index
    %c0_7 = arith.constant 0 : index
    %10 = vector.load %arg5[%c0_5, %c0_6, %c0_7] : memref<1x128x128xbf16, #tpu.memory_space<vmem>>, vector<1x128x64xbf16>
    %11 = vector.shape_cast %10 : vector<1x128x64xbf16> to vector<128x64xbf16>
    %cst = arith.constant dense<0.000000e+00> : vector<128x128xf32>
    %12 = tpu.matmul %7, %9, %cst {dimension_numbers = #tpu.dot_dimension_numbers<[1], [1], [0], [0], [0, 0, 1, 0], [], []>} : vector<128x64xbf16>, vector<128x64xbf16>, vector<128x128xf32> -> vector<128x128xf32>
    %cst_8 = arith.constant -1.000000e+30 : f32
    %13 = vector.broadcast %cst_8 : f32 to vector<128x128xf32>
    %14 = arith.select %5, %12, %13 : vector<128x128xi1>, vector<128x128xf32>
    %cst_9 = arith.constant dense<0xFF800000> : vector<128xf32>
    %15 = vector.multi_reduction <maximumf>, %14, %cst_9 [1] : vector<128x128xf32> to vector<128xf32>
    %16 = vector.shape_cast %15 : vector<128xf32> to vector<128x1xf32>
    %17 = vector.broadcast %16 : vector<128x1xf32> to vector<128x128xf32>
    %18 = arith.subf %14, %17 : vector<128x128xf32>
    %19 = math.exp %18 : vector<128x128xf32>
    %cst_10 = arith.constant dense<0.000000e+00> : vector<128xf32>
    %20 = vector.multi_reduction <add>, %19, %cst_10 [1] : vector<128x128xf32> to vector<128xf32>
    %21 = vector.shape_cast %20 : vector<128xf32> to vector<128x1xf32>
    %22 = arith.truncf %19 : vector<128x128xf32> to vector<128x128xbf16>
    %cst_11 = arith.constant dense<0.000000e+00> : vector<128x64xf32>
    %23 = tpu.matmul %22, %11, %cst_11 {dimension_numbers = #tpu.dot_dimension_numbers<[1], [0], [0], [1], [0, 0, 1, 1], [], []>} : vector<128x128xbf16>, vector<128x64xbf16>, vector<128x64xf32> -> vector<128x64xf32>
    %24 = tpu.reciprocal %21 {approx = true} : vector<128x1xf32> -> vector<128x1xf32>
    %25 = vector.broadcast %24 : vector<128x1xf32> to vector<128x64xf32>
    %26 = arith.mulf %23, %25 : vector<128x64xf32>
    %c0_12 = arith.constant 0 : index
    %c0_13 = arith.constant 0 : index
    %c64 = arith.constant 64 : index
    %27 = vector.load %arg3[%c0_12, %c0_13, %c64] : memref<1x128x128xbf16, #tpu.memory_space<vmem>>, vector<1x128x64xbf16>
    %28 = vector.shape_cast %27 : vector<1x128x64xbf16> to vector<128x64xbf16>
    %c0_14 = arith.constant 0 : index
    %c0_15 = arith.constant 0 : index
    %c64_16 = arith.constant 64 : index
    %29 = vector.load %arg4[%c0_14, %c0_15, %c64_16] : memref<1x128x128xbf16, #tpu.memory_space<vmem>>, vector<1x128x64xbf16>
    %30 = vector.shape_cast %29 : vector<1x128x64xbf16> to vector<128x64xbf16>
    %c0_17 = arith.constant 0 : index
    %c0_18 = arith.constant 0 : index
    %c64_19 = arith.constant 64 : index
    %31 = vector.load %arg5[%c0_17, %c0_18, %c64_19] : memref<1x128x128xbf16, #tpu.memory_space<vmem>>, vector<1x128x64xbf16>
    %32 = vector.shape_cast %31 : vector<1x128x64xbf16> to vector<128x64xbf16>
    %cst_20 = arith.constant dense<0.000000e+00> : vector<128x128xf32>
    %33 = tpu.matmul %28, %30, %cst_20 {dimension_numbers = #tpu.dot_dimension_numbers<[1], [1], [0], [0], [0, 0, 1, 0], [], []>} : vector<128x64xbf16>, vector<128x64xbf16>, vector<128x128xf32> -> vector<128x128xf32>
    %cst_21 = arith.constant -1.000000e+30 : f32
    %34 = vector.broadcast %cst_21 : f32 to vector<128x128xf32>
    %35 = arith.select %5, %33, %34 : vector<128x128xi1>, vector<128x128xf32>
    %cst_22 = arith.constant dense<0xFF800000> : vector<128xf32>
    %36 = vector.multi_reduction <maximumf>, %35, %cst_22 [1] : vector<128x128xf32> to vector<128xf32>
    %37 = vector.shape_cast %36 : vector<128xf32> to vector<128x1xf32>
    %38 = vector.broadcast %37 : vector<128x1xf32> to vector<128x128xf32>
    %39 = arith.subf %35, %38 : vector<128x128xf32>
    %40 = math.exp %39 : vector<128x128xf32>
    %cst_23 = arith.constant dense<0.000000e+00> : vector<128xf32>
    %41 = vector.multi_reduction <add>, %40, %cst_23 [1] : vector<128x128xf32> to vector<128xf32>
    %42 = vector.shape_cast %41 : vector<128xf32> to vector<128x1xf32>
    %43 = arith.truncf %40 : vector<128x128xf32> to vector<128x128xbf16>
    %cst_24 = arith.constant dense<0.000000e+00> : vector<128x64xf32>
    %44 = tpu.matmul %43, %32, %cst_24 {dimension_numbers = #tpu.dot_dimension_numbers<[1], [0], [0], [1], [0, 0, 1, 1], [], []>} : vector<128x128xbf16>, vector<128x64xbf16>, vector<128x64xf32> -> vector<128x64xf32>
    %45 = tpu.reciprocal %42 {approx = true} : vector<128x1xf32> -> vector<128x1xf32>
    %46 = vector.broadcast %45 : vector<128x1xf32> to vector<128x64xf32>
    %47 = arith.mulf %44, %46 : vector<128x64xf32>
    %48 = tpu.concatenate %26, %47 in 1 : vector<128x64xf32>, vector<128x64xf32> -> vector<128x128xf32>
    %49 = arith.truncf %48 : vector<128x128xf32> to vector<128x128xbf16>
    %c0_25 = arith.constant 0 : index
    %c0_26 = arith.constant 0 : index
    %c0_27 = arith.constant 0 : index
    %50 = vector.load %arg6[%c0_25, %c0_26, %c0_27] : memref<1x128x128xbf16, #tpu.memory_space<vmem>>, vector<1x128x128xbf16>
    %51 = vector.shape_cast %50 : vector<1x128x128xbf16> to vector<128x128xbf16>
    %52 = vector.shape_cast %49 : vector<128x128xbf16> to vector<1x128x128xbf16>
    tpu.vector_store %arg6[%c0_25, %c0_26, %c0_27], %52 {strides = array<i32>} : memref<1x128x128xbf16, #tpu.memory_space<vmem>>, vector<1x128x128xbf16>,
    return
  }
  func.func @transform_0(%arg0: i32, %arg1: i32, %arg2: i32) -> (i32, i32, i32) {
    %c0_i32 = arith.constant 0 : i32
    return %arg0, %arg2, %arg1 : i32, i32, i32
  }
  func.func @transform_1(%arg0: i32, %arg1: i32, %arg2: i32) -> (i32, i32, i32) {
    %c0_i32 = arith.constant 0 : i32
    %c0_i32_0 = arith.constant 0 : i32
    return %arg0, %c0_i32, %arg1 : i32, i32, i32
  }
  func.func @transform_2(%arg0: i32, %arg1: i32, %arg2: i32) -> (i32, i32, i32) {
    %c0_i32 = arith.constant 0 : i32
    %c0_i32_0 = arith.constant 0 : i32
    return %arg0, %c0_i32, %arg1 : i32, i32, i32
  }
  func.func @transform_3(%arg0: i32, %arg1: i32, %arg2: i32) -> (i32, i32, i32) {
    %c0_i32 = arith.constant 0 : i32
    return %arg0, %arg2, %arg1 : i32, i32, i32
  }
}

</mosaic_0001>

<bundles_post_ra>
// kernel: causal_self_attention.5
= control target key start
LH: loop header
LB: loop body
LE: loop exit
PB: predicated region body
PF: predicated region fallthrough
CT: control target
= control target key end

     0   :  { %8 = vsyncpa [#allocation3], 0  ;;  %s1170_s0 = inlined_call_operand.hbm [shape: bf16[256,256], index: 0, kind: input, shape index: {}]   ;;  %s1171_s1 = inlined_call_operand.hbm [shape: bf16[256,256], index: 1, kind: input, shape index: {}]   ;;  %s1172_s2 = inlined_call_operand.hbm [shape: f32[1,256], index: 2, kind: input, shape index: {}]   ;;  %s1173_s3 = inlined_call_operand.hbm [shape: f32[256,256], index: 3, kind: output, shape index: {}]  }
   0x1   :  { %9 = vsyncpa [#allocation6], 0 }
   0x2   :  { %10 = vsyncpa [#allocation4], 0  ;;  %s1019_s12 = smov [#allocation5]   ;;  %s1020_s14 = smov [#allocation2]  }
   0x3   :  { %s28_s13 = sshll.u32 %s1019_s12, 4  ;;  %s16_s15 = sshll.u32 %s1020_s14, 4  ;;  %s29_s13 = int_to_ptr.vmem [resolvable:$true] %s28_s13  ;;  %s1047_s15 = int_to_ptr.vmem [resolvable:$true] %s16_s15 }
   0x4   :  { %s925_s18 = scalar_lea.hbm %s1171_s1, 4096 }
   0x5   :  { %p926_p0 = scmp.ne.s32.totalorder %s1171_s1, %s925_s18  ;;  %p929_p1 = scmp.lt.u32.totalorder %s925_s18, %s1171_s1 }
   0x7   :  { %p931_p2 = pnand %p929_p1, %p926_p0 }
   0x9   :  { %934 = shalt.err (!%p931_p2)
}
   0xa   :  { %s935_s23 = scalar_lea.vmem %s29_s13, 4096  ;;  %p940_p4 = scmp.lt.s32.totalorder %s29_s13, %s29_s13 }
   0xb   :  { %p936_p3 = scmp.ne.s32.totalorder %s29_s13, %s935_s23  ;;  %p941_p5 = scmp.lt.s32.totalorder %s935_s23, %s935_s23 }
   0xd   :  { %p942_p6 = por %p941_p5, %p940_p4 }
   0xf   :  { %p943_p7 = pnand %p942_p6, %p936_p3 }
  0x11   :  { %946 = shalt.err (!%p943_p7)
}
  0x12   :  { %s1021_s24 = smov 128   ;;  %s1022_s25 = smov 8  }
  0x13   :  { %34 = dma.hbm_to_vmem [thread:$0]  %s1171_s1, 4096, %s29_s13, [#allocation6], %s1021_s24, %s1021_s24, %s1022_s25  }
  0x14   :  { %s947_s30 = scalar_lea.hbm %s1170_s0, 4096 }
  0x15   :  { %p948_p8 = scmp.ne.s32.totalorder %s1170_s0, %s947_s30  ;;  %p951_p9 = scmp.lt.u32.totalorder %s947_s30, %s1170_s0 }
  0x17   :  { %p953_p10 = pnand %p951_p9, %p948_p8 }
  0x19   :  { %956 = shalt.err (!%p953_p10)
}
  0x1a   :  { %s957_s8 = scalar_lea.vmem %s1047_s15, 4096  ;;  %p962_p12 = scmp.lt.s32.totalorder %s1047_s15, %s1047_s15 }
  0x1b   :  { %p958_p11 = scmp.ne.s32.totalorder %s1047_s15, %s957_s8  ;;  %p963_p13 = scmp.lt.s32.totalorder %s957_s8, %s957_s8 }
  0x1d   :  { %p964_p0 = por %p963_p13, %p962_p12 }
  0x1f   :  { %p965_p1 = pnand %p964_p0, %p958_p11 }
  0x21   :  { %968 = shalt.err (!%p965_p1)
}
  0x22   :  { %22 = dma.hbm_to_vmem [thread:$0]  %s1170_s0, 4096, %s1047_s15, [#allocation3], %s1021_s24, %s1021_s24, %s1022_s25  }
  0x23   :  { %s1023_s10 = smov [#allocation7]   ;;  %s969_s14 = scalar_lea.hbm %s1172_s2, 32 }
  0x24   :  { %s41_s11 = sshll.u32 %s1023_s10, 4  ;;  %p970_p2 = scmp.ne.s32.totalorder %s1172_s2, %s969_s14  ;;  %s42_s11 = int_to_ptr.vmem [resolvable:$true] %s41_s11 }
  0x25   :  { %p973_p3 = scmp.lt.u32.totalorder %s969_s14, %s1172_s2 }
  0x27   :  { %p975_p4 = pnand %p973_p3, %p970_p2 }
  0x29   :  { %978 = shalt.err (!%p975_p4)
}
  0x2a   :  { %s979_s20 = scalar_lea.vmem %s42_s11, 32  ;;  %p984_p6 = scmp.lt.s32.totalorder %s42_s11, %s42_s11 }
  0x2b   :  { %p980_p5 = scmp.ne.s32.totalorder %s42_s11, %s979_s20  ;;  %p985_p7 = scmp.lt.s32.totalorder %s979_s20, %s979_s20 }
  0x2d   :  { %p986_p8 = por %p985_p7, %p984_p6 }
  0x2f   :  { %p987_p9 = pnand %p986_p8, %p980_p5 }
  0x31   :  { %990 = shalt.err (!%p987_p9)
}
  0x32   :  { %44 = dma.hbm_to_vmem [thread:$0]  %s1172_s2, 32, %s42_s11, [#allocation6]  }
  0x33   :  { %1013 = dma.done.wait [#allocation3], 4096  }
  0x34   :  { %1014 = vsyncadd [#allocation3], 4294963200 }
  0x35   :  { %1015 = dma.done.wait [#allocation6], 4128  }
  0x36   :  { %1016 = vsyncadd [#allocation6], 4294963168  ;;  %v829_v0 = vld [vmem:[#allocation5 + $0x4] ss:$8 sps:$4 sm:$0xff]   ;;  %v831_v1 = vld [vmem:[#allocation5] ss:$8 sps:$4 sm:$0xff]  }
  0x37   :  { %450 = vmatprep.subr.bf16.mxu0 %v829_v0  ;;  %789 = vmatprep.subr.bf16.mxu1 %v829_v0  ;;  %v832_v2 = vld [vmem:[#allocation5 + $0x14] ss:$8 sps:$4 sm:$0xff]   ;;  %v834_v3 = vld [vmem:[#allocation5 + $0x10] ss:$8 sps:$4 sm:$0xff]   ;;  %v835_v4 = vld [vmem:[#allocation5 + $0x24] ss:$8 sps:$4 sm:$0xff]   ;;  %v120_v0 = vlaneseq }
  0x38   :  { %451 = vmatpush1.bf16.msra.mxu0 %v831_v1  ;;  %805 = vmatpush1.bf16.msra.mxu1 %v831_v1  ;;  %v837_v5 = vld [vmem:[#allocation5 + $0x20] ss:$8 sps:$4 sm:$0xff]   ;;  %v838_v6 = vld [vmem:[#allocation5 + $0x34] ss:$8 sps:$4 sm:$0xff]   ;;  %v840_v7 = vld [vmem:[#allocation5 + $0x30] ss:$8 sps:$4 sm:$0xff]  }
  0x39   :  { %452 = vmatprep.subr.bf16.mxu0 %v832_v2  ;;  %790 = vmatprep.subr.bf16.mxu1 %v832_v2  ;;  %v841_v8 = vld [vmem:[#allocation5 + $0x44] ss:$8 sps:$4 sm:$0xff]   ;;  %v843_v9 = vld [vmem:[#allocation5 + $0x40] ss:$8 sps:$4 sm:$0xff]   ;;  %v844_v10 = vld [vmem:[#allocation5 + $0x54] ss:$8 sps:$4 sm:$0xff]  }
  0x3a   :  { %v846_v11 = vld [vmem:[#allocation5 + $0x50] ss:$8 sps:$4 sm:$0xff]   ;;  %v847_v12 = vld [vmem:[#allocation5 + $0x64] ss:$8 sps:$4 sm:$0xff]   ;;  %v849_v14 = vld [vmem:[#allocation5 + $0x60] ss:$8 sps:$4 sm:$0xff]  }
  0x3b   :  { %v879_v13 = vld [vmem:[#allocation2 + $0x4] ss:$8 sps:$4 sm:$0xff]   ;;  %v850_v16 = vld [vmem:[#allocation5 + $0x74] ss:$8 sps:$4 sm:$0xff]   ;;  %v852_v17 = vld [vmem:[#allocation5 + $0x70] ss:$8 sps:$4 sm:$0xff]  }
  0x3c   :  { %453 = vmatpush1.bf16.msra.mxu0 %v834_v3  ;;  %806 = vmatpush1.bf16.msra.mxu1 %v834_v3  ;;  %v882_v15 = vld [vmem:[#allocation2 + $0x84] ss:$8 sps:$4 sm:$0xff]   ;;  %v855_v19 = vld [vmem:[#allocation5 + $0x80] ss:$8 sps:$4 sm:$0xff]   ;;  %v856_v20 = vld [vmem:[#allocation5 + $0x94] ss:$8 sps:$4 sm:$0xff]  }
  0x3d   :  { %454 = vmatprep.subr.bf16.mxu0 %v835_v4  ;;  %791 = vmatprep.subr.bf16.mxu1 %v835_v4  ;;  %v853_v18 = vld [vmem:[#allocation5 + $0x84] ss:$8 sps:$4 sm:$0xff]   ;;  %v858_v21 = vld [vmem:[#allocation5 + $0x90] ss:$8 sps:$4 sm:$0xff]   ;;  %v861_v23 = vld [vmem:[#allocation5 + $0xa0] ss:$8 sps:$4 sm:$0xff]  }
  0x3e   :  { %482 = vmatprep.mubr.bf16.mxu0 %v879_v13  ;;  %562 = vmatprep.mubr.bf16.mxu1 %v882_v15  ;;  %v859_v22 = vld [vmem:[#allocation5 + $0xa4] ss:$8 sps:$4 sm:$0xff]   ;;  %v862_v24 = vld [vmem:[#allocation5 + $0xb4] ss:$8 sps:$4 sm:$0xff]   ;;  %v864_v25 = vld [vmem:[#allocation5 + $0xb0] ss:$8 sps:$4 sm:$0xff]  }
  0x3f   :  { %v865_v26 = vld [vmem:[#allocation5 + $0xc4] ss:$8 sps:$4 sm:$0xff]   ;;  %v867_v27 = vld [vmem:[#allocation5 + $0xc0] ss:$8 sps:$4 sm:$0xff]   ;;  %v868_v28 = vld [vmem:[#allocation5 + $0xd4] ss:$8 sps:$4 sm:$0xff]  }
  0x40   :  { %455 = vmatpush1.bf16.msra.mxu0 %v837_v5  ;;  %807 = vmatpush1.bf16.msra.mxu1 %v837_v5  ;;  %v870_v29 = vld [vmem:[#allocation5 + $0xd0] ss:$8 sps:$4 sm:$0xff]   ;;  %v871_v30 = vld [vmem:[#allocation5 + $0xe4] ss:$8 sps:$4 sm:$0xff]   ;;  %v873_v31 = vld [vmem:[#allocation5 + $0xe0] ss:$8 sps:$4 sm:$0xff]  }
  0x41   :  { %456 = vmatprep.subr.bf16.mxu0 %v838_v6  ;;  %792 = vmatprep.subr.bf16.mxu1 %v838_v6  ;;  %v874_v32 = vld [vmem:[#allocation5 + $0xf4] ss:$8 sps:$4 sm:$0xff]   ;;  %v876_v33 = vld [vmem:[#allocation5 + $0xf0] ss:$8 sps:$4 sm:$0xff]   ;;  %v877_v34 = vld [vmem:[#allocation2] ss:$8 sps:$4 sm:$0xff]  }
  0x42   :  { %v880_v35 = vld [vmem:[#allocation2 + $0x80] ss:$8 sps:$4 sm:$0xff]   ;;  %v883_v36 = vld [vmem:[#allocation2 + $0x14] ss:$8 sps:$4 sm:$0xff]   ;;  %v887_v38 = vld [vmem:[#allocation2 + $0x10] ss:$8 sps:$4 sm:$0xff]  }
  0x43   :  { %v885_v37 = vld [vmem:[#allocation2 + $0x94] ss:$8 sps:$4 sm:$0xff]   ;;  %v888_v39 = vld [vmem:[#allocation2 + $0x90] ss:$8 sps:$4 sm:$0xff]   ;;  %v889_v40 = vld [vmem:[#allocation2 + $0x24] ss:$8 sps:$4 sm:$0xff]  }
  0x44   :  { %457 = vmatpush1.bf16.msra.mxu0 %v840_v7  ;;  %808 = vmatpush1.bf16.msra.mxu1 %v840_v7  ;;  %v891_v41 = vld [vmem:[#allocation2 + $0xa4] ss:$8 sps:$4 sm:$0xff]   ;;  %v893_v42 = vld [vmem:[#allocation2 + $0x20] ss:$8 sps:$4 sm:$0xff]   ;;  %v895_v44 = vld [vmem:[#allocation2 + $0x34] ss:$8 sps:$4 sm:$0xff]  }
  0x45   :  { %458 = vmatprep.subr.bf16.mxu0 %v841_v8  ;;  %793 = vmatprep.subr.bf16.mxu1 %v841_v8  ;;  %v894_v43 = vld [vmem:[#allocation2 + $0xa0] ss:$8 sps:$4 sm:$0xff]   ;;  %v897_v45 = vld [vmem:[#allocation2 + $0xb4] ss:$8 sps:$4 sm:$0xff]   ;;  %v899_v46 = vld [vmem:[#allocation2 + $0x30] ss:$8 sps:$4 sm:$0xff]  }
  0x46   :  { %v900_v47 = vld [vmem:[#allocation2 + $0xb0] ss:$8 sps:$4 sm:$0xff]   ;;  %v901_v48 = vld [vmem:[#allocation2 + $0x44] ss:$8 sps:$4 sm:$0xff]   ;;  %v905_v50 = vld [vmem:[#allocation2 + $0x40] ss:$8 sps:$4 sm:$0xff]  }
  0x47   :  { %v903_v49 = vld [vmem:[#allocation2 + $0xc4] ss:$8 sps:$4 sm:$0xff]   ;;  %v906_v51 = vld [vmem:[#allocation2 + $0xc0] ss:$8 sps:$4 sm:$0xff]   ;;  %v907_v52 = vld [vmem:[#allocation2 + $0x54] ss:$8 sps:$4 sm:$0xff]  }
  0x48   :  { %459 = vmatpush1.bf16.msra.mxu0 %v843_v9  ;;  %809 = vmatpush1.bf16.msra.mxu1 %v843_v9  ;;  %v909_v53 = vld [vmem:[#allocation2 + $0xd4] ss:$8 sps:$4 sm:$0xff]   ;;  %v911_v54 = vld [vmem:[#allocation2 + $0x50] ss:$8 sps:$4 sm:$0xff]   ;;  %v913_v56 = vld [vmem:[#allocation2 + $0x64] ss:$8 sps:$4 sm:$0xff]  }
  0x49   :  { %460 = vmatprep.subr.bf16.mxu0 %v844_v10  ;;  %794 = vmatprep.subr.bf16.mxu1 %v844_v10  ;;  %v912_v55 = vld [vmem:[#allocation2 + $0xd0] ss:$8 sps:$4 sm:$0xff]   ;;  %v915_v57 = vld [vmem:[#allocation2 + $0xe4] ss:$8 sps:$4 sm:$0xff]   ;;  %v917_v58 = vld [vmem:[#allocation2 + $0x60] ss:$8 sps:$4 sm:$0xff]  }
  0x4a   :  { %v918_v59 = vld [vmem:[#allocation2 + $0xe0] ss:$8 sps:$4 sm:$0xff]   ;;  %v919_v60 = vld [vmem:[#allocation2 + $0x74] ss:$8 sps:$4 sm:$0xff]   ;;  %v923_v62 = vld [vmem:[#allocation2 + $0x70] ss:$8 sps:$4 sm:$0xff]  }
  0x4b   :  { %v921_v61 = vld [vmem:[#allocation2 + $0xf4] ss:$8 sps:$4 sm:$0xff]   ;;  %v924_v63 = vld [vmem:[#allocation2 + $0xf0] ss:$8 sps:$4 sm:$0xff]   ;;  %v121_v1 = vshrl.u32 %v120_v0, 7  ;;  %s1024_s2 = smov [#allocation8]  }
  0x4c   :  { %461 = vmatpush1.bf16.msra.mxu0 %v846_v11  ;;  %810 = vmatpush1.bf16.msra.mxu1 %v846_v11  ;;  %v118_v3 = vld [vmem:[#allocation7] sm:$0x3]  ;;  %s712_s21 = sshll.u32 %s1024_s2, 4  ;;  %s713_s21 = int_to_ptr.vmem [resolvable:$true] %s712_s21 }
  0x4d   :  { %462 = vmatprep.subr.bf16.mxu0 %v847_v12  ;;  %795 = vmatprep.subr.bf16.mxu1 %v847_v12  ;;  %v122_v2 = vsub.s32 0, %v121_v1  ;;  %v126_v4 = vsub.s32 1, %v121_v1  ;;  %s991_s22 = scalar_lea.vmem %s713_s21, 8192  ;;  %p996_p11 = scmp.lt.s32.totalorder %s713_s21, %s713_s21 }
  0x4e   :  { %p992_p10 = scmp.ne.s32.totalorder %s713_s21, %s991_s22  ;;  %p997_p12 = scmp.lt.s32.totalorder %s991_s22, %s991_s22 }
  0x4f   :  { %v1090_v5 = vrot.slane %v118_v3, %v122_v2  ;;  %v1092_v6 = vrot.slane %v118_v3, %v126_v4 }
  0x50   :  { %463 = vmatpush1.bf16.msra.mxu0 %v849_v14  ;;  %811 = vmatpush1.bf16.msra.mxu1 %v849_v14  ;;  %p998_p13 = por %p997_p12, %p996_p11 }
  0x51   :  { %464 = vmatprep.subr.bf16.mxu0 %v850_v16  ;;  %796 = vmatprep.subr.bf16.mxu1 %v850_v16 }
  0x52   :  { %p999_p0 = pnand %p998_p13, %p992_p10 }
  0x54   :  { %465 = vmatpush1.bf16.msra.mxu0 %v852_v17  ;;  %812 = vmatpush1.bf16.msra.mxu1 %v852_v17 }
  0x55   :  { %466 = vmatprep.subr.bf16.mxu0 %v853_v18  ;;  %797 = vmatprep.subr.bf16.mxu1 %v853_v18 }
  0x58   :  { %467 = vmatpush1.bf16.msra.mxu0 %v855_v19  ;;  %813 = vmatpush1.bf16.msra.mxu1 %v855_v19 }
  0x59   :  { %468 = vmatprep.subr.bf16.mxu0 %v856_v20  ;;  %798 = vmatprep.subr.bf16.mxu1 %v856_v20 }
  0x5c   :  { %469 = vmatpush1.bf16.msra.mxu0 %v858_v21  ;;  %814 = vmatpush1.bf16.msra.mxu1 %v858_v21 }
  0x5d   :  { %470 = vmatprep.subr.bf16.mxu0 %v859_v22  ;;  %799 = vmatprep.subr.bf16.mxu1 %v859_v22 }
  0x60   :  { %471 = vmatpush1.bf16.msra.mxu0 %v861_v23  ;;  %815 = vmatpush1.bf16.msra.mxu1 %v861_v23 }
  0x61   :  { %472 = vmatprep.subr.bf16.mxu0 %v862_v24  ;;  %800 = vmatprep.subr.bf16.mxu1 %v862_v24 }
  0x64   :  { %473 = vmatpush1.bf16.msra.mxu0 %v864_v25  ;;  %816 = vmatpush1.bf16.msra.mxu1 %v864_v25 }
  0x65   :  { %474 = vmatprep.subr.bf16.mxu0 %v865_v26  ;;  %801 = vmatprep.subr.bf16.mxu1 %v865_v26 }
  0x68   :  { %475 = vmatpush1.bf16.msra.mxu0 %v867_v27  ;;  %817 = vmatpush1.bf16.msra.mxu1 %v867_v27 }
  0x69   :  { %476 = vmatprep.subr.bf16.mxu0 %v868_v28  ;;  %802 = vmatprep.subr.bf16.mxu1 %v868_v28 }
  0x6c   :  { %477 = vmatpush1.bf16.msra.mxu0 %v870_v29  ;;  %818 = vmatpush1.bf16.msra.mxu1 %v870_v29 }
  0x6d   :  { %478 = vmatprep.subr.bf16.mxu0 %v871_v30  ;;  %803 = vmatprep.subr.bf16.mxu1 %v871_v30 }
  0x70   :  { %479 = vmatpush1.bf16.msra.mxu0 %v873_v31  ;;  %819 = vmatpush1.bf16.msra.mxu1 %v873_v31 }
  0x71   :  { %480 = vmatprep.subr.bf16.mxu0 %v874_v32  ;;  %804 = vmatprep.subr.bf16.mxu1 %v874_v32 }
  0x74   :  { %481 = vmatpush1.bf16.msra.mxu0 %v876_v33  ;;  %820 = vmatpush1.bf16.msra.mxu1 %v876_v33 }
  0x77   :  { %483 = vmatmul.mubr.bf16.vlgmr.msra.gmra.mrb[0].mxu0 %v877_v34  ;;  %563 = vmatmul.mubr.bf16.vlgmr.msra.gmra.mrb[0].mxu1 %v880_v35 }
  0x78   :  { %492 = vmatprep.mubr.bf16.mxu0 %v883_v36  ;;  %572 = vmatprep.mubr.bf16.mxu1 %v885_v37 }
  0x7f   :  { %493 = vmatmul.mubr.bf16.gmra.mrb[4].mxu0 %v887_v38  ;;  %573 = vmatmul.mubr.bf16.gmra.mrb[4].mxu1 %v888_v39 }
  0x80   :  { %502 = vmatprep.mubr.bf16.mxu0 %v889_v40  ;;  %582 = vmatprep.mubr.bf16.mxu1 %v891_v41 }
  0x87   :  { %503 = vmatmul.mubr.bf16.gmra.mrb[8].mxu0 %v893_v42  ;;  %583 = vmatmul.mubr.bf16.gmra.mrb[8].mxu1 %v894_v43 }
  0x88   :  { %512 = vmatprep.mubr.bf16.mxu0 %v895_v44  ;;  %592 = vmatprep.mubr.bf16.mxu1 %v897_v45 }
  0x8f   :  { %513 = vmatmul.mubr.bf16.gmra.mrb[12].mxu0 %v899_v46  ;;  %593 = vmatmul.mubr.bf16.gmra.mrb[12].mxu1 %v900_v47 }
  0x90   :  { %522 = vmatprep.mubr.bf16.mxu0 %v901_v48  ;;  %602 = vmatprep.mubr.bf16.mxu1 %v903_v49 }
  0x97   :  { %523 = vmatmul.mubr.bf16.gmra.mrb[16].mxu0 %v905_v50  ;;  %603 = vmatmul.mubr.bf16.gmra.mrb[16].mxu1 %v906_v51 }
  0x98   :  { %532 = vmatprep.mubr.bf16.mxu0 %v907_v52  ;;  %612 = vmatprep.mubr.bf16.mxu1 %v909_v53 }
  0x9f   :  { %533 = vmatmul.mubr.bf16.gmra.mrb[20].mxu0 %v911_v54  ;;  %613 = vmatmul.mubr.bf16.gmra.mrb[20].mxu1 %v912_v55 }
  0xa0   :  { %542 = vmatprep.mubr.bf16.mxu0 %v913_v56  ;;  %622 = vmatprep.mubr.bf16.mxu1 %v915_v57 }
  0xa7   :  { %543 = vmatmul.mubr.bf16.gmra.mrb[24].mxu0 %v917_v58  ;;  %623 = vmatmul.mubr.bf16.gmra.mrb[24].mxu1 %v918_v59 }
  0xa8   :  { %552 = vmatprep.mubr.bf16.mxu0 %v919_v60  ;;  %632 = vmatprep.mubr.bf16.mxu1 %v921_v61 }
  0xaf   :  { %553 = vmatmul.mubr.bf16.gmra.mrb[28].mxu0 %v923_v62  ;;  %633 = vmatmul.mubr.bf16.gmra.mrb[28].mxu1 %v924_v63 }
 0x14a   :  { %v484_v7 = vpop.f32.mrb[0].mxu0  ;;  %v564_v8 = vpop.f32.mrb[0].mxu1 }
 0x14b   :  { %v485_v9 = vadd.f32 %v484_v7, %v1090_v5  ;;  %v565_v10 = vadd.f32 %v564_v8, %v1090_v5  ;;  %v486_v11 = vpop.f32.mrb[1].mxu0  ;;  %v566_v12 = vpop.f32.mrb[1].mxu1 }
 0x14c   :  { %v487_v13 = vadd.f32 %v486_v11, %v1092_v6  ;;  %v567_v14 = vadd.f32 %v566_v12, %v1092_v6  ;;  %v488_v15 = vpop.f32.mrb[2].mxu0  ;;  %v568_v16 = vpop.f32.mrb[2].mxu1 }
 0x14d   :  { %643 = vst [vmem:[#allocation8] sm:$0xff] %v485_v9  ;;  %675 = vst [vmem:[#allocation8 + $0x100] sm:$0xff] %v565_v10  ;;  %v489_v17 = vadd.f32 %v488_v15, %v1090_v5  ;;  %v569_v18 = vadd.f32 %v568_v16, %v1090_v5  ;;  %v490_v19 = vpop.f32.mrb[3].mxu0  ;;  %v570_v20 = vpop.f32.mrb[3].mxu1 }
 0x14e   :  { %644 = vst [vmem:[#allocation8 + $0x8] sm:$0xff] %v487_v13  ;;  %676 = vst [vmem:[#allocation8 + $0x108] sm:$0xff] %v567_v14  ;;  %v491_v21 = vadd.f32 %v490_v19, %v1092_v6  ;;  %v571_v22 = vadd.f32 %v570_v20, %v1092_v6 }
 0x14f   :  { %645 = vst [vmem:[#allocation8 + $0x10] sm:$0xff] %v489_v17  ;;  %677 = vst [vmem:[#allocation8 + $0x110] sm:$0xff] %v569_v18 }
 0x150   :  { %646 = vst [vmem:[#allocation8 + $0x18] sm:$0xff] %v491_v21  ;;  %678 = vst [vmem:[#allocation8 + $0x118] sm:$0xff] %v571_v22 }
 0x152   :  { %v494_v23 = vpop.f32.mrb[4].mxu0  ;;  %v574_v24 = vpop.f32.mrb[4].mxu1 }
 0x153   :  { %v495_v25 = vadd.f32 %v494_v23, %v1090_v5  ;;  %v575_v26 = vadd.f32 %v574_v24, %v1090_v5  ;;  %v496_v27 = vpop.f32.mrb[5].mxu0  ;;  %v576_v28 = vpop.f32.mrb[5].mxu1 }
 0x154   :  { %v497_v29 = vadd.f32 %v496_v27, %v1092_v6  ;;  %v577_v30 = vadd.f32 %v576_v28, %v1092_v6  ;;  %v498_v31 = vpop.f32.mrb[6].mxu0  ;;  %v578_v32 = vpop.f32.mrb[6].mxu1 }
 0x155   :  { %647 = vst [vmem:[#allocation8 + $0x20] sm:$0xff] %v495_v25  ;;  %679 = vst [vmem:[#allocation8 + $0x120] sm:$0xff] %v575_v26  ;;  %v499_v33 = vadd.f32 %v498_v31, %v1090_v5  ;;  %v579_v34 = vadd.f32 %v578_v32, %v1090_v5  ;;  %v500_v35 = vpop.f32.mrb[7].mxu0  ;;  %v580_v36 = vpop.f32.mrb[7].mxu1 }
 0x156   :  { %648 = vst [vmem:[#allocation8 + $0x28] sm:$0xff] %v497_v29  ;;  %680 = vst [vmem:[#allocation8 + $0x128] sm:$0xff] %v577_v30  ;;  %v501_v37 = vadd.f32 %v500_v35, %v1092_v6  ;;  %v581_v38 = vadd.f32 %v580_v36, %v1092_v6 }
 0x157   :  { %649 = vst [vmem:[#allocation8 + $0x30] sm:$0xff] %v499_v33  ;;  %681 = vst [vmem:[#allocation8 + $0x130] sm:$0xff] %v579_v34 }
 0x158   :  { %650 = vst [vmem:[#allocation8 + $0x38] sm:$0xff] %v501_v37  ;;  %682 = vst [vmem:[#allocation8 + $0x138] sm:$0xff] %v581_v38 }
 0x15a   :  { %v504_v39 = vpop.f32.mrb[8].mxu0  ;;  %v584_v40 = vpop.f32.mrb[8].mxu1 }
 0x15b   :  { %v505_v41 = vadd.f32 %v504_v39, %v1090_v5  ;;  %v585_v42 = vadd.f32 %v584_v40, %v1090_v5  ;;  %v506_v43 = vpop.f32.mrb[9].mxu0  ;;  %v586_v44 = vpop.f32.mrb[9].mxu1 }
 0x15c   :  { %v507_v45 = vadd.f32 %v506_v43, %v1092_v6  ;;  %v587_v46 = vadd.f32 %v586_v44, %v1092_v6  ;;  %v508_v47 = vpop.f32.mrb[10].mxu0  ;;  %v588_v48 = vpop.f32.mrb[10].mxu1 }
 0x15d   :  { %651 = vst [vmem:[#allocation8 + $0x40] sm:$0xff] %v505_v41  ;;  %683 = vst [vmem:[#allocation8 + $0x140] sm:$0xff] %v585_v42  ;;  %v509_v49 = vadd.f32 %v508_v47, %v1090_v5  ;;  %v589_v50 = vadd.f32 %v588_v48, %v1090_v5  ;;  %v510_v51 = vpop.f32.mrb[11].mxu0  ;;  %v590_v52 = vpop.f32.mrb[11].mxu1 }
 0x15e   :  { %652 = vst [vmem:[#allocation8 + $0x48] sm:$0xff] %v507_v45  ;;  %684 = vst [vmem:[#allocation8 + $0x148] sm:$0xff] %v587_v46  ;;  %v511_v53 = vadd.f32 %v510_v51, %v1092_v6  ;;  %v591_v54 = vadd.f32 %v590_v52, %v1092_v6 }
 0x15f   :  { %653 = vst [vmem:[#allocation8 + $0x50] sm:$0xff] %v509_v49  ;;  %685 = vst [vmem:[#allocation8 + $0x150] sm:$0xff] %v589_v50 }
 0x160   :  { %654 = vst [vmem:[#allocation8 + $0x58] sm:$0xff] %v511_v53  ;;  %686 = vst [vmem:[#allocation8 + $0x158] sm:$0xff] %v591_v54 }
 0x162   :  { %v514_v55 = vpop.f32.mrb[12].mxu0  ;;  %v594_v56 = vpop.f32.mrb[12].mxu1 }
 0x163   :  { %v515_v57 = vadd.f32 %v514_v55, %v1090_v5  ;;  %v595_v58 = vadd.f32 %v594_v56, %v1090_v5  ;;  %v516_v59 = vpop.f32.mrb[13].mxu0  ;;  %v596_v60 = vpop.f32.mrb[13].mxu1 }
 0x164   :  { %v517_v61 = vadd.f32 %v516_v59, %v1092_v6  ;;  %v597_v62 = vadd.f32 %v596_v60, %v1092_v6  ;;  %v518_v63 = vpop.f32.mrb[14].mxu0  ;;  %v598_v0 = vpop.f32.mrb[14].mxu1 }
 0x165   :  { %655 = vst [vmem:[#allocation8 + $0x60] sm:$0xff] %v515_v57  ;;  %687 = vst [vmem:[#allocation8 + $0x160] sm:$0xff] %v595_v58  ;;  %v519_v1 = vadd.f32 %v518_v63, %v1090_v5  ;;  %v599_v2 = vadd.f32 %v598_v0, %v1090_v5  ;;  %v520_v3 = vpop.f32.mrb[15].mxu0  ;;  %v600_v4 = vpop.f32.mrb[15].mxu1 }
 0x166   :  { %656 = vst [vmem:[#allocation8 + $0x68] sm:$0xff] %v517_v61  ;;  %688 = vst [vmem:[#allocation8 + $0x168] sm:$0xff] %v597_v62  ;;  %v521_v7 = vadd.f32 %v520_v3, %v1092_v6  ;;  %v601_v8 = vadd.f32 %v600_v4, %v1092_v6 }
 0x167   :  { %657 = vst [vmem:[#allocation8 + $0x70] sm:$0xff] %v519_v1  ;;  %689 = vst [vmem:[#allocation8 + $0x170] sm:$0xff] %v599_v2 }
 0x168   :  { %658 = vst [vmem:[#allocation8 + $0x78] sm:$0xff] %v521_v7  ;;  %690 = vst [vmem:[#allocation8 + $0x178] sm:$0xff] %v601_v8 }
 0x16a   :  { %v524_v9 = vpop.f32.mrb[16].mxu0  ;;  %v604_v10 = vpop.f32.mrb[16].mxu1 }
 0x16b   :  { %v525_v11 = vadd.f32 %v524_v9, %v1090_v5  ;;  %v605_v12 = vadd.f32 %v604_v10, %v1090_v5  ;;  %v526_v13 = vpop.f32.mrb[17].mxu0  ;;  %v606_v14 = vpop.f32.mrb[17].mxu1 }
 0x16c   :  { %v527_v15 = vadd.f32 %v526_v13, %v1092_v6  ;;  %v607_v16 = vadd.f32 %v606_v14, %v1092_v6  ;;  %v528_v17 = vpop.f32.mrb[18].mxu0  ;;  %v608_v18 = vpop.f32.mrb[18].mxu1 }
 0x16d   :  { %659 = vst [vmem:[#allocation8 + $0x80] sm:$0xff] %v525_v11  ;;  %691 = vst [vmem:[#allocation8 + $0x180] sm:$0xff] %v605_v12  ;;  %v529_v19 = vadd.f32 %v528_v17, %v1090_v5  ;;  %v609_v20 = vadd.f32 %v608_v18, %v1090_v5  ;;  %v530_v21 = vpop.f32.mrb[19].mxu0  ;;  %v610_v22 = vpop.f32.mrb[19].mxu1 }
 0x16e   :  { %660 = vst [vmem:[#allocation8 + $0x88] sm:$0xff] %v527_v15  ;;  %692 = vst [vmem:[#allocation8 + $0x188] sm:$0xff] %v607_v16  ;;  %v531_v23 = vadd.f32 %v530_v21, %v1092_v6  ;;  %v611_v24 = vadd.f32 %v610_v22, %v1092_v6 }
 0x16f   :  { %661 = vst [vmem:[#allocation8 + $0x90] sm:$0xff] %v529_v19  ;;  %693 = vst [vmem:[#allocation8 + $0x190] sm:$0xff] %v609_v20 }
 0x170   :  { %662 = vst [vmem:[#allocation8 + $0x98] sm:$0xff] %v531_v23  ;;  %694 = vst [vmem:[#allocation8 + $0x198] sm:$0xff] %v611_v24 }
 0x172   :  { %v534_v25 = vpop.f32.mrb[20].mxu0  ;;  %v614_v26 = vpop.f32.mrb[20].mxu1 }
 0x173   :  { %v535_v27 = vadd.f32 %v534_v25, %v1090_v5  ;;  %v615_v28 = vadd.f32 %v614_v26, %v1090_v5  ;;  %v536_v29 = vpop.f32.mrb[21].mxu0  ;;  %v616_v30 = vpop.f32.mrb[21].mxu1 }
 0x174   :  { %v537_v31 = vadd.f32 %v536_v29, %v1092_v6  ;;  %v617_v32 = vadd.f32 %v616_v30, %v1092_v6  ;;  %v538_v33 = vpop.f32.mrb[22].mxu0  ;;  %v618_v34 = vpop.f32.mrb[22].mxu1 }
 0x175   :  { %663 = vst [vmem:[#allocation8 + $0xa0] sm:$0xff] %v535_v27  ;;  %695 = vst [vmem:[#allocation8 + $0x1a0] sm:$0xff] %v615_v28  ;;  %v539_v35 = vadd.f32 %v538_v33, %v1090_v5  ;;  %v619_v36 = vadd.f32 %v618_v34, %v1090_v5  ;;  %v540_v37 = vpop.f32.mrb[23].mxu0  ;;  %v620_v38 = vpop.f32.mrb[23].mxu1 }
 0x176   :  { %664 = vst [vmem:[#allocation8 + $0xa8] sm:$0xff] %v537_v31  ;;  %696 = vst [vmem:[#allocation8 + $0x1a8] sm:$0xff] %v617_v32  ;;  %v541_v39 = vadd.f32 %v540_v37, %v1092_v6  ;;  %v621_v40 = vadd.f32 %v620_v38, %v1092_v6 }
 0x177   :  { %665 = vst [vmem:[#allocation8 + $0xb0] sm:$0xff] %v539_v35  ;;  %697 = vst [vmem:[#allocation8 + $0x1b0] sm:$0xff] %v619_v36 }
 0x178   :  { %666 = vst [vmem:[#allocation8 + $0xb8] sm:$0xff] %v541_v39  ;;  %698 = vst [vmem:[#allocation8 + $0x1b8] sm:$0xff] %v621_v40 }
 0x17a   :  { %v544_v41 = vpop.f32.mrb[24].mxu0  ;;  %v624_v42 = vpop.f32.mrb[24].mxu1 }
 0x17b   :  { %v545_v43 = vadd.f32 %v544_v41, %v1090_v5  ;;  %v625_v44 = vadd.f32 %v624_v42, %v1090_v5  ;;  %v546_v45 = vpop.f32.mrb[25].mxu0  ;;  %v626_v46 = vpop.f32.mrb[25].mxu1 }
 0x17c   :  { %v547_v47 = vadd.f32 %v546_v45, %v1092_v6  ;;  %v627_v48 = vadd.f32 %v626_v46, %v1092_v6  ;;  %v548_v49 = vpop.f32.mrb[26].mxu0  ;;  %v628_v50 = vpop.f32.mrb[26].mxu1 }
 0x17d   :  { %667 = vst [vmem:[#allocation8 + $0xc0] sm:$0xff] %v545_v43  ;;  %699 = vst [vmem:[#allocation8 + $0x1c0] sm:$0xff] %v625_v44  ;;  %v549_v51 = vadd.f32 %v548_v49, %v1090_v5  ;;  %v629_v52 = vadd.f32 %v628_v50, %v1090_v5  ;;  %v550_v53 = vpop.f32.mrb[27].mxu0  ;;  %v630_v54 = vpop.f32.mrb[27].mxu1 }
 0x17e   :  { %668 = vst [vmem:[#allocation8 + $0xc8] sm:$0xff] %v547_v47  ;;  %700 = vst [vmem:[#allocation8 + $0x1c8] sm:$0xff] %v627_v48  ;;  %v551_v55 = vadd.f32 %v550_v53, %v1092_v6  ;;  %v631_v56 = vadd.f32 %v630_v54, %v1092_v6 }
 0x17f   :  { %669 = vst [vmem:[#allocation8 + $0xd0] sm:$0xff] %v549_v51  ;;  %701 = vst [vmem:[#allocation8 + $0x1d0] sm:$0xff] %v629_v52 }
 0x180   :  { %670 = vst [vmem:[#allocation8 + $0xd8] sm:$0xff] %v551_v55  ;;  %702 = vst [vmem:[#allocation8 + $0x1d8] sm:$0xff] %v631_v56 }
 0x182   :  { %v554_v57 = vpop.f32.mrb[28].mxu0  ;;  %v634_v58 = vpop.f32.mrb[28].mxu1 }
 0x183   :  { %v555_v59 = vadd.f32 %v554_v57, %v1090_v5  ;;  %v635_v60 = vadd.f32 %v634_v58, %v1090_v5  ;;  %v556_v61 = vpop.f32.mrb[29].mxu0  ;;  %v636_v62 = vpop.f32.mrb[29].mxu1 }
 0x184   :  { %v557_v63 = vadd.f32 %v556_v61, %v1092_v6  ;;  %v637_v0 = vadd.f32 %v636_v62, %v1092_v6  ;;  %v558_v1 = vpop.f32.mrb[30].mxu0  ;;  %v638_v2 = vpop.f32.mrb[30].mxu1 }
 0x185   :  { %671 = vst [vmem:[#allocation8 + $0xe0] sm:$0xff] %v555_v59  ;;  %703 = vst [vmem:[#allocation8 + $0x1e0] sm:$0xff] %v635_v60  ;;  %v559_v3 = vadd.f32 %v558_v1, %v1090_v5  ;;  %v639_v4 = vadd.f32 %v638_v2, %v1090_v5  ;;  %v560_v7 = vpop.f32.mrb[31].mxu0  ;;  %v640_v8 = vpop.f32.mrb[31].mxu1 }
 0x186   :  { %672 = vst [vmem:[#allocation8 + $0xe8] sm:$0xff] %v557_v63  ;;  %704 = vst [vmem:[#allocation8 + $0x1e8] sm:$0xff] %v637_v0  ;;  %v561_v9 = vadd.f32 %v560_v7, %v1092_v6  ;;  %v641_v10 = vadd.f32 %v640_v8, %v1092_v6 }
 0x187   :  { %673 = vst [vmem:[#allocation8 + $0xf0] sm:$0xff] %v559_v3  ;;  %705 = vst [vmem:[#allocation8 + $0x1f0] sm:$0xff] %v639_v4 }
 0x188   :  { %674 = vst [vmem:[#allocation8 + $0xf8] sm:$0xff] %v561_v9  ;;  %706 = vst [vmem:[#allocation8 + $0x1f8] sm:$0xff] %v641_v10 }
 0x189   :  { %1002 = shalt.err (!%p999_p0)
}
 0x18a   :  { %s1003_s25 = scalar_lea.hbm %s1173_s3, 8192 }
 0x18b   :  { %p1004_p1 = scmp.ne.s32.totalorder %s1173_s3, %s1003_s25  ;;  %p1007_p2 = scmp.lt.u32.totalorder %s1003_s25, %s1173_s3 }
 0x18d   :  { %p1009_p3 = pnand %p1007_p2, %p1004_p1 }
 0x18f   :  { %1012 = shalt.err (!%p1009_p3)
}
 0x190   :  { %s1025_s30 = smov 256   ;;  %s1026_s4 = smov 16  }
 0x191   :  { %718 = dma.vmem_to_hbm [thread:$0]  %s713_s21, 8192, %s1173_s3, [#allocation4], %s1025_s30, %s1025_s30, %s1026_s4  }
 0x192   :  { %1017 = dma.done.wait [#allocation4], 8192  }
 0x193   :  { %1018 = vsyncadd [#allocation4], 4294959104 }
 0x194   :  { %722 = vsyncpa [#allocation3], 1 }
 0x195   :  { %723 = vsyncpa [#allocation6], 1 }
 0x196   :  { %724 = vsyncpa [#allocation4], 1 }

// kernel: causal_self_attention.4
= control target key start
LH: loop header
LB: loop body
LE: loop exit
PB: predicated region body
PF: predicated region fallthrough
CT: control target
= control target key end

     0   :  { %s3522_s0 = inlined_call_operand.hbm [shape: bf16[2,128,256], index: 0, kind: input, shape index: {}]   ;;  %s3523_s1 = inlined_call_operand.hbm [shape: bf16[2,128,256], index: 1, kind: input, shape index: {}]   ;;  %s3524_s2 = inlined_call_operand.hbm [shape: bf16[2,128,256], index: 2, kind: input, shape index: {}]   ;;  %s3525_s3 = inlined_call_operand.hbm [shape: bf16[2,128,256], index: 3, kind: output, shape index: {}]  }
   0x1   :  { %3540 = sst [smem:[#allocation18_spill]] %s3522_s0 }
   0x2   :  { %3541 = sst [smem:[#allocation19_spill]] %s3523_s1 }
   0x3   :  { %8 = vsyncpa [#allocation3], 0 }
   0x4   :  { %10 = vsyncpa [#allocation3 + $0x1], 0 }
   0x5   :  { %11 = vsyncpa [#allocation6], 0 }
   0x6   :  { %13 = vsyncpa [#allocation6 + $0x1], 0 }
   0x7   :  { %14 = vsyncpa [#allocation4], 0 }
   0x8   :  { %16 = vsyncpa [#allocation4 + $0x1], 0  ;;  %s2592_s12 = smov 0   ;;  %s2594_s13 = smov 0  }
   0x9   :  { %s2596_s14 = smov 0   ;;  %s2598_s15 = smov 0  }
   0xa   :  { %s2600_s16 = smov 0   ;;  %s2602_s17 = smov 0  }
   0xb   :  { %s2604_s18 = smov 0   ;;  %s2606_s19 = smov 0  }
   0xc LB: > { %3542 = sst [smem:[#allocation12_spill]] %s2552_s17  ;;  %s2633_s20 = sadd.s32 4294967295, %s2560_s19   ;;  %s2560_s19 = sphi %s2606_s19, %s22_s19   ;;  %s2556_s18 = sphi %s2604_s18, %s3572_s18   ;;  %s2552_s17 = sphi %s2602_s17, %s3571_s17   ;;  %s2548_s16 = sphi %s2600_s16, %s3570_s16   ;;  %s2544_s15 = sphi %s2598_s15, %s3569_s15   ;;  %s2540_s14 = sphi %s2596_s14, %s3575_s14   ;;  %s2536_s13 = sphi %s2594_s13, %s3574_s13   ;;  %s2532_s12 = sphi %s2592_s12, %s3573_s12  }
   0xd   : > { %3543 = sst [smem:[#allocation13_spill]] %s2556_s18  ;;  %s1733_s21 = sadd.s32 4294967294, %s2560_s19  }
   0xe   : > { %s37_s22 = sadd.s32 1, %s2552_s17  ;;  %s41_s23 = sadd.s32 1, %s2556_s18 }
   0xf   : > { %p39_p0 = scmp.ge.s32.totalorder %s37_s22, 2  ;;  %s52_s24 = sadd.s32 1, %s2540_s14 }
  0x10   : > { %p59_p1 = scmp.ne.s32.totalorder %s2540_s14, %s2536_s13  ;;  %p60_p2 = scmp.eq.s32.totalorder %s2560_s19, 0 }
  0x11   : > { %s3577_s22 = smov (%p39_p0, %s37_s22), 0  ;;  %s3579_s23 = smov (!%p39_p0, %s41_s23), %s2556_s18 }
  0x12   : > { %3544 = sst [smem:[#allocation14_spill]] %s3577_s22  ;;  %s48_s25 = ssub.s32 %s2552_s17, %s3577_s22 }
  0x13   : > { %p2647_p3 = por %p60_p2, %p59_p1  ;;  %p43_p4 = scmp.ge.s32.totalorder %s3579_s23, 2 }
  0x14   : > { %p65_p5 = scmp.ne.s32.totalorder %s2536_s13, %s2532_s12  ;;  %p66_p6 = scmp.eq.s32.totalorder %s2633_s20, 0 }
  0x15   : > { %p149_p7 = scmp.eq.s32.totalorder %s2633_s20, 3  ;;  %s3581_s23 = smov (%p43_p4, %s3579_s23), 0 }
  0x16   : > { %3546 = sst [smem:[#allocation15_spill]] %s3581_s23  ;;  %p2657_p8 = por %p66_p6, %p65_p5 }
  0x17   : > { %p2661_p9 = por %p149_p7, %p59_p1  ;;  %s45_s29 = ssub.s32 %s2556_s18, %s3581_s23 }
  0x18   : > { %s3547_s27 = scalar_select %p2657_p8, 1, 0 }
  0x19   : > { %s3548_s28 = scalar_select %p2661_p9, 1, 0 }
  0x1a   : > { %p155_p10 = scmp.eq.s32.totalorder %s1733_s21, 3  ;;  %s49_s30 = sor.u32 %s48_s25, %s45_s29 }
  0x1b   : > { %p50_p11 = scmp.eq.s32.totalorder %s49_s30, 0  ;;  %p2104_p13 = scmp.lt.s32.totalorder %s2560_s19, 4 }
  0x1c   : > { %p2667_p12 = por %p155_p10, %p65_p5  ;;  %s3526_s5 = sand.u32 1, %s2540_s14  }
  0x1d   : > { %s2674_s6 = scalar_select %p50_p11, %s2540_s14, %s52_s24  }
  0x1e   : > { %s3549_s4 = scalar_select %p2667_p12, 1, 0 }
  0x1f   : > { %3550 = sst [smem:[#allocation16_spill]] %s2674_s6  ;;  %s2678_s7 = sshll.u32 %s3526_s5, 6 }
  0x20   : > { %s1737_s8 = sshll.u32 %s2556_s18, 5  ;;  %p2684_p0 = pnand %p2104_p13, %p2647_p3 }
  0x21   : > { %s187_s9 = sadd.s32 %s2552_s17, %s1737_s8  ;;  %s200_s21 = sand.u32 1, %s2560_s19  }
  0x22   : > { %s2688_s11 = sshll.u32 %s187_s9, 6  ;;  %s3552_s1 = sld [smem:[#allocation19_spill]] }
  0x23   : > { %s204_s30 = scalar_lea.vmem [#allocation5], %s2678_s7  ;;  %s2701_s8 = scalar_lea.sflag [#allocation6], %s200_s21 }
  0x24   : > { %s212_s26 = sshll.u32 %s204_s30, 4  ;;  %p2707_p3 = pneg %p2684_p0  ;;  %s2698_s26 = int_to_ptr.vmem [resolvable:$true] %s212_s26 }
  0x28   : > { %s2695_s24 = scalar_lea.hbm %s3552_s1, %s2688_s11  ;;  %s2373_s30 = scalar_lea.hbm %s3552_s1, 4096 }
  0x29   : > { %s2368_s9 = scalar_lea.hbm %s2695_s24, 1024  ;;  %p2374_p6 = scmp.lt.u32.totalorder %s2695_s24, %s3552_s1 }
  0x2a   : > { %p2369_p2 = scmp.ne.s32.totalorder %s2695_s24, %s2368_s9  ;;  %p2375_p7 = scmp.lt.u32.totalorder %s2373_s30, %s2368_s9 }
  0x2b   : > { %p2377_p11 = scmp.lt.u32.totalorder %s2368_s9, %s2695_s24 }
  0x2c   : > { %p2371_p4 = pnand %p2707_p3, %p2369_p2  ;;  %p2376_p10 = por %p2375_p7, %p2374_p6 }
  0x2e   : > { %p2372_p5 = pneg %p2371_p4  ;;  %p2378_p13 = por %p2377_p11, %p2376_p10 }
  0x30   : > { %p2379_p1 = pnand %p2378_p13, %p2372_p5 }
  0x32   : > { %2382 = shalt.err (!%p2379_p1)
}
  0x33   : > { %s2383_s21 = scalar_lea.vmem %s2698_s26, 1024  ;;  %s2562_s25 = smov [#allocation5]  }
  0x34   : > { %p2384_p2 = scmp.ne.s32.totalorder %s2698_s26, %s2383_s21  ;;  %s2388_s29 = sshll.u32 %s2562_s25, 4  ;;  %s2389_s29 = int_to_ptr.vmem [resolvable:$false] %s2388_s29 }
  0x35   : > { %s2390_s22 = scalar_lea.vmem %s2389_s29, 2048  ;;  %p2391_p9 = scmp.lt.s32.totalorder %s2698_s26, %s2389_s29 }
  0x36   : > { %p2386_p4 = pnand %p2384_p2, %p2707_p3  ;;  %p2392_p8 = scmp.lt.s32.totalorder %s2390_s22, %s2383_s21 }
  0x38   : > { %p2387_p12 = pneg %p2386_p4  ;;  %p2393_p6 = por %p2392_p8, %p2391_p9 }
  0x3a   : > { %p2394_p7 = pnand %p2393_p6, %p2387_p12 }
  0x3c   : > { %2397 = shalt.err (!%p2394_p7)
}
  0x3d   : > { %s3532_s23 = smov 128   ;;  %s3534_s9 = smov 64  }
  0x3e   : > { %s3536_s30 = smov 4   ;;  %p242_p8 = scmp.lt.s32.totalorder %s2560_s19, 5 }
  0x3f   : > { %2096 = dma.hbm_to_vmem [thread:$0]  (!%p2684_p0), %s2695_s24, 1024, %s2698_s26, %s2701_s8, %s3532_s23, %s3534_s9, %s3536_s30  }
  0x40   : > { %p3554_p9 = scmp.ge.s32.totalorder %s2560_s19, 1  ;;  %s3556_s0 = sld [smem:[#allocation18_spill]] }
  0x41   : > { %s179_s1 = scalar_lea.vmem [#allocation2], %s2678_s7  ;;  %s3557_s24 = sand.u32 1, %s2540_s14  }
  0x42   : > { %p2737_p12 = pnand %p3554_p9, %p242_p8  ;;  %s190_s18 = sshll.u32 %s179_s1, 4  ;;  %s2748_s18 = int_to_ptr.vmem [resolvable:$true] %s190_s18 }
  0x43   : > { %s2752_s26 = scalar_lea.sflag [#allocation3], %s3557_s24 }
  0x44   : > { %s3555_s21 = scalar_select %p2737_p12, 1, 0 }
  0x46   : > { %s2745_s22 = scalar_lea.hbm %s3556_s0, %s2688_s11  ;;  %s2403_s29 = scalar_lea.hbm %s3556_s0, 4096 }
  0x47   : > { %s2398_s23 = scalar_lea.hbm %s2745_s22, 1024  ;;  %p2404_p11 = scmp.lt.u32.totalorder %s2745_s22, %s3556_s0 }
  0x48   : > { %p2399_p1 = scmp.ne.s32.totalorder %s2745_s22, %s2398_s23  ;;  %p2405_p13 = scmp.lt.u32.totalorder %s2403_s29, %s2398_s23 }
  0x49   : > { %p2407_p4 = scmp.lt.u32.totalorder %s2398_s23, %s2745_s22 }
  0x4a   : > { %p2401_p5 = pnand %p2399_p1, %p2707_p3  ;;  %p2406_p2 = por %p2405_p13, %p2404_p11 }
  0x4c   : > { %p2402_p10 = pneg %p2401_p5  ;;  %p2408_p6 = por %p2407_p4, %p2406_p2 }
  0x4e   : > { %p2409_p7 = pnand %p2408_p6, %p2402_p10 }
  0x50   : > { %2412 = shalt.err (!%p2409_p7)
}
  0x51   : > { %s2413_s1 = scalar_lea.vmem %s2748_s18, 1024  ;;  %s2566_s9 = smov [#allocation2]  }
  0x52   : > { %p2414_p8 = scmp.ne.s32.totalorder %s2748_s18, %s2413_s1  ;;  %s2418_s24 = sshll.u32 %s2566_s9, 4  ;;  %s2419_s24 = int_to_ptr.vmem [resolvable:$false] %s2418_s24 }
  0x53   : > { %s2420_s17 = scalar_lea.vmem %s2419_s24, 2048  ;;  %p2421_p5 = scmp.lt.s32.totalorder %s2748_s18, %s2419_s24 }
  0x54   : > { %p2416_p9 = pnand %p2414_p8, %p2707_p3  ;;  %p2422_p12 = scmp.lt.s32.totalorder %s2420_s17, %s2413_s1 }
  0x56   : > { %p2417_p1 = pneg %p2416_p9  ;;  %p2423_p11 = por %p2422_p12, %p2421_p5 }
  0x58   : > { %p2424_p13 = pnand %p2423_p11, %p2417_p1 }
  0x5a   : > { %2427 = shalt.err (!%p2424_p13)
}
  0x5b   : > { %s3558_s23 = smov 4   ;;  %s3559_s30 = smov 64  }
  0x5c   : > { %s3560_s25 = smov 128   ;;  %s2783_s24 = scalar_lea.hbm %s3524_s2, %s2688_s11 }
  0x5d   : > { %2093 = dma.hbm_to_vmem [thread:$0]  (!%p2684_p0), %s2745_s22, 1024, %s2748_s18, %s2752_s26, %s3560_s25, %s3559_s30, %s3558_s23  }
  0x5e   : > { %s226_s1 = scalar_lea.vmem [#allocation7], %s2678_s7  ;;  %s2428_s0 = scalar_lea.hbm %s2783_s24, 1024 }
  0x5f   : > { %s234_s17 = sshll.u32 %s226_s1, 4  ;;  %p2429_p12 = scmp.ne.s32.totalorder %s2783_s24, %s2428_s0  ;;  %s2786_s17 = int_to_ptr.vmem [resolvable:$true] %s234_s17 }
  0x60   : > { %s2433_s22 = scalar_lea.hbm %s3524_s2, 4096  ;;  %p2434_p4 = scmp.lt.u32.totalorder %s2783_s24, %s3524_s2 }
  0x61   : > { %p2431_p10 = pnand %p2429_p12, %p2707_p3  ;;  %p2435_p6 = scmp.lt.u32.totalorder %s2433_s22, %s2428_s0 }
  0x62   : > { %p2437_p8 = scmp.lt.u32.totalorder %s2428_s0, %s2783_s24 }
  0x63   : > { %p2432_p2 = pneg %p2431_p10  ;;  %p2436_p7 = por %p2435_p6, %p2434_p4 }
  0x65   : > { %p2438_p9 = por %p2437_p8, %p2436_p7 }
  0x67   : > { %p2439_p1 = pnand %p2438_p9, %p2432_p2 }
  0x69   : > { %2442 = shalt.err (!%p2439_p1)
}
  0x6a   : > { %s2443_s7 = scalar_lea.vmem %s2786_s17, 1024  ;;  %s2567_s6 = smov [#allocation7]  }
  0x6b   : > { %p2444_p5 = scmp.ne.s32.totalorder %s2786_s17, %s2443_s7  ;;  %s2448_s29 = sshll.u32 %s2567_s6, 4  ;;  %s2449_s29 = int_to_ptr.vmem [resolvable:$false] %s2448_s29 }
  0x6c   : > { %s2450_s9 = scalar_lea.vmem %s2449_s29, 2048  ;;  %p2451_p12 = scmp.lt.s32.totalorder %s2786_s17, %s2449_s29 }
  0x6d   : > { %p2446_p11 = pnand %p2444_p5, %p2707_p3  ;;  %p2452_p10 = scmp.lt.s32.totalorder %s2450_s9, %s2443_s7 }
  0x6f   : > { %p2447_p13 = pneg %p2446_p11  ;;  %p2453_p4 = por %p2452_p10, %p2451_p12 }
  0x71   : > { %p2454_p6 = pnand %p2453_p4, %p2447_p13 }
  0x73   : > { %2457 = shalt.err (!%p2454_p6)
}
  0x74   : > { %2099 = dma.hbm_to_vmem [thread:$0]  (!%p2684_p0), %s2783_s24, 1024, %s2786_s17, %s2701_s8, %s3560_s25, %s3559_s30, %s3558_s23  }
  0x75   : > { %p3561_p3 = scmp.ne.s32.totalorder %s3555_s21, 0 }
  0x77   : > { %246 = sbr.rel (%p3561_p3) target bundleno = 1477 (0x5c5), region = 32 }
  0x7e   : > { %s2816_s0 = sand.u32 1, %s2536_s13   ;;  %p3562_p2 = scmp.ne.s32.totalorder %s3547_s27, 0 }
  0x7f   : > { %s2819_s5 = sshll.u32 %s2816_s0, 6  ;;  %s249_s10 = scalar_lea.sflag [#allocation3], %s2816_s0 }
  0x80   : > { %s2823_s1 = scalar_lea.vmem [#allocation2], %s2819_s5 }
  0x81   : > { %2519 = dma.done.wait (%p3562_p2), %s249_s10, 1024  }
  0x82   : > { %2521 = vsyncadd (%p3562_p2), %s249_s10, 4294966272  ;;  %s257_s8 = sand.u32 1, %s2633_s20   ;;  %s2831_s23 = scalar_lea.vmem [#allocation5], %s2819_s5 }
  0x83   : > { %s258_s21 = scalar_lea.sflag [#allocation6], %s257_s8 }
  0x84   : > { %2523 = dma.done.wait (%p3562_p2), %s258_s21, 2048  }
  0x85   : > { %2525 = vsyncadd (%p3562_p2), %s258_s21, 4294965248  ;;  %vm487_vm0 = vcmask 523264   ;;  %v2216_v0 = vld [vmem:[%s2831_s23] sm:$0xff]   ;;  %v2217_v1 = vld [vmem:[%s2831_s23 + $0x8] sm:$0xff]   ;;  %s2568_s20 = smov 64   ;;  %s270_s27 = scalar_lea.vmem [#allocation7], %s2819_s5  ;;  %v307_v33 = vlaneseq }
  0x86   : > { %2066 = vmatprep.subr.msk.bf16.mxu0 %vm487_vm0, %v2216_v0  ;;  %v513_v2 = vsel %vm487_vm0, %v2216_v0, 0  ;;  %962 = vrot.lane.b32.xlu0 %v2216_v0, %s2568_s20  ;;  %v2218_v3 = vld [vmem:[%s2831_s23 + $0x10] sm:$0xff]   ;;  %v516_v4 = vsel %vm487_vm0, %v2217_v1, 0  ;;  %v2848_v5 = vld [vmem:[%s2823_s1] sm:$0xff]   ;;  %v2855_v7 = vld [vmem:[%s2831_s23 + $0x18] sm:$0xff]   ;;  %s3421_s30 = scalar_lea.vmem [#allocation8], %s2819_s5 }
  0x87   : > { %1939 = vmatpush3.bf16.xpose.msra.mxu0 %v513_v2  ;;  %964 = vrot.lane.b32.xlu1 %v2217_v1, %s2568_s20  ;;  %v519_v6 = vsel %vm487_vm0, %v2218_v3, 0  ;;  %v522_v8 = vsel %vm487_vm0, %v2855_v7, 0  ;;  %v2862_v9 = vld [vmem:[%s2831_s23 + $0x20] sm:$0xff]   ;;  %v2869_v11 = vld [vmem:[%s2831_s23 + $0x28] sm:$0xff]   ;;  %v2876_v13 = vld [vmem:[%s2831_s23 + $0x30] sm:$0xff]   ;;  %v2961_v34 = vshrl.u32 %v307_v33, 7 }
  0x88   : > { %2067 = vmatprep.subr.msk.bf16.mxu0 %vm487_vm0, %v2217_v1  ;;  %1954 = vmatprep.mubr.msk.bf16.mxu0 %vm487_vm0, %v2848_v5  ;;  %v525_v10 = vsel %vm487_vm0, %v2862_v9, 0  ;;  %v528_v12 = vsel %vm487_vm0, %v2869_v11, 0  ;;  %v531_v14 = vsel %vm487_vm0, %v2876_v13, 0  ;;  %v2883_v15 = vld [vmem:[%s2831_s23 + $0x38] sm:$0xff]   ;;  %v2890_v17 = vld [vmem:[%s2823_s1 + $0x8] sm:$0xff]   ;;  %v2893_v18 = vld [vmem:[%s2823_s1 + $0x10] sm:$0xff]  }
  0x89   : > { %v534_v16 = vsel %vm487_vm0, %v2883_v15, 0  ;;  %v2900_v19 = vld [vmem:[%s2823_s1 + $0x18] sm:$0xff]   ;;  %v2903_v20 = vld [vmem:[%s2823_s1 + $0x20] sm:$0xff]   ;;  %v2910_v21 = vld [vmem:[%s2823_s1 + $0x28] sm:$0xff]   ;;  %v2964_v35 = vadd.s32 16, %v2961_v34  ;;  %v2966_v36 = vand.u32 127, %v307_v33 }
  0x8a   : > { %966 = vrot.lane.b32.xlu0 %v2218_v3, %s2568_s20  ;;  %v2913_v22 = vld [vmem:[%s2823_s1 + $0x30] sm:$0xff]   ;;  %v2920_v23 = vld [vmem:[%s2823_s1 + $0x38] sm:$0xff]   ;;  %v2925_v24 = vld [vmem:[%s270_s27] sm:$0xff]   ;;  %v2971_v37 = vadd.s32 24, %v2961_v34  ;;  %v2976_v38 = vadd.s32 8, %v2961_v34  ;;  %v3011_v59 = vadd.s32 32, %v2961_v34 }
  0x8b   : > { %1970 = vmatprep.subr.bf16.mxu1 %v2925_v24  ;;  %v2929_v25 = vld [vmem:[%s270_s27 + $0x8] sm:$0xff]   ;;  %v2933_v26 = vld [vmem:[%s270_s27 + $0x10] sm:$0xff]   ;;  %v2937_v27 = vld [vmem:[%s270_s27 + $0x18] sm:$0xff]   ;;  %vm345_vm1 = vcmp.ge.s32.totalorder %v2964_v35, %v2966_v36  ;;  %vm343_vm2 = vcmp.ge.s32.totalorder %v2961_v34, %v2966_v36  ;;  %v3014_v60 = vadd.s32 48, %v2961_v34  ;;  %v3019_v61 = vadd.s32 64, %v2961_v34  ;;  %s1807_s25 = sshll.u32 %s2548_s16, 5 }
  0x8c   : > { %1971 = vmatpush3.bf16.msra.mxu1 %v2925_v24  ;;  %v2941_v28 = vld [vmem:[%s270_s27 + $0x20] sm:$0xff]   ;;  %v2945_v29 = vld [vmem:[%s270_s27 + $0x28] sm:$0xff]   ;;  %v2949_v30 = vld [vmem:[%s270_s27 + $0x30] sm:$0xff]   ;;  %vm346_vm3 = vcmp.ge.s32.totalorder %v2971_v37, %v2966_v36  ;;  %vm344_vm4 = vcmp.ge.s32.totalorder %v2976_v38, %v2966_v36  ;;  %vm347_vm5 = vcmp.ge.s32.totalorder %v3011_v59, %v2966_v36  ;;  %v3022_v62 = vadd.s32 56, %v2961_v34  ;;  %s1587_s24 = sadd.s32 %s2544_s15, %s1807_s25  ;;  %s1590_s17 = sshll.u32 %s3421_s30, 4  ;;  %s3456_s17 = int_to_ptr.vmem [resolvable:$true] %s1590_s17 }
  0x8d   : > { %1972 = vmatprep.subr.bf16.mxu1 %v2929_v25  ;;  %v2951_v31 = vld [vmem:[%s270_s27 + $0x38] sm:$0xff]   ;;  %vm349_vm6 = vcmp.ge.s32.totalorder %v3014_v60, %v2966_v36  ;;  %vm351_vm7 = vcmp.ge.s32.totalorder %v3019_v61, %v2966_v36  ;;  %v3034_v0 = vadd.s32 72, %v2961_v34  ;;  %v3045_v2 = vadd.s32 40, %v2961_v34  ;;  %s1808_s18 = sshll.u32 %s1587_s24, 6  ;;  %s1573_s26 = scalar_lea.sflag [#allocation4], %s2816_s0 }
  0x8e   : > { %vm350_vm8 = vcmp.ge.s32.totalorder %v3022_v62, %v2966_v36  ;;  %s3465_s22 = scalar_lea.hbm %s3525_s3, %s1808_s18  ;;  %s2458_s11 = scalar_lea.vmem %s3456_s17, 1024 }
  0x8f   : > { %1941 = vmatpush3.bf16.xpose.msra.mxu0 %v516_v4  ;;  %v3054_v4 = vadd.s32 80, %v2961_v34  ;;  %vm352_vm9 = vcmp.ge.s32.totalorder %v3034_v0, %v2966_v36  ;;  %vm348_vm10 = vcmp.ge.s32.totalorder %v3045_v2, %v2966_v36  ;;  %p2459_p0 = scmp.ne.s32.totalorder %s3456_s17, %s2458_s11  ;;  %p3566_p7 = scmp.ne.s32.totalorder %s3548_s28, 0 }
  0x90   : > { %2068 = vmatprep.subr.msk.bf16.mxu0 %vm487_vm0, %v2218_v3  ;;  %1973 = vmatpush3.bf16.msra.mxu1 %v2929_v25  ;;  %s2569_s7 = smov [#allocation8]  }
  0x91   : > { %1974 = vmatprep.subr.bf16.mxu1 %v2933_v26  ;;  %vm353_vm11 = vcmp.ge.s32.totalorder %v3054_v4, %v2966_v36  ;;  %p2460_p8 = pnand %p2459_p0, %p3566_p7  ;;  %s2462_s6 = sshll.u32 %s2569_s7, 4  ;;  %s2463_s6 = int_to_ptr.vmem [resolvable:$false] %s2462_s6 }
  0x92   : > { %s2464_s29 = scalar_lea.vmem %s2463_s6, 2048  ;;  %p2465_p1 = scmp.lt.s32.totalorder %s3456_s17, %s2463_s6 }
  0x93   : > { %p2461_p9 = pneg %p2460_p8  ;;  %p2466_p5 = scmp.lt.s32.totalorder %s2464_s29, %s2458_s11 }
  0x94   : > { %1975 = vmatpush3.bf16.msra.mxu1 %v2933_v26 }
  0x95   : > { %1976 = vmatprep.subr.bf16.mxu1 %v2937_v27  ;;  %p2467_p11 = por %p2466_p5, %p2465_p1 }
  0x97   : > { %1943 = vmatpush3.bf16.xpose.msra.mxu0 %v519_v6  ;;  %p2468_p13 = pnand %p2467_p11, %p2461_p9 }
  0x98   : > { %2069 = vmatprep.subr.msk.bf16.mxu0 %vm487_vm0, %v2855_v7  ;;  %1977 = vmatpush3.bf16.msra.mxu1 %v2937_v27 }
  0x99   : > { %1978 = vmatprep.subr.bf16.mxu1 %v2941_v28 }
  0x9c   : > { %1979 = vmatpush3.bf16.msra.mxu1 %v2941_v28 }
  0x9d   : > { %1980 = vmatprep.subr.bf16.mxu1 %v2945_v29 }
  0x9f   : > { %1945 = vmatpush3.bf16.xpose.msra.mxu0 %v522_v8 }
  0xa0   : > { %2070 = vmatprep.subr.msk.bf16.mxu0 %vm487_vm0, %v2862_v9  ;;  %1981 = vmatpush3.bf16.msra.mxu1 %v2945_v29 }
  0xa1   : > { %1982 = vmatprep.subr.bf16.mxu1 %v2949_v30 }
  0xa4   : > { %1983 = vmatpush3.bf16.msra.mxu1 %v2949_v30 }
  0xa5   : > { %1984 = vmatprep.subr.bf16.mxu1 %v2951_v31 }
  0xa7   : > { %1947 = vmatpush3.bf16.xpose.msra.mxu0 %v525_v10  ;;  %v3086_v10 = vadd.s32 88, %v2961_v34 }
  0xa8   : > { %2071 = vmatprep.subr.msk.bf16.mxu0 %vm487_vm0, %v2869_v11  ;;  %1985 = vmatpush3.bf16.msra.mxu1 %v2951_v31 }
  0xa9   : > { %vm354_vm13 = vcmp.ge.s32.totalorder %v3086_v10, %v2966_v36 }
  0xaf   : > { %1949 = vmatpush3.bf16.xpose.msra.mxu0 %v528_v12 }
  0xb0   : > { %2072 = vmatprep.subr.msk.bf16.mxu0 %vm487_vm0, %v2876_v13 }
  0xb7   : > { %1951 = vmatpush3.bf16.xpose.msra.mxu0 %v531_v14 }
  0xb8   : > { %2073 = vmatprep.subr.msk.bf16.mxu0 %vm487_vm0, %v2883_v15 }
  0xbf   : > { %1953 = vmatpush3.bf16.xpose.msra.mxu0 %v534_v16  ;;  %v3100_v16 = vadd.s32 96, %v2961_v34 }
  0xc1   : > { %vm355_vm14 = vcmp.ge.s32.totalorder %v3100_v16, %v2966_v36 }
  0xc6   : > { %1955 = vmatmul.mubr.msk.bf16.vlgmr.msra.gmra.mrb[0].mxu0 %vm487_vm0, %v2890_v17 }
  0xc7   : > { %1958 = vmatprep.mubr.msk.bf16.mxu0 %vm487_vm0, %v2893_v18 }
  0xce   : > { %1959 = vmatmul.mubr.msk.bf16.gmra.mrb[4].mxu0 %vm487_vm0, %v2900_v19 }
  0xcf   : > { %1962 = vmatprep.mubr.msk.bf16.mxu0 %vm487_vm0, %v2903_v20 }
  0xd6   : > { %1963 = vmatmul.mubr.msk.bf16.gmra.mrb[8].mxu0 %vm487_vm0, %v2910_v21 }
  0xd7   : > { %1966 = vmatprep.mubr.msk.bf16.mxu0 %vm487_vm0, %v2913_v22 }
  0xde   : > { %1967 = vmatmul.mubr.msk.bf16.gmra.mrb[12].mxu0 %vm487_vm0, %v2920_v23 }
  0xf8   : > { %v2956_v32 = vpop.permute.xlu0 %962 }
  0xf9   : > { %2074 = vmatprep.subr.msk.bf16.mxu1 %vm487_vm0, %v2956_v32 }
 0x199   : > { %v1956_v39 = vpop.f32.mrb[0].mxu0 }
 0x19a   : > { %v570_v40 = vpop.f32.mrb[1].mxu0  ;;  %v2981_v41 = vsel %vm345_vm1, %v1956_v39, -1e+30  ;;  %v3115_v39 = vadd.s32 120, %v2961_v34 }
 0x19b   : > { %653 = vmax.xlane.f32.xlu1 %v2981_v41  ;;  %v1957_v42 = vpop.f32.mrb[2].mxu0  ;;  %v2987_v43 = vsel %vm343_vm2, %v570_v40, -1e+30 }
 0x19c   : > { %649 = vmax.xlane.f32.xlu0 %v2987_v43  ;;  %v573_v44 = vpop.f32.mrb[3].mxu0  ;;  %v2997_v45 = vsel %vm346_vm3, %v1957_v42, -1e+30  ;;  %vm358_vm15 = vcmp.ge.s32.totalorder %v3115_v39, %v2966_v36  ;;  %v3126_v42 = vadd.s32 104, %v2961_v34 }
 0x19d   : > { %v3003_v46 = vsel %vm344_vm4, %v573_v44, -1e+30 }
 0x19f   : > { %655 = vmax.xlane.f32.xlu1 %v2997_v45 }
 0x1a0   : > { %651 = vmax.xlane.f32.xlu0 %v3003_v46 }
 0x1a1   : > { %v1960_v47 = vpop.f32.mrb[4].mxu0 }
 0x1a2   : > { %v586_v48 = vpop.f32.mrb[5].mxu0  ;;  %v3040_v1 = vsel %vm349_vm6, %v1960_v47, -1e+30 }
 0x1a3   : > { %v1961_v49 = vpop.f32.mrb[6].mxu0  ;;  %v3027_v63 = vsel %vm347_vm5, %v586_v48, -1e+30 }
 0x1a4   : > { %v589_v50 = vpop.f32.mrb[7].mxu0  ;;  %v3059_v6 = vsel %vm350_vm8, %v1961_v49, -1e+30 }
 0x1a9   : > { %v1964_v51 = vpop.f32.mrb[8].mxu0 }
 0x1aa   : > { %v602_v52 = vpop.f32.mrb[9].mxu0  ;;  %v3092_v12 = vsel %vm353_vm11, %v1964_v51, -1e+30 }
 0x1ab   : > { %v1965_v53 = vpop.f32.mrb[10].mxu0  ;;  %v3051_v3 = vsel %vm351_vm7, %v602_v52, -1e+30 }
 0x1ac   : > { %v605_v54 = vpop.f32.mrb[11].mxu0  ;;  %v3111_v33 = vsel %vm354_vm13, %v1965_v53, -1e+30 }
 0x1ad   : > { %v3073_v8 = vsel %vm352_vm9, %v605_v54, -1e+30 }
 0x1b0   : > { %968 = vrot.lane.b32.xlu1 %v2855_v7, %s2568_s20  ;;  %v3064_v7 = vadd.s32 112, %v2961_v34 }
 0x1b1   : > { %v1968_v55 = vpop.f32.mrb[12].mxu0 }
 0x1b2   : > { %v618_v56 = vpop.f32.mrb[13].mxu0  ;;  %vm3539_vm12 = vcmp.ge.s32.totalorder %v3064_v7, %v2966_v36 }
 0x1b3   : > { %v1969_v57 = vpop.f32.mrb[14].mxu0  ;;  %v3097_v14 = vsel %vm3539_vm12, %v1968_v55, -1e+30  ;;  %v3120_v40 = vsel %vm355_vm14, %v618_v56, -1e+30  ;;  %vm356_vm12 = vcmp.ge.s32.totalorder %v3126_v42, %v2966_v36 }
 0x1b4   : > { %v621_v58 = vpop.f32.mrb[15].mxu0  ;;  %v3131_v44 = vsel %vm358_vm15, %v1969_v57, -1e+30 }
 0x1b5   : > { %v3139_v47 = vsel %vm356_vm12, %v621_v58, -1e+30 }
 0x1b6   : > { %970 = vrot.lane.b32.xlu0 %v2862_v9, %s2568_s20  ;;  %v3080_v9 = vsel %vm348_vm10, %v589_v50, -1e+30 }
 0x1d4   : > { %657 = vmax.xlane.f32.xlu1 %v3027_v63 }
 0x1d5   : > { %661 = vmax.xlane.f32.xlu0 %v3040_v1 }
 0x1d8   : > { %663 = vmax.xlane.f32.xlu1 %v3059_v6 }
 0x1d9   : > { %665 = vmax.xlane.f32.xlu0 %v3051_v3 }
 0x1dc   : > { %659 = vmax.xlane.f32.xlu1 %v3080_v9 }
 0x1dd   : > { %667 = vmax.xlane.f32.xlu0 %v3073_v8 }
 0x1e0   : > { %669 = vmax.xlane.f32.xlu1 %v3092_v12 }
 0x1e1   : > { %677 = vmax.xlane.f32.xlu0 %v3097_v14 }
 0x1e4   : > { %671 = vmax.xlane.f32.xlu1 %v3111_v33 }
 0x1e8   : > { %673 = vmax.xlane.f32.xlu1 %v3120_v40 }
 0x1ec   : > { %679 = vmax.xlane.f32.xlu1 %v3131_v44 }
 0x1f0   : > { %675 = vmax.xlane.f32.xlu1 %v3139_v47 }
 0x1f7   : > { %974 = vrot.lane.b32.xlu0 %v2876_v13, %s2568_s20 }
 0x1fb   : > { %976 = vrot.lane.b32.xlu0 %v2883_v15, %s2568_s20 }
 0x1ff   : > { %946 = vrot.lane.b32.xlu0 %v2848_v5, %s2568_s20  ;;  %v965_v5 = vpop.permute.xlu1 %964 }
 0x200   : > { %v1006_v48 = vsel %vm487_vm0, %v965_v5, 0 }
 0x201   : > { %972 = vrot.lane.b32.xlu1 %v2869_v11, %s2568_s20  ;;  %v967_v11 = vpop.permute.xlu0 %966 }
 0x202   : > { %v1009_v49 = vsel %vm487_vm0, %v967_v11, 0 }
 0x203   : > { %950 = vrot.lane.b32.xlu0 %v2893_v18, %s2568_s20 }
 0x205   : > { %948 = vrot.lane.b32.xlu1 %v2890_v17, %s2568_s20 }
 0x207   : > { %954 = vrot.lane.b32.xlu0 %v2903_v20, %s2568_s20 }
 0x209   : > { %952 = vrot.lane.b32.xlu1 %v2900_v19, %s2568_s20 }
 0x20b   : > { %958 = vrot.lane.b32.xlu0 %v2913_v22, %s2568_s20 }
 0x20d   : > { %956 = vrot.lane.b32.xlu1 %v2910_v21, %s2568_s20 }
 0x20f   : > { %1259 = vrot.lane.b32.xlu0 %v2925_v24, %s2568_s20 }
 0x211   : > { %960 = vrot.lane.b32.xlu1 %v2920_v23, %s2568_s20 }
 0x213   : > { %1263 = vrot.lane.b32.xlu0 %v2933_v26, %s2568_s20 }
 0x215   : > { %1261 = vrot.lane.b32.xlu1 %v2929_v25, %s2568_s20 }
 0x217   : > { %1265 = vrot.lane.b32.xlu0 %v2937_v27, %s2568_s20 }
 0x219   : > { %1267 = vrot.lane.b32.xlu1 %v2941_v28, %s2568_s20 }
 0x21b   : > { %1269 = vrot.lane.b32.xlu0 %v2945_v29, %s2568_s20 }
 0x228   : > { %v654_v13 = vpop.xlane.xlu1 %653 }
 0x229   : > { %v650_v15 = vpop.xlane.xlu0 %649  ;;  %v683_v18 = vsub.f32 %v2981_v41, %v654_v13 }
 0x22a   : > { %v681_v17 = vsub.f32 %v2987_v43, %v650_v15 }
 0x22b   : > { %v701_v24 = vmul.f32 1.442695, %v683_v18 }
 0x22c   : > { %v697_v19 = vmul.f32 1.442695, %v681_v17  ;;  %v656_v20 = vpop.xlane.xlu1 %655 }
 0x22d   : > { %v684_v21 = vsub.f32 %v2997_v45, %v656_v20  ;;  %v652_v22 = vpop.xlane.xlu0 %651 }
 0x22e   : > { %v682_v23 = vsub.f32 %v3003_v46, %v652_v22  ;;  %2240 = vpow2.f32 %v697_v19  ;;  %v1003_v46 = vsel %vm487_vm0, %v2956_v32, 0 }
 0x22f   : > { %v703_v25 = vmul.f32 1.442695, %v684_v21 }
 0x230   : > { %v699_v26 = vmul.f32 1.442695, %v682_v23  ;;  %v969_v50 = vpop.permute.xlu1 %968 }
 0x231   : > { %2242 = vpow2.f32 %v703_v25  ;;  %v1012_v51 = vsel %vm487_vm0, %v969_v50, 0  ;;  %v971_v52 = vpop.permute.xlu0 %970 }
 0x232   : > { %2244 = vpow2.f32 %v699_v26  ;;  %v1015_v32 = vsel %vm487_vm0, %v971_v52, 0 }
 0x233   : > { %2246 = vpow2.f32 %v701_v24 }
 0x238   : > { %v3180_v27 = vpop.eup %2240 }
 0x23b   : > { %v3182_v28 = vpop.eup %2242 }
 0x23c   : > { %v3184_v29 = vpop.eup %2244 }
 0x23d   : > { %v3186_v41 = vpop.eup %2246  ;;  %v761_v43 = vpack.c.bf16 %v3184_v29, %v3180_v27 }
 0x23e   : > { %v762_v45 = vpack.c.bf16 %v3182_v28, %v3186_v41 }
 0x23f   : > { %1986 = vmatprep.mubr.bf16.mxu1 %v761_v43 }
 0x240   : > { %1987 = vmatmul.mubr.bf16.vlgmr.msra.gmra.mrb[0].mxu1 %v762_v45 }
 0x241   : > { %2003 = vmatpush3.bf16.xpose.msra.mxu1 %v1003_v46 }
 0x242   : > { %2075 = vmatprep.subr.msk.bf16.mxu1 %vm487_vm0, %v965_v5 }
 0x249   : > { %2005 = vmatpush3.bf16.xpose.msra.mxu1 %v1006_v48 }
 0x24a   : > { %2076 = vmatprep.subr.msk.bf16.mxu1 %vm487_vm0, %v967_v11 }
 0x251   : > { %2007 = vmatpush3.bf16.xpose.msra.mxu1 %v1009_v49 }
 0x252   : > { %2077 = vmatprep.subr.msk.bf16.mxu1 %vm487_vm0, %v969_v50 }
 0x259   : > { %2009 = vmatpush3.bf16.xpose.msra.mxu1 %v1012_v51 }
 0x25a   : > { %2078 = vmatprep.subr.msk.bf16.mxu1 %vm487_vm0, %v971_v52 }
 0x261   : > { %2011 = vmatpush3.bf16.xpose.msra.mxu1 %v1015_v32  ;;  %v658_v53 = vpop.xlane.xlu1 %657 }
 0x262   : > { %v685_v54 = vsub.f32 %v3027_v63, %v658_v53  ;;  %v662_v55 = vpop.xlane.xlu0 %661 }
 0x263   : > { %v687_v56 = vsub.f32 %v3040_v1, %v662_v55 }
 0x264   : > { %v705_v58 = vmul.f32 1.442695, %v685_v54 }
 0x265   : > { %v664_v57 = vpop.xlane.xlu1 %663  ;;  %v709_v13 = vmul.f32 1.442695, %v687_v56 }
 0x266   : > { %v688_v5 = vsub.f32 %v3059_v6, %v664_v57  ;;  %v666_v11 = vpop.xlane.xlu0 %665  ;;  %2248 = vpow2.f32 %v705_v58 }
 0x267   : > { %v689_v15 = vsub.f32 %v3051_v3, %v666_v11  ;;  %2250 = vpow2.f32 %v709_v13 }
 0x268   : > { %v711_v17 = vmul.f32 1.442695, %v688_v5 }
 0x269   : > { %v713_v18 = vmul.f32 1.442695, %v689_v15  ;;  %v660_v19 = vpop.xlane.xlu1 %659 }
 0x26a   : > { %v686_v20 = vsub.f32 %v3080_v9, %v660_v19  ;;  %v668_v21 = vpop.xlane.xlu0 %667  ;;  %2252 = vpow2.f32 %v711_v17 }
 0x26b   : > { %v690_v63 = vsub.f32 %v3073_v8, %v668_v21  ;;  %2254 = vpow2.f32 %v713_v18 }
 0x26c   : > { %v707_v1 = vmul.f32 1.442695, %v686_v20 }
 0x26d   : > { %v715_v22 = vmul.f32 1.442695, %v690_v63  ;;  %v670_v23 = vpop.xlane.xlu1 %669 }
 0x26e   : > { %2256 = vpow2.f32 %v707_v1  ;;  %v691_v6 = vsub.f32 %v3092_v12, %v670_v23  ;;  %v678_v12 = vpop.xlane.xlu0 %677 }
 0x26f   : > { %2258 = vpow2.f32 %v715_v22  ;;  %v695_v54 = vsub.f32 %v3097_v14, %v678_v12 }
 0x270   : > { %v717_v3 = vmul.f32 1.442695, %v691_v6  ;;  %v3210_v26 = vpop.eup %2248 }
 0x271   : > { %v672_v24 = vpop.xlane.xlu1 %671  ;;  %v3212_v43 = vpop.eup %2250  ;;  %v725_v5 = vmul.f32 1.442695, %v695_v54 }
 0x272   : > { %v692_v25 = vsub.f32 %v3111_v33, %v672_v24  ;;  %2260 = vpow2.f32 %v717_v3  ;;  %v975_v15 = vpop.permute.xlu0 %974 }
 0x274   : > { %v719_v9 = vmul.f32 1.442695, %v692_v25  ;;  %v3214_v45 = vpop.eup %2252 }
 0x275   : > { %v674_v8 = vpop.xlane.xlu1 %673  ;;  %v3216_v46 = vpop.eup %2254  ;;  %v764_v32 = vpack.c.bf16 %v3214_v45, %v3212_v43 }
 0x276   : > { %2262 = vpow2.f32 %v719_v9  ;;  %v693_v49 = vsub.f32 %v3120_v40, %v674_v8  ;;  %v977_v18 = vpop.permute.xlu0 %976 }
 0x277   : > { %v1024_v6 = vsel %vm487_vm0, %v977_v18, 0 }
 0x278   : > { %v3218_v48 = vpop.eup %2256  ;;  %v721_v55 = vmul.f32 1.442695, %v693_v49 }
 0x279   : > { %v3221_v50 = vpop.eup %2258  ;;  %v680_v33 = vpop.xlane.xlu1 %679  ;;  %v763_v51 = vpack.c.bf16 %v3218_v48, %v3210_v26 }
 0x27a   : > { %v696_v52 = vsub.f32 %v3131_v44, %v680_v33  ;;  %v765_v53 = vpack.c.bf16 %v3221_v50, %v3216_v46  ;;  %2264 = vpow2.f32 %v721_v55  ;;  %v947_v23 = vpop.permute.xlu0 %946 }
 0x27b   : > { %1990 = vmatprep.mubr.bf16.mxu1 %v763_v51 }
 0x27c   : > { %1991 = vmatmul.mubr.bf16.gmra.mrb[4].mxu1 %v764_v32  ;;  %v727_v40 = vmul.f32 1.442695, %v696_v52  ;;  %v3232_v58 = vpop.eup %2260 }
 0x27d   : > { %1994 = vmatprep.mubr.bf16.mxu1 %v765_v53  ;;  %v676_v56 = vpop.xlane.xlu1 %675 }
 0x27e   : > { %v694_v57 = vsub.f32 %v3139_v47, %v676_v56  ;;  %2266 = vpow2.f32 %v727_v40  ;;  %v1021_v47 = vsel %vm487_vm0, %v975_v15, 0  ;;  %v951_v24 = vpop.permute.xlu0 %950 }
 0x280   : > { %v3234_v44 = vpop.eup %2262  ;;  %v723_v11 = vmul.f32 1.442695, %v694_v57 }
 0x281   : > { %v973_v13 = vpop.permute.xlu1 %972  ;;  %v766_v14 = vpack.c.bf16 %v3234_v44, %v3232_v58 }
 0x282   : > { %2268 = vpow2.f32 %v723_v11  ;;  %v1018_v17 = vsel %vm487_vm0, %v973_v13, 0  ;;  %2079 = vmatprep.subr.msk.bf16.mxu1 %vm487_vm0, %v973_v13  ;;  %v955_v9 = vpop.permute.xlu0 %954 }
 0x283   : > { %2270 = vpow2.f32 %v725_v5  ;;  %2013 = vmatpush3.bf16.xpose.msra.mxu1 %v1018_v17 }
 0x284   : > { %1995 = vmatmul.mubr.bf16.gmra.mrb[8].mxu1 %v766_v14  ;;  %2080 = vmatprep.subr.msk.bf16.mxu1 %vm487_vm0, %v975_v15  ;;  %v3242_v19 = vpop.eup %2264 }
 0x285   : > { %v949_v3 = vpop.permute.xlu1 %948 }
 0x286   : > { %v959_v12 = vpop.permute.xlu0 %958 }
 0x288   : > { %v3244_v20 = vpop.eup %2266 }
 0x289   : > { %v953_v25 = vpop.permute.xlu1 %952 }
 0x28a   : > { %v1260_v53 = vpop.permute.xlu0 %1259 }
 0x28b   : > { %2015 = vmatpush3.bf16.xpose.msra.mxu1 %v1021_v47  ;;  %2034 = vmatprep.subr.bf16.mxu0 %v1260_v53 }
 0x28c   : > { %v3246_v21 = vpop.eup %2268  ;;  %2081 = vmatprep.subr.msk.bf16.mxu1 %vm487_vm0, %v977_v18  ;;  %2035 = vmatpush3.bf16.msra.mxu0 %v1260_v53 }
 0x28d   : > { %v3249_v63 = vpop.eup %2270  ;;  %v767_v1 = vpack.c.bf16 %v3246_v21, %v3242_v19  ;;  %v957_v8 = vpop.permute.xlu1 %956 }
 0x28e   : > { %v768_v22 = vpack.c.bf16 %v3244_v20, %v3249_v63  ;;  %v1264_v55 = vpop.permute.xlu0 %1263 }
 0x28f   : > { %1998 = vmatprep.mubr.bf16.mxu1 %v767_v1 }
 0x290   : > { %1999 = vmatmul.mubr.bf16.gmra.mrb[12].mxu1 %v768_v22 }
 0x291   : > { %2018 = vmatprep.mubr.msk.bf16.mxu1 %vm487_vm0, %v947_v23  ;;  %v961_v49 = vpop.permute.xlu1 %960 }
 0x292   : > { %v1266_v40 = vpop.permute.xlu0 %1265 }
 0x293   : > { %2017 = vmatpush3.bf16.xpose.msra.mxu1 %v1024_v6 }
 0x295   : > { %v1262_v54 = vpop.permute.xlu1 %1261 }
 0x296   : > { %2036 = vmatprep.subr.bf16.mxu0 %v1262_v54  ;;  %v1270_v57 = vpop.permute.xlu0 %1269 }
 0x297   : > { %2037 = vmatpush3.bf16.msra.mxu0 %v1262_v54 }
 0x298   : > { %2038 = vmatprep.subr.bf16.mxu0 %v1264_v55 }
 0x299   : > { %v1268_v56 = vpop.permute.xlu1 %1267 }
 0x29a   : > { %2019 = vmatmul.mubr.msk.bf16.vlgmr.msra.gmra.mrb[16].mxu1 %vm487_vm0, %v949_v3 }
 0x29b   : > { %2022 = vmatprep.mubr.msk.bf16.mxu1 %vm487_vm0, %v951_v24  ;;  %2039 = vmatpush3.bf16.msra.mxu0 %v1264_v55 }
 0x29c   : > { %2040 = vmatprep.subr.bf16.mxu0 %v1266_v40 }
 0x29f   : > { %2041 = vmatpush3.bf16.msra.mxu0 %v1266_v40 }
 0x2a0   : > { %2042 = vmatprep.subr.bf16.mxu0 %v1268_v56 }
 0x2a2   : > { %2023 = vmatmul.mubr.msk.bf16.gmra.mrb[20].mxu1 %vm487_vm0, %v953_v25 }
 0x2a3   : > { %2026 = vmatprep.mubr.msk.bf16.mxu1 %vm487_vm0, %v955_v9  ;;  %2043 = vmatpush3.bf16.msra.mxu0 %v1268_v56 }
 0x2a4   : > { %2044 = vmatprep.subr.bf16.mxu0 %v1270_v57 }
 0x2a7   : > { %2045 = vmatpush3.bf16.msra.mxu0 %v1270_v57 }
 0x2aa   : > { %2027 = vmatmul.mubr.msk.bf16.gmra.mrb[24].mxu1 %vm487_vm0, %v957_v8 }
 0x2ab   : > { %2030 = vmatprep.mubr.msk.bf16.mxu1 %vm487_vm0, %v959_v12 }
 0x2b2   : > { %2031 = vmatmul.mubr.msk.bf16.gmra.mrb[28].mxu1 %vm487_vm0, %v961_v49 }
 0x313   : > { %v3264_v33 = vpop.f32.mrb[0].mxu1 }
 0x314   : > { %v3266_v51 = vpop.f32.mrb[1].mxu1 }
 0x315   : > { %v3268_v52 = vpop.f32.mrb[2].mxu1 }
 0x316   : > { %v3270_v32 = vpop.f32.mrb[3].mxu1 }
 0x34f   : > { %v3272_v5 = vpop.f32.mrb[4].mxu1 }
 0x350   : > { %v3274_v11 = vpop.f32.mrb[5].mxu1 }
 0x351   : > { %v3276_v13 = vpop.f32.mrb[6].mxu1 }
 0x352   : > { %v3278_v14 = vpop.f32.mrb[7].mxu1 }
 0x357   : > { %v3280_v15 = vpop.f32.mrb[8].mxu1 }
 0x358   : > { %v3282_v17 = vpop.f32.mrb[9].mxu1 }
 0x359   : > { %v3284_v47 = vpop.f32.mrb[10].mxu1 }
 0x35a   : > { %v3286_v18 = vpop.f32.mrb[11].mxu1 }
 0x363   : > { %v3288_v1 = vpop.f32.mrb[12].mxu1 }
 0x364   : > { %v3290_v22 = vpop.f32.mrb[13].mxu1 }
 0x365   : > { %v3292_v23 = vpop.f32.mrb[14].mxu1 }
 0x366   : > { %v3294_v6 = vpop.f32.mrb[15].mxu1 }
 0x367   : > { %3563 = vst [vmem:[#allocation17_spill] sm:$0xff] %v3294_v6 }
 0x36d   : > { %v2020_v3 = vpop.f32.mrb[16].mxu1 }
 0x36e   : > { %v1060_v24 = vpop.f32.mrb[17].mxu1  ;;  %v1125_v25 = vsel %vm345_vm1, %v2020_v3, -1e+30  ;;  %vm3564_vm1 = vcmp.ge.s32.totalorder %v3064_v7, %v2966_v36 }
 0x36f   : > { %1143 = vmax.xlane.f32.xlu1 %v1125_v25  ;;  %v2021_v9 = vpop.f32.mrb[18].mxu1  ;;  %v1123_v8 = vsel %vm343_vm2, %v1060_v24, -1e+30 }
 0x370   : > { %1139 = vmax.xlane.f32.xlu0 %v1123_v8  ;;  %v1063_v12 = vpop.f32.mrb[19].mxu1  ;;  %v1126_v49 = vsel %vm346_vm3, %v2021_v9, -1e+30 }
 0x371   : > { %v1124_v35 = vsel %vm344_vm4, %v1063_v12, -1e+30 }
 0x373   : > { %1145 = vmax.xlane.f32.xlu1 %v1126_v49 }
 0x375   : > { %v2024_v53 = vpop.f32.mrb[20].mxu1 }
 0x376   : > { %v1076_v54 = vpop.f32.mrb[21].mxu1  ;;  %v1129_v37 = vsel %vm349_vm6, %v2024_v53, -1e+30 }
 0x377   : > { %1141 = vmax.xlane.f32.xlu1 %v1124_v35  ;;  %v1127_v55 = vsel %vm347_vm5, %v1076_v54, -1e+30  ;;  %v2025_v34 = vpop.f32.mrb[22].mxu1 }
 0x378   : > { %1147 = vmax.xlane.f32.xlu0 %v1127_v55  ;;  %v1079_v40 = vpop.f32.mrb[23].mxu1  ;;  %v1130_v38 = vsel %vm350_vm8, %v2025_v34, -1e+30 }
 0x379   : > { %v1128_v60 = vsel %vm348_vm10, %v1079_v40, -1e+30 }
 0x37b   : > { %1151 = vmax.xlane.f32.xlu1 %v1129_v37 }
 0x37d   : > { %v2028_v56 = vpop.f32.mrb[24].mxu1 }
 0x37e   : > { %v1092_v57 = vpop.f32.mrb[25].mxu1  ;;  %v3334_v62 = vsel %vm353_vm11, %v2028_v56, -1e+30 }
 0x37f   : > { %1153 = vmax.xlane.f32.xlu1 %v1130_v38  ;;  %v2029_v3 = vpop.f32.mrb[26].mxu1  ;;  %v3347_v4 = vsel %vm351_vm7, %v1092_v57, -1e+30 }
 0x380   : > { %v3320_v59 = vsel %vm354_vm13, %v2029_v3, -1e+30  ;;  %v1095_v24 = vpop.f32.mrb[27].mxu1 }
 0x381   : > { %1161 = vmax.xlane.f32.xlu0 %v3320_v59  ;;  %v3329_v9 = vsel %vm352_vm9, %v1095_v24, -1e+30 }
 0x383   : > { %1149 = vmax.xlane.f32.xlu1 %v1128_v60 }
 0x385   : > { %1157 = vmax.xlane.f32.xlu0 %v3329_v9  ;;  %v2032_v10 = vpop.f32.mrb[28].mxu1 }
 0x386   : > { %v1108_v12 = vpop.f32.mrb[29].mxu1  ;;  %v3369_v39 = vsel %vm3564_vm1, %v2032_v10, -1e+30 }
 0x387   : > { %1159 = vmax.xlane.f32.xlu1 %v3334_v62  ;;  %v2033_v53 = vpop.f32.mrb[30].mxu1  ;;  %v3363_v61 = vsel %vm355_vm14, %v1108_v12, -1e+30 }
 0x388   : > { %v3341_v2 = vsel %vm358_vm15, %v2033_v53, -1e+30  ;;  %v1111_v0 = vpop.f32.mrb[31].mxu1 }
 0x389   : > { %1169 = vmax.xlane.f32.xlu0 %v3341_v2  ;;  %v3352_v54 = vsel %vm356_vm12, %v1111_v0, -1e+30 }
 0x38b   : > { %1155 = vmax.xlane.f32.xlu1 %v3347_v4 }
 0x38d   : > { %1165 = vmax.xlane.f32.xlu0 %v3352_v54 }
 0x39c   : > { %1271 = vrot.lane.b32.xlu1 %v2949_v30, %s2568_s20 }
 0x3a3   : > { %1273 = vrot.lane.b32.xlu0 %v2951_v31, %s2568_s20 }
 0x3c0   : > { %1163 = vmax.xlane.f32.xlu1 %v3363_v61 }
 0x3c4   : > { %1167 = vmax.xlane.f32.xlu1 %v3369_v39 }
 0x3fc   : > { %v1144_v42 = vpop.xlane.xlu1 %1143 }
 0x3fd   : > { %v1173_v34 = vsub.f32 %v1125_v25, %v1144_v42  ;;  %v1140_v30 = vpop.xlane.xlu0 %1139 }
 0x3fe   : > { %v1171_v40 = vsub.f32 %v1123_v8, %v1140_v30 }
 0x3ff   : > { %v1191_v56 = vmul.f32 1.442695, %v1173_v34 }
 0x400   : > { %v1146_v31 = vpop.xlane.xlu1 %1145  ;;  %v1187_v57 = vmul.f32 1.442695, %v1171_v40 }
 0x401   : > { %2272 = vpow2.f32 %v1191_v56  ;;  %v1174_v16 = vsub.f32 %v1126_v49, %v1146_v31 }
 0x402   : > { %2274 = vpow2.f32 %v1187_v57 }
 0x403   : > { %v1193_v3 = vmul.f32 1.442695, %v1174_v16 }
 0x404   : > { %v1142_v24 = vpop.xlane.xlu1 %1141 }
 0x405   : > { %v1172_v12 = vsub.f32 %v1124_v35, %v1142_v24  ;;  %v1148_v53 = vpop.xlane.xlu0 %1147  ;;  %2276 = vpow2.f32 %v1193_v3 }
 0x406   : > { %v1175_v7 = vsub.f32 %v1127_v55, %v1148_v53 }
 0x407   : > { %v1189_v0 = vmul.f32 1.442695, %v1172_v12 }
 0x408   : > { %v1152_v36 = vpop.xlane.xlu1 %1151  ;;  %v1195_v42 = vmul.f32 1.442695, %v1175_v7 }
 0x409   : > { %2278 = vpow2.f32 %v1189_v0  ;;  %v1177_v10 = vsub.f32 %v1129_v37, %v1152_v36 }
 0x40b   : > { %v2273_v6 = vpop.eup %2272  ;;  %v1199_v25 = vmul.f32 1.442695, %v1177_v10 }
 0x40c   : > { %1223 = vadd.xlane.f32.xlu1 %v2273_v6  ;;  %v1154_v8 = vpop.xlane.xlu1 %1153  ;;  %v2275_v49 = vpop.eup %2274 }
 0x40d   : > { %2280 = vpow2.f32 %v1199_v25  ;;  %v1178_v34 = vsub.f32 %v1130_v38, %v1154_v8 }
 0x40e   : > { %v1162_v30 = vpop.xlane.xlu0 %1161  ;;  %2282 = vpow2.f32 %v1195_v42 }
 0x40f   : > { %v1201_v35 = vmul.f32 1.442695, %v1178_v34  ;;  %v2277_v31 = vpop.eup %2276  ;;  %v1182_v0 = vsub.f32 %v3320_v59, %v1162_v30 }
 0x410   : > { %1219 = vadd.xlane.f32.xlu1 %v2275_v49  ;;  %v1150_v40 = vpop.xlane.xlu1 %1149  ;;  %v1252_v30 = vpack.c.bf16 %v2277_v31, %v2273_v6 }
 0x411   : > { %v1176_v56 = vsub.f32 %v1128_v60, %v1150_v40  ;;  %2284 = vpow2.f32 %v1201_v35  ;;  %v1209_v42 = vmul.f32 1.442695, %v1182_v0 }
 0x412   : > { %v1158_v57 = vpop.xlane.xlu0 %1157 }
 0x413   : > { %v2279_v16 = vpop.eup %2278  ;;  %v1197_v3 = vmul.f32 1.442695, %v1176_v56  ;;  %v1180_v36 = vsub.f32 %v3329_v9, %v1158_v57 }
 0x414   : > { %1225 = vadd.xlane.f32.xlu1 %v2277_v31  ;;  %1221 = vadd.xlane.f32.xlu0 %v2279_v16  ;;  %v1160_v55 = vpop.xlane.xlu1 %1159  ;;  %v1251_v37 = vpack.c.bf16 %v2279_v16, %v2275_v49 }
 0x415   : > { %v1181_v24 = vsub.f32 %v3334_v62, %v1160_v55  ;;  %2286 = vpow2.f32 %v1197_v3  ;;  %v1205_v34 = vmul.f32 1.442695, %v1180_v36 }
 0x416   : > { %v1170_v12 = vpop.xlane.xlu0 %1169  ;;  %2050 = vmatprep.mubr.bf16.mxu0 %v1251_v37 }
 0x417   : > { %v2281_v38 = vpop.eup %2280  ;;  %v1207_v53 = vmul.f32 1.442695, %v1181_v24  ;;  %v1186_v56 = vsub.f32 %v3341_v2, %v1170_v12 }
 0x418   : > { %1231 = vadd.xlane.f32.xlu1 %v2281_v38  ;;  %v1156_v60 = vpop.xlane.xlu1 %1155  ;;  %v2283_v25 = vpop.eup %2282 }
 0x419   : > { %2288 = vpow2.f32 %v1207_v53  ;;  %v1179_v7 = vsub.f32 %v3347_v4, %v1156_v60  ;;  %v1217_v3 = vmul.f32 1.442695, %v1186_v56 }
 0x41a   : > { %v1166_v10 = vpop.xlane.xlu0 %1165 }
 0x41b   : > { %v1203_v8 = vmul.f32 1.442695, %v1179_v7  ;;  %v2285_v40 = vpop.eup %2284  ;;  %v1184_v9 = vsub.f32 %v3352_v54, %v1166_v10 }
 0x41c   : > { %1227 = vadd.xlane.f32.xlu1 %v2283_v25  ;;  %v1272_v62 = vpop.permute.xlu1 %1271  ;;  %v1254_v24 = vpack.c.bf16 %v2285_v40, %v2281_v38 }
 0x41d   : > { %2290 = vpow2.f32 %v1203_v8  ;;  %2046 = vmatprep.subr.bf16.mxu0 %v1272_v62  ;;  %v1213_v57 = vmul.f32 1.442695, %v1184_v9 }
 0x41e   : > { %2047 = vmatpush3.bf16.msra.mxu0 %v1272_v62  ;;  %v1274_v49 = vpop.permute.xlu0 %1273  ;;  %2292 = vpow2.f32 %v1209_v42 }
 0x41f   : > { %2048 = vmatprep.subr.bf16.mxu0 %v1274_v49  ;;  %v2287_v59 = vpop.eup %2286  ;;  %2294 = vpow2.f32 %v1205_v34 }
 0x420   : > { %1233 = vadd.xlane.f32.xlu1 %v2285_v40  ;;  %v1253_v35 = vpack.c.bf16 %v2287_v59, %v2283_v25  ;;  %2296 = vpow2.f32 %v1213_v57 }
 0x421   : > { %2298 = vpow2.f32 %v1217_v3 }
 0x422   : > { %2049 = vmatpush3.bf16.msra.mxu0 %v1274_v49 }
 0x423   : > { %v2289_v4 = vpop.eup %2288 }
 0x424   : > { %1229 = vadd.xlane.f32.xlu1 %v2287_v59  ;;  %1239 = vadd.xlane.f32.xlu0 %v2289_v4 }
 0x425   : > { %2051 = vmatmul.mubr.bf16.vlgmr.msra.gmra.mrb[16].mxu0 %v1252_v30 }
 0x426   : > { %2054 = vmatprep.mubr.bf16.mxu0 %v1253_v35 }
 0x427   : > { %v2291_v16 = vpop.eup %2290 }
 0x428   : > { %1235 = vadd.xlane.f32.xlu1 %v2291_v16  ;;  %v2293_v55 = vpop.eup %2292 }
 0x429   : > { %v2295_v37 = vpop.eup %2294  ;;  %v1256_v31 = vpack.c.bf16 %v2293_v55, %v2289_v4 }
 0x42a   : > { %v1255_v54 = vpack.c.bf16 %v2295_v37, %v2291_v16  ;;  %v2297_v6 = vpop.eup %2296 }
 0x42b   : > { %v2299_v2 = vpop.eup %2298 }
 0x42c   : > { %1241 = vadd.xlane.f32.xlu1 %v2293_v55 }
 0x42d   : > { %2055 = vmatmul.mubr.bf16.gmra.mrb[20].mxu0 %v1254_v24 }
 0x42e   : > { %2058 = vmatprep.mubr.bf16.mxu0 %v1255_v54 }
 0x430   : > { %1237 = vadd.xlane.f32.xlu1 %v2295_v37 }
 0x434   : > { %1245 = vadd.xlane.f32.xlu1 %v2297_v6 }
 0x435   : > { %2059 = vmatmul.mubr.bf16.gmra.mrb[24].mxu0 %v1256_v31 }
 0x438   : > { %1249 = vadd.xlane.f32.xlu1 %v2299_v2 }
 0x43c   : > { %731 = vadd.xlane.f32.xlu1 %v3184_v29 }
 0x440   : > { %735 = vadd.xlane.f32.xlu1 %v3182_v28 }
 0x444   : > { %739 = vadd.xlane.f32.xlu1 %v3218_v48 }
 0x448   : > { %743 = vadd.xlane.f32.xlu1 %v3214_v45 }
 0x44c   : > { %747 = vadd.xlane.f32.xlu1 %v3221_v50 }
 0x44d   : > { %v1164_v12 = vpop.xlane.xlu1 %1163 }
 0x44e   : > { %v1183_v38 = vsub.f32 %v3363_v61, %v1164_v12 }
 0x450   : > { %v1211_v53 = vmul.f32 1.442695, %v1183_v38  ;;  %751 = vadd.xlane.f32.xlu1 %v3234_v44 }
 0x451   : > { %v1168_v0 = vpop.xlane.xlu1 %1167 }
 0x452   : > { %2300 = vpow2.f32 %v1211_v53  ;;  %v1185_v60 = vsub.f32 %v3369_v39, %v1168_v0 }
 0x454   : > { %v1215_v36 = vmul.f32 1.442695, %v1185_v60  ;;  %755 = vadd.xlane.f32.xlu1 %v3246_v21 }
 0x456   : > { %2302 = vpow2.f32 %v1215_v36 }
 0x458   : > { %759 = vadd.xlane.f32.xlu1 %v3244_v20 }
 0x45c   : > { %v2301_v28 = vpop.eup %2300 }
 0x45d   : > { %1243 = vadd.xlane.f32.xlu0 %v2301_v28  ;;  %v1257_v29 = vpack.c.bf16 %v2297_v6, %v2301_v28 }
 0x45f   : > { %2062 = vmatprep.mubr.bf16.mxu0 %v1257_v29 }
 0x460   : > { %v2303_v45 = vpop.eup %2302 }
 0x461   : > { %1247 = vadd.xlane.f32.xlu0 %v2303_v45  ;;  %v1258_v48 = vpack.c.bf16 %v2299_v2, %v2303_v45 }
 0x463   : > { %2063 = vmatmul.mubr.bf16.gmra.mrb[28].mxu0 %v1258_v48 }
 0x465   : > { %729 = vadd.xlane.f32.xlu0 %v3180_v27 }
 0x469   : > { %733 = vadd.xlane.f32.xlu0 %v3186_v41 }
 0x46d   : > { %737 = vadd.xlane.f32.xlu0 %v3210_v26 }
 0x471   : > { %741 = vadd.xlane.f32.xlu0 %v3212_v43 }
 0x475   : > { %745 = vadd.xlane.f32.xlu0 %v3216_v46 }
 0x479   : > { %749 = vadd.xlane.f32.xlu0 %v3232_v58 }
 0x47d   : > { %753 = vadd.xlane.f32.xlu0 %v3242_v19 }
 0x481   : > { %757 = vadd.xlane.f32.xlu0 %v3249_v63 }
 0x499   : > { %v1224_v50 = vpop.xlane.xlu1 %1223 }
 0x49a   : > { %2304 = vrcp.f32 %v1224_v50 }
 0x49d   : > { %v1220_v44 = vpop.xlane.xlu1 %1219 }
 0x49e   : > { %2306 = vrcp.f32 %v1220_v44 }
 0x4a1   : > { %v1226_v20 = vpop.xlane.xlu1 %1225  ;;  %v1222_v41 = vpop.xlane.xlu0 %1221 }
 0x4a2   : > { %2308 = vrcp.f32 %v1226_v20 }
 0x4a3   : > { %2310 = vrcp.f32 %v1222_v41 }
 0x4a4   : > { %v2305_v43 = vpop.eup %2304 }
 0x4a5   : > { %v1232_v21 = vpop.xlane.xlu1 %1231 }
 0x4a6   : > { %2312 = vrcp.f32 %v1232_v21 }
 0x4a8   : > { %v2307_v19 = vpop.eup %2306 }
 0x4a9   : > { %v1228_v61 = vpop.xlane.xlu1 %1227 }
 0x4aa   : > { %2314 = vrcp.f32 %v1228_v61 }
 0x4ac   : > { %v2309_v7 = vpop.eup %2308 }
 0x4ad   : > { %v1234_v27 = vpop.xlane.xlu1 %1233  ;;  %v2311_v25 = vpop.eup %2310 }
 0x4ae   : > { %2316 = vrcp.f32 %v1234_v27 }
 0x4b0   : > { %v2313_v30 = vpop.eup %2312 }
 0x4b1   : > { %v1230_v39 = vpop.xlane.xlu1 %1229  ;;  %v1240_v8 = vpop.xlane.xlu0 %1239 }
 0x4b2   : > { %2318 = vrcp.f32 %v1230_v39 }
 0x4b3   : > { %2320 = vrcp.f32 %v1240_v8 }
 0x4b4   : > { %v2315_v56 = vpop.eup %2314 }
 0x4b5   : > { %v1236_v26 = vpop.xlane.xlu1 %1235 }
 0x4b6   : > { %2322 = vrcp.f32 %v1236_v26 }
 0x4b8   : > { %v2317_v16 = vpop.eup %2316 }
 0x4b9   : > { %v1242_v46 = vpop.xlane.xlu1 %1241 }
 0x4ba   : > { %2324 = vrcp.f32 %v1242_v46 }
 0x4bc   : > { %v2319_v55 = vpop.eup %2318 }
 0x4bd   : > { %v1238_v9 = vpop.xlane.xlu1 %1237  ;;  %v2321_v38 = vpop.eup %2320 }
 0x4be   : > { %2326 = vrcp.f32 %v1238_v9 }
 0x4c0   : > { %v2323_v0 = vpop.eup %2322 }
 0x4c1   : > { %v1246_v27 = vpop.xlane.xlu1 %1245 }
 0x4c2   : > { %2328 = vrcp.f32 %v1246_v27 }
 0x4c4   : > { %v2325_v36 = vpop.eup %2324 }
 0x4c5   : > { %v1250_v41 = vpop.xlane.xlu1 %1249 }
 0x4c6   : > { %2330 = vrcp.f32 %v1250_v41 }
 0x4c8   : > { %v2327_v29 = vpop.eup %2326 }
 0x4ea   : > { %v1244_v39 = vpop.xlane.xlu0 %1243 }
 0x4ee   : > { %v1248_v26 = vpop.xlane.xlu0 %1247 }
 0x4ef   : > { %2332 = vrcp.f32 %v1248_v26 }
 0x4f0   : > { %2334 = vrcp.f32 %v1244_v39 }
 0x4f2   : > { %v730_v9 = vpop.xlane.xlu0 %729 }
 0x4f8   : > { %v2052_v58 = vpop.f32.mrb[16].mxu0 }
 0x4f9   : > { %v1317_v63 = vpop.f32.mrb[17].mxu0  ;;  %v1398_v42 = vmul.f32 %v2305_v43, %v2052_v58  ;;  %v2329_v43 = vpop.eup %2328 }
 0x4fa   : > { %v2053_v10 = vpop.f32.mrb[18].mxu0  ;;  %v1396_v49 = vmul.f32 %v2307_v19, %v1317_v63  ;;  %v2331_v58 = vpop.eup %2330 }
 0x4fb   : > { %v1399_v62 = vmul.f32 %v2309_v7, %v2053_v10  ;;  %v1320_v34 = vpop.f32.mrb[19].mxu0  ;;  %v2333_v63 = vpop.eup %2332 }
 0x4fc   : > { %v1397_v40 = vmul.f32 %v2311_v25, %v1320_v34  ;;  %v2335_v10 = vpop.eup %2334 }
 0x4fd   : > { %v2176_v59 = vpack.i.bf16 %v1399_v62, %v1398_v42 }
 0x4fe   : > { %v2181_v4 = vpack.i.bf16 %v1397_v40, %v1396_v49 }
 0x4ff   : > { %2177 = vrot.lane.b32.xlu1 %v2176_v59, %s2568_s20  ;;  %v732_v59 = vpop.xlane.xlu1 %731 }
 0x500   : > { %v2056_v35 = vpop.f32.mrb[20].mxu0  ;;  %2182 = vrot.lane.b32.xlu0 %v2181_v4, %s2568_s20  ;;  %2336 = vrcp.f32 %v732_v59 }
 0x501   : > { %v1333_v57 = vpop.f32.mrb[21].mxu0  ;;  %v1402_v37 = vmul.f32 %v2313_v30, %v2056_v35  ;;  %v734_v30 = vpop.xlane.xlu0 %733 }
 0x502   : > { %v2057_v3 = vpop.f32.mrb[22].mxu0  ;;  %v1400_v6 = vmul.f32 %v2315_v56, %v1333_v57 }
 0x503   : > { %v1403_v24 = vmul.f32 %v2317_v16, %v2057_v3  ;;  %v1336_v54 = vpop.f32.mrb[23].mxu0  ;;  %v736_v4 = vpop.xlane.xlu1 %735 }
 0x504   : > { %v1401_v31 = vmul.f32 %v2319_v55, %v1336_v54  ;;  %2338 = vrcp.f32 %v736_v4 }
 0x505   : > { %v2186_v2 = vpack.i.bf16 %v1403_v24, %v1402_v37  ;;  %v738_v56 = vpop.xlane.xlu0 %737  ;;  %2340 = vrcp.f32 %v734_v30 }
 0x506   : > { %v2191_v12 = vpack.i.bf16 %v1401_v31, %v1400_v6  ;;  %2342 = vrcp.f32 %v730_v9 }
 0x507   : > { %2187 = vrot.lane.b32.xlu0 %v2186_v2, %s2568_s20  ;;  %v740_v35 = vpop.xlane.xlu1 %739 }
 0x508   : > { %v2060_v53 = vpop.f32.mrb[24].mxu0  ;;  %2192 = vrot.lane.b32.xlu1 %v2191_v12, %s2568_s20  ;;  %2344 = vrcp.f32 %v740_v35 }
 0x509   : > { %v1349_v60 = vpop.f32.mrb[25].mxu0  ;;  %v1406_v45 = vmul.f32 %v2321_v38, %v2060_v53  ;;  %v742_v16 = vpop.xlane.xlu0 %741 }
 0x50a   : > { %v2061_v28 = vpop.f32.mrb[26].mxu0  ;;  %v1404_v44 = vmul.f32 %v2323_v0, %v1349_v60  ;;  %v2337_v31 = vpop.eup %2336 }
 0x50b   : > { %v1407_v48 = vmul.f32 %v2325_v36, %v2061_v28  ;;  %v1352_v50 = vpop.f32.mrb[27].mxu0  ;;  %v744_v57 = vpop.xlane.xlu1 %743  ;;  %v931_v36 = vmul.f32 %v2337_v31, %v3270_v32 }
 0x50c   : > { %v1405_v20 = vmul.f32 %v2327_v29, %v1352_v50  ;;  %2346 = vrcp.f32 %v744_v57 }
 0x50d   : > { %v2196_v21 = vpack.i.bf16 %v1407_v48, %v1406_v45  ;;  %v746_v55 = vpop.xlane.xlu0 %745  ;;  %2348 = vrcp.f32 %v742_v16 }
 0x50e   : > { %v2201_v61 = vpack.i.bf16 %v1405_v20, %v1404_v44  ;;  %v2339_v12 = vpop.eup %2338  ;;  %2350 = vrcp.f32 %v738_v56 }
 0x50f   : > { %2197 = vrot.lane.b32.xlu0 %v2196_v21, %s2568_s20  ;;  %v748_v3 = vpop.xlane.xlu1 %747  ;;  %v2341_v53 = vpop.eup %2340  ;;  %v933_v29 = vmul.f32 %v2339_v12, %v3268_v52 }
 0x510   : > { %2202 = vrot.lane.b32.xlu1 %v2201_v61, %s2568_s20  ;;  %v2343_v0 = vpop.eup %2342  ;;  %v932_v28 = vmul.f32 %v2341_v53, %v3264_v33  ;;  %2352 = vrcp.f32 %v748_v3 }
 0x511   : > { %v750_v24 = vpop.xlane.xlu0 %749  ;;  %v930_v44 = vmul.f32 %v2343_v0, %v3266_v51 }
 0x512   : > { %v2345_v39 = vpop.eup %2344 }
 0x513   : > { %v752_v37 = vpop.xlane.xlu1 %751 }
 0x514   : > { %2354 = vrcp.f32 %v752_v37 }
 0x515   : > { %v3406_v6 = vpop.xlane.xlu0 %753  ;;  %2356 = vrcp.f32 %v750_v24 }
 0x516   : > { %v2347_v41 = vpop.eup %2346  ;;  %2358 = vrcp.f32 %v746_v55 }
 0x517   : > { %v3404_v54 = vpop.xlane.xlu1 %755 }
 0x518   : > { %2360 = vrcp.f32 %v3404_v54 }
 0x519   : > { %v3410_v38 = vpop.xlane.xlu0 %757 }
 0x51b   : > { %v3408_v2 = vpop.xlane.xlu1 %759 }
 0x51c   : > { %2362 = vrcp.f32 %v3408_v2 }
 0x51d   : > { %2364 = vrcp.f32 %v3410_v38  ;;  %v3565_v38 = vld [vmem:[#allocation17_spill] sm:$0xff] }
 0x51e   : > { %2366 = vrcp.f32 %v3406_v6 }
 0x536   : > { %v2064_v46 = vpop.f32.mrb[28].mxu0 }
 0x537   : > { %v1365_v19 = vpop.f32.mrb[29].mxu0  ;;  %v1410_v25 = vmul.f32 %v2333_v63, %v2064_v46 }
 0x538   : > { %v2065_v7 = vpop.f32.mrb[30].mxu0  ;;  %v1408_v62 = vmul.f32 %v2335_v10, %v1365_v19 }
 0x539   : > { %v1411_v8 = vmul.f32 %v2331_v58, %v2065_v7  ;;  %v1368_v42 = vpop.f32.mrb[31].mxu0  ;;  %v937_v7 = vmul.f32 %v2347_v41, %v3276_v13 }
 0x53a   : > { %v1409_v34 = vmul.f32 %v2329_v43, %v1368_v42  ;;  %v2349_v43 = vpop.eup %2348 }
 0x53b   : > { %v2211_v49 = vpack.i.bf16 %v1411_v8, %v1410_v25  ;;  %v2351_v51 = vpop.eup %2350  ;;  %v936_v58 = vmul.f32 %v2349_v43, %v3272_v5  ;;  %v935_v8 = vmul.f32 %v2345_v39, %v3278_v14 }
 0x53c   : > { %v2206_v40 = vpack.i.bf16 %v1409_v34, %v1408_v62  ;;  %v934_v25 = vmul.f32 %v2351_v51, %v3274_v11 }
 0x53d   : > { %2212 = vrot.lane.b32.xlu0 %v2211_v49, %s2568_s20 }
 0x53e   : > { %2207 = vrot.lane.b32.xlu1 %v2206_v40, %s2568_s20  ;;  %v2353_v40 = vpop.eup %2352 }
 0x53f   : > { %v2355_v4 = vpop.eup %2354  ;;  %v939_v37 = vmul.f32 %v2353_v40, %v3286_v18 }
 0x540   : > { %v2357_v30 = vpop.eup %2356  ;;  %v941_v16 = vmul.f32 %v2355_v4, %v3284_v47 }
 0x541   : > { %v2359_v35 = vpop.eup %2358  ;;  %v940_v14 = vmul.f32 %v2357_v30, %v3280_v15 }
 0x542   : > { %v938_v55 = vmul.f32 %v2359_v35, %v3282_v17  ;;  %v2361_v17 = vpop.eup %2360 }
 0x543   : > { %v2363_v18 = vpop.eup %2362 }
 0x544   : > { %v945_v54 = vmul.f32 %v2363_v18, %v3292_v23 }
 0x571   : > { %v2178_v60 = vpop.permute.xlu1 %2177 }
 0x572   : > { %v2180_v45 = vunpack.i.h.bf16 %v2178_v60  ;;  %v2179_v48 = vunpack.i.l.bf16 %v2178_v60  ;;  %v2183_v50 = vpop.permute.xlu0 %2182 }
 0x573   : > { %v2185_v20 = vunpack.i.h.bf16 %v2183_v50  ;;  %v2184_v21 = vunpack.i.l.bf16 %v2183_v50 }
 0x574   : > { %v1479_v61 = vsel %vm487_vm0, %v933_v29, %v2180_v45  ;;  %v1478_v27 = vsel %vm487_vm0, %v932_v28, %v2179_v48 }
 0x575   : > { %v1835_v32 = vpack.c.bf16 %v1479_v61, %v1478_v27  ;;  %v1476_v33 = vsel %vm487_vm0, %v930_v44, %v2184_v21  ;;  %v1477_v52 = vsel %vm487_vm0, %v931_v36, %v2185_v20  ;;  %v2365_v36 = vpop.eup %2364  ;;  %v943_v44 = vmul.f32 %v2361_v17, %v3565_v38 }
 0x576   : > { %v1830_v26 = vpack.c.bf16 %v1477_v52, %v1476_v33  ;;  %v2367_v28 = vpop.eup %2366  ;;  %v944_v45 = vmul.f32 %v2365_v36, %v3288_v1 }
 0x577   : > { %1867 = vst [vmem:[%s3421_s30 + $0x8] sm:$0xff] %v1835_v32   ;;  %v942_v6 = vmul.f32 %v2367_v28, %v3290_v22 }
 0x578   : > { %1831 = vst [vmem:[%s3421_s30] sm:$0xff] %v1830_v26  }
 0x579   : > { %v2188_v46 = vpop.permute.xlu0 %2187 }
 0x57a   : > { %v2190_v19 = vunpack.i.h.bf16 %v2188_v46  ;;  %v2189_v63 = vunpack.i.l.bf16 %v2188_v46  ;;  %v2193_v10 = vpop.permute.xlu1 %2192 }
 0x57b   : > { %v2195_v42 = vunpack.i.h.bf16 %v2193_v10  ;;  %v2194_v62 = vunpack.i.l.bf16 %v2193_v10 }
 0x57c   : > { %v1482_v34 = vsel %vm487_vm0, %v936_v58, %v2189_v63  ;;  %v1483_v49 = vsel %vm487_vm0, %v937_v7, %v2190_v19 }
 0x57d   : > { %v1845_v59 = vpack.c.bf16 %v1483_v49, %v1482_v34  ;;  %v1481_v5 = vsel %vm487_vm0, %v935_v8, %v2195_v42  ;;  %v1480_v9 = vsel %vm487_vm0, %v934_v25, %v2194_v62 }
 0x57e   : > { %v1840_v13 = vpack.c.bf16 %v1481_v5, %v1480_v9 }
 0x57f   : > { %1869 = vst [vmem:[%s3421_s30 + $0x18] sm:$0xff] %v1845_v59  }
 0x580   : > { %1868 = vst [vmem:[%s3421_s30 + $0x10] sm:$0xff] %v1840_v13  }
 0x581   : > { %v2198_v11 = vpop.permute.xlu0 %2197 }
 0x582   : > { %v2200_v56 = vunpack.i.h.bf16 %v2198_v11  ;;  %v2199_v57 = vunpack.i.l.bf16 %v2198_v11  ;;  %v2203_v3 = vpop.permute.xlu1 %2202 }
 0x583   : > { %v2205_v24 = vunpack.i.h.bf16 %v2203_v3  ;;  %v2204_v31 = vunpack.i.l.bf16 %v2203_v3 }
 0x584   : > { %v1486_v12 = vsel %vm487_vm0, %v940_v14, %v2199_v57  ;;  %v1487_v53 = vsel %vm487_vm0, %v941_v16, %v2200_v56 }
 0x585   : > { %v1855_v0 = vpack.c.bf16 %v1487_v53, %v1486_v12  ;;  %v1485_v15 = vsel %vm487_vm0, %v939_v37, %v2205_v24  ;;  %v1484_v60 = vsel %vm487_vm0, %v938_v55, %v2204_v31 }
 0x586   : > { %v1850_v47 = vpack.c.bf16 %v1485_v15, %v1484_v60 }
 0x587   : > { %1871 = vst [vmem:[%s3421_s30 + $0x28] sm:$0xff] %v1855_v0  }
 0x588   : > { %1870 = vst [vmem:[%s3421_s30 + $0x20] sm:$0xff] %v1850_v47  }
 0x5af   : > { %v2213_v29 = vpop.permute.xlu0 %2212 }
 0x5b0   : > { %v2215_v48 = vunpack.i.h.bf16 %v2213_v29  ;;  %v2214_v50 = vunpack.i.l.bf16 %v2213_v29  ;;  %v2208_v2 = vpop.permute.xlu1 %2207 }
 0x5b1   : > { %v2210_v20 = vunpack.i.h.bf16 %v2208_v2  ;;  %v2209_v21 = vunpack.i.l.bf16 %v2208_v2 }
 0x5b2   : > { %v1490_v1 = vsel %vm487_vm0, %v944_v45, %v2214_v50  ;;  %v1491_v61 = vsel %vm487_vm0, %v945_v54, %v2215_v48 }
 0x5b3   : > { %v1865_v23 = vpack.c.bf16 %v1491_v61, %v1490_v1  ;;  %v1489_v27 = vsel %vm487_vm0, %v943_v44, %v2210_v20  ;;  %v1488_v39 = vsel %vm487_vm0, %v942_v6, %v2209_v21 }
 0x5b4   : > { %v1860_v22 = vpack.c.bf16 %v1489_v27, %v1488_v39 }
 0x5b5   : > { %1873 = vst [vmem:[%s3421_s30 + $0x38] sm:$0xff] %v1865_v23  }
 0x5b6   : > { %1872 = vst [vmem:[%s3421_s30 + $0x30] sm:$0xff] %v1860_v22  }
 0x5b7   : > { %2471 = shalt.err (!%p2468_p13)
}
 0x5b8   : > { %s2472_s9 = scalar_lea.hbm %s3465_s22, 1024  ;;  %s2476_s1 = scalar_lea.hbm %s3525_s3, 4096 }
 0x5b9   : > { %p2473_p12 = scmp.ne.s32.totalorder %s3465_s22, %s2472_s9  ;;  %p2477_p6 = scmp.lt.u32.totalorder %s3465_s22, %s3525_s3 }
 0x5ba   : > { %p2478_p3 = scmp.lt.u32.totalorder %s2476_s1, %s2472_s9  ;;  %p2480_p0 = scmp.lt.u32.totalorder %s2472_s9, %s3465_s22 }
 0x5bb   : > { %p2474_p10 = pnand %p2473_p12, %p3566_p7 }
 0x5bc   : > { %p2479_p2 = por %p2478_p3, %p2477_p6 }
 0x5bd   : > { %p2475_p4 = pneg %p2474_p10 }
 0x5be   : > { %p2481_p8 = por %p2480_p0, %p2479_p2 }
 0x5c0   : > { %p2482_p9 = pnand %p2481_p8, %p2475_p4 }
 0x5c2   : > { %2485 = shalt.err (!%p2482_p9)
}
 0x5c3   : > { %s2570_s23 = smov 128   ;;  %s2571_s27 = smov 4  }
 0x5c4   : > { %2088 = dma.vmem_to_hbm [thread:$0]  (%p3566_p7), %s3456_s17, 1024, %s3465_s22, %s1573_s26, %s2568_s20, %s2570_s23, %s2571_s27  }
 0x5c5 PF: > { %p2105_p1 = scmp.ge.s32.totalorder %s2560_s19, 2  ;;  %s1605_s30 = sand.u32 1, %s2532_s12  }
 0x5c6   : > { %p3567_p5 = scmp.ne.s32.totalorder %s3549_s4, 0  ;;  %s1606_s25 = scalar_lea.sflag [#allocation4], %s1605_s30 }
 0x5c8   : > { %p2101_p11 = pnand %p2105_p1, %p3567_p5 }
 0x5ca   : > { %2527 = dma.done.wait (!%p2101_p11), %s1606_s25, 1024  }
 0x5cb   : > { %2529 = vsyncadd (!%p2101_p11), %s1606_s25, 4294966272  ;;  %s22_s19 = sadd.s32 1, %s2560_s19   ;;  %s3568_s28 = sld [smem:[#allocation16_spill]] }
 0x5cc   : > { %p19_p13 = scmp.ge.s32.totalorder %s22_s19, 6   ;;  %s3569_s15 = sld [smem:[#allocation12_spill]] }
 0x5cd   : > { %s3570_s16 = sld [smem:[#allocation13_spill]]  ;;  %s3571_s17 = sld [smem:[#allocation14_spill]] }
 0x5ce   : > { %s3572_s18 = sld [smem:[#allocation15_spill]]  ;;  %s3573_s12 = smov %s2536_s13 }
 0x5cf   : > { %s3574_s13 = smov %s2540_s14  ;;  %21 = sbr.rel (!%p19_p13) target bundleno = 12 (0xc), region = 101 }
 0x5d1   : > { %s3575_s14 = smov %s3568_s28 }
 0x5d6   :  { %1611 = vsyncpa [#allocation3], 1 }
 0x5d7   :  { %1613 = vsyncpa [#allocation3 + $0x1], 1 }
 0x5d8   :  { %1614 = vsyncpa [#allocation6], 1 }
 0x5d9   :  { %1616 = vsyncpa [#allocation6 + $0x1], 1 }
 0x5da   :  { %1617 = vsyncpa [#allocation4], 1 }
 0x5db   :  { %1619 = vsyncpa [#allocation4 + $0x1], 1 }

// kernel: causal_self_attention.3
= control target key start
LH: loop header
LB: loop body
LE: loop exit
PB: predicated region body
PF: predicated region fallthrough
CT: control target
= control target key end

     0   :  { %11 = vsyncpa [#allocation3], 0  ;;  %s3231_s0 = inlined_call_operand.hbm [shape: f32[256,256], index: 0, kind: input, shape index: {}]   ;;  %s3232_s1 = inlined_call_operand.hbm [shape: bf16[256,768], index: 1, kind: input, shape index: {}]   ;;  %s3233_s2 = inlined_call_operand.hbm [shape: f32[1,768], index: 2, kind: input, shape index: {}]   ;;  %s3234_s3 = inlined_call_operand.hbm [shape: bf16[256,256], index: 3, kind: output, shape index: {0}]   ;;  %s3235_s4 = inlined_call_operand.hbm [shape: bf16[256,256], index: 4, kind: output, shape index: {1}]   ;;  %s3236_s5 = inlined_call_operand.hbm [shape: bf16[256,256], index: 5, kind: output, shape index: {2}]  }
   0x1   :  { %12 = vsyncpa [#allocation6], 0 }
   0x2   :  { %13 = vsyncpa [#allocation4], 0 }
   0x3   :  { %14 = vsyncpa [#allocation10], 0  ;;  %s2742_s18 = smov [#allocation5]   ;;  %s2602_s22 = scalar_lea.hbm %s3232_s1, 12288 }
   0x4   :  { %s32_s19 = sshll.u32 %s2742_s18, 4  ;;  %p2603_p0 = scmp.ne.s32.totalorder %s3232_s1, %s2602_s22  ;;  %s33_s19 = int_to_ptr.vmem [resolvable:$true] %s32_s19 }
   0x5   :  { %p2606_p1 = scmp.lt.u32.totalorder %s2602_s22, %s3232_s1 }
   0x7   :  { %p2608_p2 = pnand %p2606_p1, %p2603_p0 }
   0x9   :  { %2611 = shalt.err (!%p2608_p2)
}
   0xa   :  { %s2612_s27 = scalar_lea.vmem %s33_s19, 12288  ;;  %p2617_p4 = scmp.lt.s32.totalorder %s33_s19, %s33_s19 }
   0xb   :  { %p2613_p3 = scmp.ne.s32.totalorder %s33_s19, %s2612_s27  ;;  %p2618_p5 = scmp.lt.s32.totalorder %s2612_s27, %s2612_s27 }
   0xd   :  { %p2619_p6 = por %p2618_p5, %p2617_p4 }
   0xf   :  { %p2620_p7 = pnand %p2619_p6, %p2613_p3 }
  0x11   :  { %2623 = shalt.err (!%p2620_p7)
}
  0x12   :  { %s2743_s28 = smov 384   ;;  %s2744_s29 = smov 24  }
  0x13   :  { %38 = dma.hbm_to_vmem [thread:$0]  %s3232_s1, 12288, %s33_s19, [#allocation6], %s2743_s28, %s2743_s28, %s2744_s29  }
  0x14   :  { %s2745_s7 = smov [#allocation2]   ;;  %s2624_s11 = scalar_lea.hbm %s3231_s0, 8192 }
  0x15   :  { %s20_s8 = sshll.u32 %s2745_s7, 4  ;;  %p2625_p8 = scmp.ne.s32.totalorder %s3231_s0, %s2624_s11  ;;  %s21_s8 = int_to_ptr.vmem [resolvable:$true] %s20_s8 }
  0x16   :  { %p2628_p9 = scmp.lt.u32.totalorder %s2624_s11, %s3231_s0 }
  0x18   :  { %p2630_p10 = pnand %p2628_p9, %p2625_p8 }
  0x1a   :  { %2633 = shalt.err (!%p2630_p10)
}
  0x1b   :  { %s2634_s16 = scalar_lea.vmem %s21_s8, 8192  ;;  %p2639_p12 = scmp.lt.s32.totalorder %s21_s8, %s21_s8 }
  0x1c   :  { %p2635_p11 = scmp.ne.s32.totalorder %s21_s8, %s2634_s16  ;;  %p2640_p13 = scmp.lt.s32.totalorder %s2634_s16, %s2634_s16 }
  0x1e   :  { %p2641_p0 = por %p2640_p13, %p2639_p12 }
  0x20   :  { %p2642_p1 = pnand %p2641_p0, %p2635_p11 }
  0x22   :  { %2645 = shalt.err (!%p2642_p1)
}
  0x23   :  { %s2746_s1 = smov 256   ;;  %s2747_s17 = smov 16  }
  0x24   :  { %26 = dma.hbm_to_vmem [thread:$0]  %s3231_s0, 8192, %s21_s8, [#allocation3], %s2746_s1, %s2746_s1, %s2747_s17  }
  0x25   :  { %s2748_s20 = smov [#allocation7]   ;;  %s2646_s24 = scalar_lea.hbm %s3233_s2, 96 }
  0x26   :  { %s45_s21 = sshll.u32 %s2748_s20, 4  ;;  %p2647_p2 = scmp.ne.s32.totalorder %s3233_s2, %s2646_s24  ;;  %s46_s21 = int_to_ptr.vmem [resolvable:$true] %s45_s21 }
  0x27   :  { %p2650_p3 = scmp.lt.u32.totalorder %s2646_s24, %s3233_s2 }
  0x29   :  { %p2652_p4 = pnand %p2650_p3, %p2647_p2 }
  0x2b   :  { %2655 = shalt.err (!%p2652_p4)
}
  0x2c   :  { %s2656_s29 = scalar_lea.vmem %s46_s21, 96  ;;  %p2661_p6 = scmp.lt.s32.totalorder %s46_s21, %s46_s21 }
  0x2d   :  { %p2657_p5 = scmp.ne.s32.totalorder %s46_s21, %s2656_s29  ;;  %p2662_p7 = scmp.lt.s32.totalorder %s2656_s29, %s2656_s29 }
  0x2f   :  { %p2663_p8 = por %p2662_p7, %p2661_p6 }
  0x31   :  { %p2664_p9 = pnand %p2663_p8, %p2657_p5 }
  0x33   :  { %2667 = shalt.err (!%p2664_p9)
}
  0x34   :  { %48 = dma.hbm_to_vmem [thread:$0]  %s3233_s2, 96, %s46_s21, [#allocation6]  }
  0x35   :  { %2734 = dma.done.wait [#allocation3], 8192  }
  0x36   :  { %2735 = vsyncadd [#allocation3], 4294959104 }
  0x37   :  { %2736 = dma.done.wait [#allocation6], 12384  }
  0x38   :  { %2737 = vsyncadd [#allocation6], 4294954912  ;;  %v2458_v0 = vld [vmem:[#allocation5 + $0x4] ss:$24 sps:$4 sm:$0xff]   ;;  %v2460_v1 = vld [vmem:[#allocation5] ss:$24 sps:$4 sm:$0xff]  }
  0x39   :  { %762 = vmatprep.subr.bf16.mxu0 %v2458_v0  ;;  %2414 = vmatprep.subr.bf16.mxu1 %v2458_v0  ;;  %v2461_v2 = vld [vmem:[#allocation5 + $0x34] ss:$24 sps:$4 sm:$0xff]   ;;  %v2463_v3 = vld [vmem:[#allocation5 + $0x30] ss:$24 sps:$4 sm:$0xff]   ;;  %v2464_v4 = vld [vmem:[#allocation5 + $0x64] ss:$24 sps:$4 sm:$0xff]  }
  0x3a   :  { %763 = vmatpush1.bf16.msra.mxu0 %v2460_v1  ;;  %2430 = vmatpush1.bf16.msra.mxu1 %v2460_v1  ;;  %v2466_v5 = vld [vmem:[#allocation5 + $0x60] ss:$24 sps:$4 sm:$0xff]   ;;  %v2467_v6 = vld [vmem:[#allocation5 + $0x94] ss:$24 sps:$4 sm:$0xff]   ;;  %v2469_v7 = vld [vmem:[#allocation5 + $0x90] ss:$24 sps:$4 sm:$0xff]  }
  0x3b   :  { %764 = vmatprep.subr.bf16.mxu0 %v2461_v2  ;;  %2415 = vmatprep.subr.bf16.mxu1 %v2461_v2  ;;  %v2470_v8 = vld [vmem:[#allocation5 + $0xc4] ss:$24 sps:$4 sm:$0xff]   ;;  %v2472_v9 = vld [vmem:[#allocation5 + $0xc0] ss:$24 sps:$4 sm:$0xff]   ;;  %v2473_v10 = vld [vmem:[#allocation5 + $0xf4] ss:$24 sps:$4 sm:$0xff]  }
  0x3c   :  { %v2475_v11 = vld [vmem:[#allocation5 + $0xf0] ss:$24 sps:$4 sm:$0xff]   ;;  %v2476_v12 = vld [vmem:[#allocation5 + $0x124] ss:$24 sps:$4 sm:$0xff]   ;;  %v2478_v18 = vld [vmem:[#allocation5 + $0x120] ss:$24 sps:$4 sm:$0xff]  }
  0x3d   :  { %v59_v13 = vld [vmem:[#allocation2 + $0x8] sm:$0xff]  ;;  %v61_v14 = vld [vmem:[#allocation2 + $0x18] sm:$0xff]  ;;  %v58_v38 = vld [vmem:[#allocation2] sm:$0xff]  ;;  %s2749_s2 = smov [#allocation8]  }
  0x3e   :  { %765 = vmatpush1.bf16.msra.mxu0 %v2463_v3  ;;  %2431 = vmatpush1.bf16.msra.mxu1 %v2463_v3  ;;  %v2820_v15 = vpack.c.bf16 %v61_v14, %v59_v13  ;;  %v91_v16 = vld [vmem:[#allocation2 + $0x108] sm:$0xff]  ;;  %v93_v17 = vld [vmem:[#allocation2 + $0x118] sm:$0xff]  ;;  %v60_v39 = vld [vmem:[#allocation2 + $0x10] sm:$0xff]  ;;  %s2082_s6 = sshll.u32 %s2749_s2, 4  ;;  %s2083_s6 = int_to_ptr.vmem [resolvable:$true] %s2082_s6 }
  0x3f   :  { %766 = vmatprep.subr.bf16.mxu0 %v2464_v4  ;;  %2416 = vmatprep.subr.bf16.mxu1 %v2464_v4  ;;  %v2822_v19 = vpack.c.bf16 %v93_v17, %v91_v16  ;;  %v2479_v20 = vld [vmem:[#allocation5 + $0x154] ss:$24 sps:$4 sm:$0xff]   ;;  %v2481_v21 = vld [vmem:[#allocation5 + $0x150] ss:$24 sps:$4 sm:$0xff]   ;;  %v2482_v22 = vld [vmem:[#allocation5 + $0x184] ss:$24 sps:$4 sm:$0xff]   ;;  %v2826_v45 = vpack.c.bf16 %v60_v39, %v58_v38  ;;  %p2673_p11 = scmp.lt.s32.totalorder %s2083_s6, %s2083_s6 }
  0x40   :  { %794 = vmatprep.mubr.bf16.mxu0 %v2820_v15  ;;  %v2484_v23 = vld [vmem:[#allocation5 + $0x180] ss:$24 sps:$4 sm:$0xff]   ;;  %v2485_v24 = vld [vmem:[#allocation5 + $0x1b4] ss:$24 sps:$4 sm:$0xff]   ;;  %v2487_v25 = vld [vmem:[#allocation5 + $0x1b0] ss:$24 sps:$4 sm:$0xff]  }
  0x41   :  { %874 = vmatprep.mubr.bf16.mxu1 %v2822_v19  ;;  %v2488_v26 = vld [vmem:[#allocation5 + $0x1e4] ss:$24 sps:$4 sm:$0xff]   ;;  %v2490_v27 = vld [vmem:[#allocation5 + $0x1e0] ss:$24 sps:$4 sm:$0xff]   ;;  %v2491_v28 = vld [vmem:[#allocation5 + $0x214] ss:$24 sps:$4 sm:$0xff]  }
  0x42   :  { %767 = vmatpush1.bf16.msra.mxu0 %v2466_v5  ;;  %2432 = vmatpush1.bf16.msra.mxu1 %v2466_v5  ;;  %v2493_v29 = vld [vmem:[#allocation5 + $0x210] ss:$24 sps:$4 sm:$0xff]   ;;  %v2494_v30 = vld [vmem:[#allocation5 + $0x244] ss:$24 sps:$4 sm:$0xff]   ;;  %v2496_v31 = vld [vmem:[#allocation5 + $0x240] ss:$24 sps:$4 sm:$0xff]  }
  0x43   :  { %768 = vmatprep.subr.bf16.mxu0 %v2467_v6  ;;  %2417 = vmatprep.subr.bf16.mxu1 %v2467_v6  ;;  %v2497_v32 = vld [vmem:[#allocation5 + $0x274] ss:$24 sps:$4 sm:$0xff]   ;;  %v2499_v33 = vld [vmem:[#allocation5 + $0x270] ss:$24 sps:$4 sm:$0xff]   ;;  %v2500_v34 = vld [vmem:[#allocation5 + $0x2a4] ss:$24 sps:$4 sm:$0xff]  }
  0x44   :  { %v2502_v35 = vld [vmem:[#allocation5 + $0x2a0] ss:$24 sps:$4 sm:$0xff]   ;;  %v2503_v36 = vld [vmem:[#allocation5 + $0x2d4] ss:$24 sps:$4 sm:$0xff]   ;;  %v2505_v37 = vld [vmem:[#allocation5 + $0x2d0] ss:$24 sps:$4 sm:$0xff]  }
  0x45   :  { %v90_v40 = vld [vmem:[#allocation2 + $0x100] sm:$0xff]  ;;  %v92_v41 = vld [vmem:[#allocation2 + $0x110] sm:$0xff]  ;;  %v63_v44 = vld [vmem:[#allocation2 + $0x28] sm:$0xff]  ;;  %s2668_s7 = scalar_lea.vmem %s2083_s6, 4096 }
  0x46   :  { %769 = vmatpush1.bf16.msra.mxu0 %v2469_v7  ;;  %2433 = vmatpush1.bf16.msra.mxu1 %v2469_v7  ;;  %v2508_v42 = vld [vmem:[#allocation5 + $0xc] ss:$24 sps:$4 sm:$0xff]   ;;  %v2828_v46 = vpack.c.bf16 %v92_v41, %v90_v40  ;;  %v65_v47 = vld [vmem:[#allocation2 + $0x38] sm:$0xff]  ;;  %v2506_v50 = vld [vmem:[#allocation5 + $0x8] ss:$24 sps:$4 sm:$0xff]   ;;  %p2669_p10 = scmp.ne.s32.totalorder %s2083_s6, %s2668_s7  ;;  %p2674_p12 = scmp.lt.s32.totalorder %s2668_s7, %s2668_s7 }
  0x47   :  { %770 = vmatprep.subr.bf16.mxu0 %v2470_v8  ;;  %2418 = vmatprep.subr.bf16.mxu1 %v2470_v8  ;;  %v2511_v43 = vld [vmem:[#allocation5 + $0x14] ss:$24 sps:$4 sm:$0xff]   ;;  %v97_v49 = vld [vmem:[#allocation2 + $0x138] sm:$0xff]  ;;  %v2509_v51 = vld [vmem:[#allocation5 + $0x10] ss:$24 sps:$4 sm:$0xff]   ;;  %v2830_v56 = vpack.c.bf16 %v65_v47, %v63_v44 }
  0x48   :  { %v95_v48 = vld [vmem:[#allocation2 + $0x128] sm:$0xff]  ;;  %v2514_v52 = vld [vmem:[#allocation5 + $0x3c] ss:$24 sps:$4 sm:$0xff]   ;;  %v2512_v54 = vld [vmem:[#allocation5 + $0x38] ss:$24 sps:$4 sm:$0xff]   ;;  %p2675_p13 = por %p2674_p12, %p2673_p11 }
  0x49   :  { %v2517_v53 = vld [vmem:[#allocation5 + $0x44] ss:$24 sps:$4 sm:$0xff]   ;;  %v2515_v55 = vld [vmem:[#allocation5 + $0x40] ss:$24 sps:$4 sm:$0xff]   ;;  %v2832_v57 = vpack.c.bf16 %v97_v49, %v95_v48  ;;  %v64_v59 = vld [vmem:[#allocation2 + $0x30] sm:$0xff] }
  0x4a   :  { %771 = vmatpush1.bf16.msra.mxu0 %v2472_v9  ;;  %2434 = vmatpush1.bf16.msra.mxu1 %v2472_v9  ;;  %v62_v58 = vld [vmem:[#allocation2 + $0x20] sm:$0xff]  ;;  %v96_v61 = vld [vmem:[#allocation2 + $0x130] sm:$0xff]  ;;  %v67_v0 = vld [vmem:[#allocation2 + $0x48] sm:$0xff]  ;;  %p2676_p0 = pnand %p2675_p13, %p2669_p10 }
  0x4b   :  { %772 = vmatprep.subr.bf16.mxu0 %v2473_v10  ;;  %2419 = vmatprep.subr.bf16.mxu1 %v2473_v10  ;;  %v94_v60 = vld [vmem:[#allocation2 + $0x120] sm:$0xff]  ;;  %v2523_v63 = vld [vmem:[#allocation5 + $0x74] ss:$24 sps:$4 sm:$0xff]   ;;  %v2838_v1 = vpack.c.bf16 %v64_v59, %v62_v58  ;;  %v69_v3 = vld [vmem:[#allocation2 + $0x58] sm:$0xff] }
  0x4c   :  { %v2520_v62 = vld [vmem:[#allocation5 + $0x6c] ss:$24 sps:$4 sm:$0xff]   ;;  %v2840_v2 = vpack.c.bf16 %v96_v61, %v94_v60  ;;  %v101_v5 = vld [vmem:[#allocation2 + $0x158] sm:$0xff]  ;;  %v2518_v6 = vld [vmem:[#allocation5 + $0x68] ss:$24 sps:$4 sm:$0xff]  }
  0x4d   :  { %v99_v4 = vld [vmem:[#allocation2 + $0x148] sm:$0xff]  ;;  %v2526_v8 = vld [vmem:[#allocation5 + $0x9c] ss:$24 sps:$4 sm:$0xff]   ;;  %v2524_v10 = vld [vmem:[#allocation5 + $0x98] ss:$24 sps:$4 sm:$0xff]  }
  0x4e   :  { %773 = vmatpush1.bf16.msra.mxu0 %v2475_v11  ;;  %2435 = vmatpush1.bf16.msra.mxu1 %v2475_v11  ;;  %v2521_v7 = vld [vmem:[#allocation5 + $0x70] ss:$24 sps:$4 sm:$0xff]   ;;  %v2529_v9 = vld [vmem:[#allocation5 + $0xa4] ss:$24 sps:$4 sm:$0xff]   ;;  %v2527_v11 = vld [vmem:[#allocation5 + $0xa0] ss:$24 sps:$4 sm:$0xff]   ;;  %v2844_v13 = vpack.c.bf16 %v101_v5, %v99_v4 }
  0x4f   :  { %774 = vmatprep.subr.bf16.mxu0 %v2476_v12  ;;  %2420 = vmatprep.subr.bf16.mxu1 %v2476_v12  ;;  %v2842_v12 = vpack.c.bf16 %v69_v3, %v67_v0  ;;  %v66_v14 = vld [vmem:[#allocation2 + $0x40] sm:$0xff]  ;;  %v68_v16 = vld [vmem:[#allocation2 + $0x50] sm:$0xff]  ;;  %v77_v47 = vld [vmem:[#allocation2 + $0x98] sm:$0xff] }
  0x50   :  { %v98_v17 = vld [vmem:[#allocation2 + $0x140] sm:$0xff]  ;;  %v104_v39 = vld [vmem:[#allocation2 + $0x170] sm:$0xff]  ;;  %v107_v48 = vld [vmem:[#allocation2 + $0x188] sm:$0xff] }
  0x51   :  { %v102_v38 = vld [vmem:[#allocation2 + $0x160] sm:$0xff]  ;;  %v2547_v41 = vld [vmem:[#allocation5 + $0x134] ss:$24 sps:$4 sm:$0xff]   ;;  %v109_v49 = vld [vmem:[#allocation2 + $0x198] sm:$0xff] }
  0x52   :  { %775 = vmatpush1.bf16.msra.mxu0 %v2478_v18  ;;  %2436 = vmatpush1.bf16.msra.mxu1 %v2478_v18  ;;  %v100_v18 = vld [vmem:[#allocation2 + $0x150] sm:$0xff]  ;;  %v2544_v40 = vld [vmem:[#allocation5 + $0x12c] ss:$24 sps:$4 sm:$0xff]   ;;  %v2864_v44 = vpack.c.bf16 %v104_v39, %v102_v38  ;;  %v2551_v59 = vld [vmem:[#allocation5 + $0x160] ss:$24 sps:$4 sm:$0xff]  }
  0x53   :  { %776 = vmatprep.subr.bf16.mxu0 %v2479_v20  ;;  %2421 = vmatprep.subr.bf16.mxu1 %v2479_v20  ;;  %v2532_v20 = vld [vmem:[#allocation5 + $0xcc] ss:$24 sps:$4 sm:$0xff]   ;;  %v2548_v58 = vld [vmem:[#allocation5 + $0x158] ss:$24 sps:$4 sm:$0xff]   ;;  %v2566_v38 = vld [vmem:[#allocation5 + $0x1e8] ss:$24 sps:$4 sm:$0xff]  }
  0x54   :  { %v74_v60 = vld [vmem:[#allocation2 + $0x80] sm:$0xff]  ;;  %v76_v61 = vld [vmem:[#allocation2 + $0x90] sm:$0xff]  ;;  %v79_v4 = vld [vmem:[#allocation2 + $0xa8] sm:$0xff] }
  0x55   :  { %v2556_v0 = vld [vmem:[#allocation5 + $0x18c] ss:$24 sps:$4 sm:$0xff]   ;;  %v2874_v5 = vpack.c.bf16 %v76_v61, %v74_v60  ;;  %v2569_v39 = vld [vmem:[#allocation5 + $0x1f0] ss:$24 sps:$4 sm:$0xff]  }
  0x56   :  { %777 = vmatpush1.bf16.msra.mxu0 %v2481_v21  ;;  %2437 = vmatpush1.bf16.msra.mxu1 %v2481_v21  ;;  %v2535_v21 = vld [vmem:[#allocation5 + $0xd4] ss:$24 sps:$4 sm:$0xff]  }
  0x57   :  { %778 = vmatprep.subr.bf16.mxu0 %v2482_v22  ;;  %2422 = vmatprep.subr.bf16.mxu1 %v2482_v22  ;;  %v71_v22 = vld [vmem:[#allocation2 + $0x68] sm:$0xff] }
  0x58   :  { %v2559_v3 = vld [vmem:[#allocation5 + $0x194] ss:$24 sps:$4 sm:$0xff]  }
  0x59   :  { %v87_v60 = vld [vmem:[#allocation2 + $0xe8] sm:$0xff] }
  0x5a   :  { %779 = vmatpush1.bf16.msra.mxu0 %v2484_v23  ;;  %2438 = vmatpush1.bf16.msra.mxu1 %v2484_v23  ;;  %v2850_v23 = vpack.c.bf16 %v68_v16, %v66_v14  ;;  %v2562_v14 = vld [vmem:[#allocation5 + $0x1bc] ss:$24 sps:$4 sm:$0xff]  }
  0x5b   :  { %780 = vmatprep.subr.bf16.mxu0 %v2485_v24  ;;  %2423 = vmatprep.subr.bf16.mxu1 %v2485_v24  ;;  %v2852_v24 = vpack.c.bf16 %v100_v18, %v98_v17  ;;  %v2565_v16 = vld [vmem:[#allocation5 + $0x1c4] ss:$24 sps:$4 sm:$0xff]  }
  0x5e   :  { %781 = vmatpush1.bf16.msra.mxu0 %v2487_v25  ;;  %2439 = vmatpush1.bf16.msra.mxu1 %v2487_v25  ;;  %v73_v25 = vld [vmem:[#allocation2 + $0x78] sm:$0xff] }
  0x5f   :  { %782 = vmatprep.subr.bf16.mxu0 %v2488_v26  ;;  %2424 = vmatprep.subr.bf16.mxu1 %v2488_v26  ;;  %v103_v26 = vld [vmem:[#allocation2 + $0x168] sm:$0xff] }
  0x62   :  { %783 = vmatpush1.bf16.msra.mxu0 %v2490_v27  ;;  %2440 = vmatpush1.bf16.msra.mxu1 %v2490_v27  ;;  %v105_v27 = vld [vmem:[#allocation2 + $0x178] sm:$0xff] }
  0x63   :  { %784 = vmatprep.subr.bf16.mxu0 %v2491_v28  ;;  %2425 = vmatprep.subr.bf16.mxu1 %v2491_v28  ;;  %v2530_v28 = vld [vmem:[#allocation5 + $0xc8] ss:$24 sps:$4 sm:$0xff]  }
  0x66   :  { %785 = vmatpush1.bf16.msra.mxu0 %v2493_v29  ;;  %2441 = vmatpush1.bf16.msra.mxu1 %v2493_v29  ;;  %v2533_v29 = vld [vmem:[#allocation5 + $0xd0] ss:$24 sps:$4 sm:$0xff]  }
  0x67   :  { %786 = vmatprep.subr.bf16.mxu0 %v2494_v30  ;;  %2426 = vmatprep.subr.bf16.mxu1 %v2494_v30  ;;  %v2538_v30 = vld [vmem:[#allocation5 + $0xfc] ss:$24 sps:$4 sm:$0xff]  }
  0x6a   :  { %787 = vmatpush1.bf16.msra.mxu0 %v2496_v31  ;;  %2442 = vmatpush1.bf16.msra.mxu1 %v2496_v31  ;;  %v2541_v31 = vld [vmem:[#allocation5 + $0x104] ss:$24 sps:$4 sm:$0xff]  }
  0x6b   :  { %788 = vmatprep.subr.bf16.mxu0 %v2497_v32  ;;  %2427 = vmatprep.subr.bf16.mxu1 %v2497_v32  ;;  %v2536_v32 = vld [vmem:[#allocation5 + $0xf8] ss:$24 sps:$4 sm:$0xff]  }
  0x6e   :  { %789 = vmatpush1.bf16.msra.mxu0 %v2499_v33  ;;  %2443 = vmatpush1.bf16.msra.mxu1 %v2499_v33  ;;  %v2539_v33 = vld [vmem:[#allocation5 + $0x100] ss:$24 sps:$4 sm:$0xff]  }
  0x6f   :  { %790 = vmatprep.subr.bf16.mxu0 %v2500_v34  ;;  %2428 = vmatprep.subr.bf16.mxu1 %v2500_v34  ;;  %v2854_v34 = vpack.c.bf16 %v73_v25, %v71_v22  ;;  %v78_v22 = vld [vmem:[#allocation2 + $0xa0] sm:$0xff]  ;;  %v80_v25 = vld [vmem:[#allocation2 + $0xb0] sm:$0xff] }
  0x72   :  { %791 = vmatpush1.bf16.msra.mxu0 %v2502_v35  ;;  %2444 = vmatpush1.bf16.msra.mxu1 %v2502_v35  ;;  %v2856_v35 = vpack.c.bf16 %v105_v27, %v103_v26  ;;  %v110_v26 = vld [vmem:[#allocation2 + $0x1a0] sm:$0xff]  ;;  %v112_v27 = vld [vmem:[#allocation2 + $0x1b0] sm:$0xff] }
  0x73   :  { %792 = vmatprep.subr.bf16.mxu0 %v2503_v36  ;;  %2429 = vmatprep.subr.bf16.mxu1 %v2503_v36  ;;  %v70_v36 = vld [vmem:[#allocation2 + $0x60] sm:$0xff] }
  0x76   :  { %793 = vmatpush1.bf16.msra.mxu0 %v2505_v37  ;;  %2445 = vmatpush1.bf16.msra.mxu1 %v2505_v37  ;;  %v72_v37 = vld [vmem:[#allocation2 + $0x70] sm:$0xff] }
  0x77   :  { %955 = vmatprep.subr.bf16.mxu1 %v2508_v42  ;;  %1148 = vmatprep.subr.bf16.mxu0 %v2511_v43  ;;  %v75_v42 = vld [vmem:[#allocation2 + $0x88] sm:$0xff]  ;;  %v2862_v43 = vpack.c.bf16 %v72_v37, %v70_v36  ;;  %v117_v37 = vld [vmem:[#allocation2 + $0x1d8] sm:$0xff] }
  0x78   :  { %v115_v36 = vld [vmem:[#allocation2 + $0x1c8] sm:$0xff] }
  0x79   :  { %795 = vmatmul.mubr.bf16.vlgmr.msra.gmra.mrb[0].mxu0 %v2826_v45  ;;  %875 = vmatmul.mubr.bf16.vlgmr.msra.gmra.mrb[0].mxu1 %v2828_v46 }
  0x7a   :  { %956 = vmatpush1.bf16.msra.mxu1 %v2506_v50  ;;  %1149 = vmatpush1.bf16.msra.mxu0 %v2509_v51  ;;  %v2542_v50 = vld [vmem:[#allocation5 + $0x128] ss:$24 sps:$4 sm:$0xff]  }
  0x7b   :  { %957 = vmatprep.subr.bf16.mxu1 %v2514_v52  ;;  %1150 = vmatprep.subr.bf16.mxu0 %v2517_v53  ;;  %v2545_v51 = vld [vmem:[#allocation5 + $0x130] ss:$24 sps:$4 sm:$0xff]   ;;  %v2550_v52 = vld [vmem:[#allocation5 + $0x15c] ss:$24 sps:$4 sm:$0xff]  }
  0x7c   :  { %804 = vmatprep.mubr.bf16.mxu0 %v2830_v56  ;;  %884 = vmatprep.mubr.bf16.mxu1 %v2832_v57  ;;  %v2553_v53 = vld [vmem:[#allocation5 + $0x164] ss:$24 sps:$4 sm:$0xff]  }
  0x7e   :  { %958 = vmatpush1.bf16.msra.mxu1 %v2512_v54  ;;  %1151 = vmatpush1.bf16.msra.mxu0 %v2515_v55  ;;  %v2866_v54 = vpack.c.bf16 %v77_v47, %v75_v42  ;;  %v2868_v55 = vpack.c.bf16 %v109_v49, %v107_v48  ;;  %v2892_v47 = vpack.c.bf16 %v117_v37, %v115_v36  ;;  %v2572_v48 = vld [vmem:[#allocation5 + $0x218] ss:$24 sps:$4 sm:$0xff]   ;;  %v2598_v36 = vld [vmem:[#allocation5 + $0x2dc] ss:$24 sps:$4 sm:$0xff]  }
  0x7f   :  { %959 = vmatprep.subr.bf16.mxu1 %v2520_v62  ;;  %1152 = vmatprep.subr.bf16.mxu0 %v2523_v63  ;;  %v106_v62 = vld [vmem:[#allocation2 + $0x180] sm:$0xff]  ;;  %v108_v63 = vld [vmem:[#allocation2 + $0x190] sm:$0xff] }
  0x80   :  { %v2575_v49 = vld [vmem:[#allocation5 + $0x220] ss:$24 sps:$4 sm:$0xff]   ;;  %v2601_v37 = vld [vmem:[#allocation5 + $0x2e4] ss:$24 sps:$4 sm:$0xff]  }
  0x81   :  { %805 = vmatmul.mubr.bf16.gmra.mrb[4].mxu0 %v2838_v1  ;;  %885 = vmatmul.mubr.bf16.gmra.mrb[4].mxu1 %v2840_v2 }
  0x82   :  { %960 = vmatpush1.bf16.msra.mxu1 %v2518_v6  ;;  %1153 = vmatpush1.bf16.msra.mxu0 %v2521_v7  ;;  %v2876_v6 = vpack.c.bf16 %v108_v63, %v106_v62  ;;  %v81_v7 = vld [vmem:[#allocation2 + $0xb8] sm:$0xff] }
  0x83   :  { %961 = vmatprep.subr.bf16.mxu1 %v2526_v8  ;;  %1154 = vmatprep.subr.bf16.mxu0 %v2529_v9  ;;  %v111_v8 = vld [vmem:[#allocation2 + $0x1a8] sm:$0xff]  ;;  %v113_v9 = vld [vmem:[#allocation2 + $0x1b8] sm:$0xff]  ;;  %v2878_v17 = vpack.c.bf16 %v81_v7, %v79_v4 }
  0x84   :  { %814 = vmatprep.mubr.bf16.mxu0 %v2842_v12  ;;  %894 = vmatprep.mubr.bf16.mxu1 %v2844_v13  ;;  %v2880_v18 = vpack.c.bf16 %v113_v9, %v111_v8  ;;  %v89_v63 = vld [vmem:[#allocation2 + $0xf8] sm:$0xff]  ;;  %v2578_v4 = vld [vmem:[#allocation5 + $0x248] ss:$24 sps:$4 sm:$0xff]  }
  0x85   :  { %v2581_v7 = vld [vmem:[#allocation5 + $0x250] ss:$24 sps:$4 sm:$0xff]   ;;  %v2586_v8 = vld [vmem:[#allocation5 + $0x27c] ss:$24 sps:$4 sm:$0xff]  }
  0x86   :  { %962 = vmatpush1.bf16.msra.mxu1 %v2524_v10  ;;  %1155 = vmatpush1.bf16.msra.mxu0 %v2527_v11  ;;  %v2554_v10 = vld [vmem:[#allocation5 + $0x188] ss:$24 sps:$4 sm:$0xff]   ;;  %v2589_v9 = vld [vmem:[#allocation5 + $0x284] ss:$24 sps:$4 sm:$0xff]  }
  0x87   :  { %963 = vmatprep.subr.bf16.mxu1 %v2532_v20  ;;  %1156 = vmatprep.subr.bf16.mxu0 %v2535_v21  ;;  %v2557_v11 = vld [vmem:[#allocation5 + $0x190] ss:$24 sps:$4 sm:$0xff]   ;;  %v2563_v21 = vld [vmem:[#allocation5 + $0x1c0] ss:$24 sps:$4 sm:$0xff]  }
  0x88   :  { %v2560_v20 = vld [vmem:[#allocation5 + $0x1b8] ss:$24 sps:$4 sm:$0xff]  }
  0x89   :  { %815 = vmatmul.mubr.bf16.gmra.mrb[8].mxu0 %v2850_v23  ;;  %895 = vmatmul.mubr.bf16.gmra.mrb[8].mxu1 %v2852_v24 }
  0x8a   :  { %964 = vmatpush1.bf16.msra.mxu1 %v2530_v28  ;;  %1157 = vmatpush1.bf16.msra.mxu0 %v2533_v29  ;;  %v2568_v28 = vld [vmem:[#allocation5 + $0x1ec] ss:$24 sps:$4 sm:$0xff]  }
  0x8b   :  { %965 = vmatprep.subr.bf16.mxu1 %v2538_v30  ;;  %1158 = vmatprep.subr.bf16.mxu0 %v2541_v31  ;;  %v2571_v29 = vld [vmem:[#allocation5 + $0x1f4] ss:$24 sps:$4 sm:$0xff]   ;;  %v2886_v31 = vpack.c.bf16 %v80_v25, %v78_v22  ;;  %v118_v22 = vld [vmem:[#allocation2 + $0x1e0] sm:$0xff] }
  0x8c   :  { %824 = vmatprep.mubr.bf16.mxu0 %v2854_v34  ;;  %904 = vmatprep.mubr.bf16.mxu1 %v2856_v35  ;;  %v83_v30 = vld [vmem:[#allocation2 + $0xc8] sm:$0xff]  ;;  %v120_v25 = vld [vmem:[#allocation2 + $0x1f0] sm:$0xff] }
  0x8e   :  { %966 = vmatpush1.bf16.msra.mxu1 %v2536_v32  ;;  %1159 = vmatpush1.bf16.msra.mxu0 %v2539_v33  ;;  %v2888_v32 = vpack.c.bf16 %v112_v27, %v110_v26  ;;  %v85_v33 = vld [vmem:[#allocation2 + $0xd8] sm:$0xff]  ;;  %v2592_v26 = vld [vmem:[#allocation5 + $0x2ac] ss:$24 sps:$4 sm:$0xff]  }
  0x8f   :  { %967 = vmatprep.subr.bf16.mxu1 %v2544_v40  ;;  %1160 = vmatprep.subr.bf16.mxu0 %v2547_v41  ;;  %v2574_v40 = vld [vmem:[#allocation5 + $0x21c] ss:$24 sps:$4 sm:$0xff]   ;;  %v2890_v42 = vpack.c.bf16 %v85_v33, %v83_v30  ;;  %v2590_v30 = vld [vmem:[#allocation5 + $0x2a8] ss:$24 sps:$4 sm:$0xff]  }
  0x90   :  { %v2577_v41 = vld [vmem:[#allocation5 + $0x224] ss:$24 sps:$4 sm:$0xff]   ;;  %v2595_v27 = vld [vmem:[#allocation5 + $0x2b4] ss:$24 sps:$4 sm:$0xff]   ;;  %v2593_v33 = vld [vmem:[#allocation5 + $0x2b0] ss:$24 sps:$4 sm:$0xff]  }
  0x91   :  { %825 = vmatmul.mubr.bf16.gmra.mrb[12].mxu0 %v2862_v43  ;;  %905 = vmatmul.mubr.bf16.gmra.mrb[12].mxu1 %v2864_v44 }
  0x92   :  { %968 = vmatpush1.bf16.msra.mxu1 %v2542_v50  ;;  %1161 = vmatpush1.bf16.msra.mxu0 %v2545_v51  ;;  %v82_v50 = vld [vmem:[#allocation2 + $0xc0] sm:$0xff]  ;;  %v84_v51 = vld [vmem:[#allocation2 + $0xd0] sm:$0xff] }
  0x93   :  { %969 = vmatprep.subr.bf16.mxu1 %v2550_v52  ;;  %1162 = vmatprep.subr.bf16.mxu0 %v2553_v53  ;;  %v114_v52 = vld [vmem:[#allocation2 + $0x1c0] sm:$0xff]  ;;  %v116_v53 = vld [vmem:[#allocation2 + $0x1d0] sm:$0xff]  ;;  %v2898_v61 = vpack.c.bf16 %v84_v51, %v82_v50 }
  0x94   :  { %834 = vmatprep.mubr.bf16.mxu0 %v2866_v54  ;;  %914 = vmatprep.mubr.bf16.mxu1 %v2868_v55  ;;  %v2900_v62 = vpack.c.bf16 %v116_v53, %v114_v52 }
  0x96   :  { %970 = vmatpush1.bf16.msra.mxu1 %v2548_v58  ;;  %1163 = vmatpush1.bf16.msra.mxu0 %v2551_v59  ;;  %v2580_v58 = vld [vmem:[#allocation5 + $0x24c] ss:$24 sps:$4 sm:$0xff]  }
  0x97   :  { %971 = vmatprep.subr.bf16.mxu1 %v2556_v0  ;;  %1164 = vmatprep.subr.bf16.mxu0 %v2559_v3  ;;  %v2583_v59 = vld [vmem:[#allocation5 + $0x254] ss:$24 sps:$4 sm:$0xff]   ;;  %v121_v3 = vld [vmem:[#allocation2 + $0x1f8] sm:$0xff] }
  0x98   :  { %v119_v0 = vld [vmem:[#allocation2 + $0x1e8] sm:$0xff] }
  0x99   :  { %835 = vmatmul.mubr.bf16.gmra.mrb[16].mxu0 %v2874_v5  ;;  %915 = vmatmul.mubr.bf16.gmra.mrb[16].mxu1 %v2876_v6 }
  0x9a   :  { %972 = vmatpush1.bf16.msra.mxu1 %v2554_v10  ;;  %1165 = vmatpush1.bf16.msra.mxu0 %v2557_v11  ;;  %v2902_v10 = vpack.c.bf16 %v89_v63, %v87_v60  ;;  %v2904_v11 = vpack.c.bf16 %v121_v3, %v119_v0 }
  0x9b   :  { %973 = vmatprep.subr.bf16.mxu1 %v2562_v14  ;;  %1166 = vmatprep.subr.bf16.mxu0 %v2565_v16  ;;  %v2584_v14 = vld [vmem:[#allocation5 + $0x278] ss:$24 sps:$4 sm:$0xff]  }
  0x9c   :  { %844 = vmatprep.mubr.bf16.mxu0 %v2878_v17  ;;  %924 = vmatprep.mubr.bf16.mxu1 %v2880_v18  ;;  %v2587_v16 = vld [vmem:[#allocation5 + $0x280] ss:$24 sps:$4 sm:$0xff]  }
  0x9e   :  { %974 = vmatpush1.bf16.msra.mxu1 %v2560_v20  ;;  %1167 = vmatpush1.bf16.msra.mxu0 %v2563_v21  ;;  %v86_v20 = vld [vmem:[#allocation2 + $0xe0] sm:$0xff]  ;;  %v88_v21 = vld [vmem:[#allocation2 + $0xf0] sm:$0xff] }
  0x9f   :  { %975 = vmatprep.subr.bf16.mxu1 %v2568_v28  ;;  %1168 = vmatprep.subr.bf16.mxu0 %v2571_v29  ;;  %v136_v28 = vpack.c.bf16 %v88_v21, %v86_v20  ;;  %v2910_v29 = vpack.c.bf16 %v120_v25, %v118_v22 }
  0xa1   :  { %845 = vmatmul.mubr.bf16.gmra.mrb[20].mxu0 %v2886_v31  ;;  %925 = vmatmul.mubr.bf16.gmra.mrb[20].mxu1 %v2888_v32 }
  0xa2   :  { %976 = vmatpush1.bf16.msra.mxu1 %v2566_v38  ;;  %1169 = vmatpush1.bf16.msra.mxu0 %v2569_v39  ;;  %v2596_v38 = vld [vmem:[#allocation5 + $0x2d8] ss:$24 sps:$4 sm:$0xff]  }
  0xa3   :  { %977 = vmatprep.subr.bf16.mxu1 %v2574_v40  ;;  %1170 = vmatprep.subr.bf16.mxu0 %v2577_v41  ;;  %v2599_v39 = vld [vmem:[#allocation5 + $0x2e0] ss:$24 sps:$4 sm:$0xff]  }
  0xa4   :  { %854 = vmatprep.mubr.bf16.mxu0 %v2890_v42  ;;  %934 = vmatprep.mubr.bf16.mxu1 %v2892_v47 }
  0xa6   :  { %978 = vmatpush1.bf16.msra.mxu1 %v2572_v48  ;;  %1171 = vmatpush1.bf16.msra.mxu0 %v2575_v49 }
  0xa7   :  { %979 = vmatprep.subr.bf16.mxu1 %v2580_v58  ;;  %1172 = vmatprep.subr.bf16.mxu0 %v2583_v59 }
  0xa9   :  { %855 = vmatmul.mubr.bf16.gmra.mrb[24].mxu0 %v2898_v61  ;;  %935 = vmatmul.mubr.bf16.gmra.mrb[24].mxu1 %v2900_v62 }
  0xaa   :  { %980 = vmatpush1.bf16.msra.mxu1 %v2578_v4  ;;  %1173 = vmatpush1.bf16.msra.mxu0 %v2581_v7 }
  0xab   :  { %981 = vmatprep.subr.bf16.mxu1 %v2586_v8  ;;  %1174 = vmatprep.subr.bf16.mxu0 %v2589_v9 }
  0xac   :  { %864 = vmatprep.mubr.bf16.mxu0 %v2902_v10  ;;  %944 = vmatprep.mubr.bf16.mxu1 %v2904_v11 }
  0xae   :  { %982 = vmatpush1.bf16.msra.mxu1 %v2584_v14  ;;  %1175 = vmatpush1.bf16.msra.mxu0 %v2587_v16 }
  0xaf   :  { %983 = vmatprep.subr.bf16.mxu1 %v2592_v26  ;;  %1176 = vmatprep.subr.bf16.mxu0 %v2595_v27 }
  0xb1   :  { %865 = vmatmul.mubr.bf16.gmra.mrb[28].mxu0 %v136_v28  ;;  %945 = vmatmul.mubr.bf16.gmra.mrb[28].mxu1 %v2910_v29 }
  0xb2   :  { %984 = vmatpush1.bf16.msra.mxu1 %v2590_v30  ;;  %1177 = vmatpush1.bf16.msra.mxu0 %v2593_v33 }
  0xb3   :  { %985 = vmatprep.subr.bf16.mxu1 %v2598_v36  ;;  %1178 = vmatprep.subr.bf16.mxu0 %v2601_v37 }
  0xb4   :  { %987 = vmatprep.mubr.bf16.mxu1 %v2820_v15  ;;  %1180 = vmatprep.mubr.bf16.mxu0 %v2820_v15  ;;  %v252_v15 = vlaneseq }
  0xb6   :  { %986 = vmatpush1.bf16.msra.mxu1 %v2596_v38  ;;  %1179 = vmatpush1.bf16.msra.mxu0 %v2599_v39 }
  0xb9   :  { %988 = vmatmul.mubr.bf16.vlgmr.msra.gmra.mrb[32].mxu1 %v2826_v45  ;;  %1181 = vmatmul.mubr.bf16.vlgmr.msra.gmra.mrb[32].mxu0 %v2826_v45  ;;  %v253_v45 = vshrl.u32 %v252_v15, 7 }
  0xba   :  { %997 = vmatprep.mubr.bf16.mxu1 %v2830_v56  ;;  %1190 = vmatprep.mubr.bf16.mxu0 %v2830_v56 }
  0xbb   :  { %v270_v56 = vsub.s32 4, %v253_v45 }
  0xc1   :  { %998 = vmatmul.mubr.bf16.gmra.mrb[36].mxu1 %v2838_v1  ;;  %1191 = vmatmul.mubr.bf16.gmra.mrb[36].mxu0 %v2838_v1  ;;  %v274_v1 = vsub.s32 5, %v253_v45 }
  0xc2   :  { %1007 = vmatprep.mubr.bf16.mxu1 %v2842_v12  ;;  %1200 = vmatprep.mubr.bf16.mxu0 %v2842_v12 }
  0xc9   :  { %1008 = vmatmul.mubr.bf16.gmra.mrb[40].mxu1 %v2850_v23  ;;  %1201 = vmatmul.mubr.bf16.gmra.mrb[40].mxu0 %v2850_v23 }
  0xca   :  { %1017 = vmatprep.mubr.bf16.mxu1 %v2854_v34  ;;  %1210 = vmatprep.mubr.bf16.mxu0 %v2854_v34  ;;  %v258_v34 = vsub.s32 1, %v253_v45 }
  0xd1   :  { %1018 = vmatmul.mubr.bf16.gmra.mrb[44].mxu1 %v2862_v43  ;;  %1211 = vmatmul.mubr.bf16.gmra.mrb[44].mxu0 %v2862_v43 }
  0xd2   :  { %1027 = vmatprep.mubr.bf16.mxu1 %v2866_v54  ;;  %1220 = vmatprep.mubr.bf16.mxu0 %v2866_v54 }
  0xd9   :  { %1028 = vmatmul.mubr.bf16.gmra.mrb[48].mxu1 %v2874_v5  ;;  %1221 = vmatmul.mubr.bf16.gmra.mrb[48].mxu0 %v2874_v5 }
  0xda   :  { %1037 = vmatprep.mubr.bf16.mxu1 %v2878_v17  ;;  %1230 = vmatprep.mubr.bf16.mxu0 %v2878_v17 }
  0xe1   :  { %1038 = vmatmul.mubr.bf16.gmra.mrb[52].mxu1 %v2886_v31  ;;  %1231 = vmatmul.mubr.bf16.gmra.mrb[52].mxu0 %v2886_v31 }
  0xe2   :  { %1047 = vmatprep.mubr.bf16.mxu1 %v2890_v42  ;;  %1240 = vmatprep.mubr.bf16.mxu0 %v2890_v42 }
  0xe9   :  { %1048 = vmatmul.mubr.bf16.gmra.mrb[56].mxu1 %v2898_v61  ;;  %1241 = vmatmul.mubr.bf16.gmra.mrb[56].mxu0 %v2898_v61 }
  0xea   :  { %1057 = vmatprep.mubr.bf16.mxu1 %v2902_v10  ;;  %1250 = vmatprep.mubr.bf16.mxu0 %v2902_v10 }
  0xf1   :  { %1058 = vmatmul.mubr.bf16.gmra.mrb[60].mxu1 %v136_v28  ;;  %1251 = vmatmul.mubr.bf16.gmra.mrb[60].mxu0 %v136_v28 }
  0xf2   :  { %1067 = vmatprep.mubr.bf16.mxu1 %v2822_v19  ;;  %1260 = vmatprep.mubr.bf16.mxu0 %v2822_v19  ;;  %v262_v19 = vsub.s32 2, %v253_v45 }
  0xf9   :  { %1068 = vmatmul.mubr.bf16.gmra.mrb[64].mxu1 %v2828_v46  ;;  %1261 = vmatmul.mubr.bf16.gmra.mrb[64].mxu0 %v2828_v46  ;;  %v250_v46 = vld [vmem:[#allocation7] sm:$0x3f] }
  0xfa   :  { %1077 = vmatprep.mubr.bf16.mxu1 %v2832_v57  ;;  %1270 = vmatprep.mubr.bf16.mxu0 %v2832_v57  ;;  %v266_v57 = vsub.s32 3, %v253_v45  ;;  %v2959_v12 = vrot.slane %v250_v46, %v270_v56  ;;  %v2963_v23 = vrot.slane %v250_v46, %v274_v1  ;;  %v2985_v43 = vrot.slane %v250_v46, %v258_v34 }
 0x101   :  { %1078 = vmatmul.mubr.bf16.gmra.mrb[68].mxu1 %v2840_v2  ;;  %1271 = vmatmul.mubr.bf16.gmra.mrb[68].mxu0 %v2840_v2  ;;  %v2957_v2 = vrot.slane %v250_v46, %v262_v19 }
 0x102   :  { %1087 = vmatprep.mubr.bf16.mxu1 %v2844_v13  ;;  %1280 = vmatprep.mubr.bf16.mxu0 %v2844_v13  ;;  %v2961_v13 = vrot.slane %v250_v46, %v266_v57 }
 0x109   :  { %1088 = vmatmul.mubr.bf16.gmra.mrb[72].mxu1 %v2852_v24  ;;  %1281 = vmatmul.mubr.bf16.gmra.mrb[72].mxu0 %v2852_v24  ;;  %v254_v24 = vsub.s32 0, %v253_v45 }
 0x10a   :  { %1097 = vmatprep.mubr.bf16.mxu1 %v2856_v35  ;;  %1290 = vmatprep.mubr.bf16.mxu0 %v2856_v35 }
 0x10b   :  { %v2983_v35 = vrot.slane %v250_v46, %v254_v24 }
 0x111   :  { %1098 = vmatmul.mubr.bf16.gmra.mrb[76].mxu1 %v2864_v44  ;;  %1291 = vmatmul.mubr.bf16.gmra.mrb[76].mxu0 %v2864_v44 }
 0x112   :  { %1107 = vmatprep.mubr.bf16.mxu1 %v2868_v55  ;;  %1300 = vmatprep.mubr.bf16.mxu0 %v2868_v55 }
 0x119   :  { %1108 = vmatmul.mubr.bf16.gmra.mrb[80].mxu1 %v2876_v6  ;;  %1301 = vmatmul.mubr.bf16.gmra.mrb[80].mxu0 %v2876_v6 }
 0x11a   :  { %1117 = vmatprep.mubr.bf16.mxu1 %v2880_v18  ;;  %1310 = vmatprep.mubr.bf16.mxu0 %v2880_v18 }
 0x121   :  { %1118 = vmatmul.mubr.bf16.gmra.mrb[84].mxu1 %v2888_v32  ;;  %1311 = vmatmul.mubr.bf16.gmra.mrb[84].mxu0 %v2888_v32 }
 0x122   :  { %1127 = vmatprep.mubr.bf16.mxu1 %v2892_v47  ;;  %1320 = vmatprep.mubr.bf16.mxu0 %v2892_v47 }
 0x129   :  { %1128 = vmatmul.mubr.bf16.gmra.mrb[88].mxu1 %v2900_v62  ;;  %1321 = vmatmul.mubr.bf16.gmra.mrb[88].mxu0 %v2900_v62 }
 0x12a   :  { %1137 = vmatprep.mubr.bf16.mxu1 %v2904_v11  ;;  %1330 = vmatprep.mubr.bf16.mxu0 %v2904_v11 }
 0x131   :  { %1138 = vmatmul.mubr.bf16.gmra.mrb[92].mxu1 %v2910_v29  ;;  %1331 = vmatmul.mubr.bf16.gmra.mrb[92].mxu0 %v2910_v29 }
 0x14c   :  { %v796_v44 = vpop.f32.mrb[0].mxu0  ;;  %v876_v54 = vpop.f32.mrb[0].mxu1 }
 0x14d   :  { %v797_v55 = vadd.f32 %v796_v44, %v2983_v35  ;;  %v877_v5 = vadd.f32 %v876_v54, %v2983_v35  ;;  %v798_v6 = vpop.f32.mrb[1].mxu0  ;;  %v878_v17 = vpop.f32.mrb[1].mxu1 }
 0x14e   :  { %v799_v18 = vadd.f32 %v798_v6, %v2985_v43  ;;  %v879_v31 = vadd.f32 %v878_v17, %v2985_v43  ;;  %v800_v32 = vpop.f32.mrb[2].mxu0  ;;  %v880_v40 = vpop.f32.mrb[2].mxu1 }
 0x14f   :  { %v1341_v41 = vmul.f32 0.125, %v797_v55  ;;  %v1373_v42 = vmul.f32 0.125, %v877_v5  ;;  %v801_v47 = vadd.f32 %v800_v32, %v2983_v35  ;;  %v881_v48 = vadd.f32 %v880_v40, %v2983_v35  ;;  %v802_v49 = vpop.f32.mrb[3].mxu0  ;;  %v882_v50 = vpop.f32.mrb[3].mxu1 }
 0x150   :  { %v1342_v51 = vmul.f32 0.125, %v799_v18  ;;  %v1374_v52 = vmul.f32 0.125, %v879_v31  ;;  %v803_v53 = vadd.f32 %v802_v49, %v2985_v43  ;;  %v883_v58 = vadd.f32 %v882_v50, %v2985_v43 }
 0x151   :  { %v1343_v59 = vmul.f32 0.125, %v801_v47  ;;  %v1375_v60 = vmul.f32 0.125, %v881_v48 }
 0x152   :  { %v2318_v61 = vpack.c.bf16 %v1342_v51, %v1341_v41  ;;  %v2334_v62 = vpack.c.bf16 %v1374_v52, %v1373_v42  ;;  %v1344_v63 = vmul.f32 0.125, %v803_v53  ;;  %v1376_v0 = vmul.f32 0.125, %v883_v58 }
 0x154   :  { %1597 = vst [vmem:[#allocation8] sm:$0xff] %v2318_v61  ;;  %1613 = vst [vmem:[#allocation8 + $0x80] sm:$0xff] %v2334_v62  ;;  %v2319_v3 = vpack.c.bf16 %v1344_v63, %v1343_v59  ;;  %v2335_v4 = vpack.c.bf16 %v1376_v0, %v1375_v60  ;;  %v806_v7 = vpop.f32.mrb[4].mxu0  ;;  %v886_v8 = vpop.f32.mrb[4].mxu1 }
 0x155   :  { %v807_v9 = vadd.f32 %v806_v7, %v2983_v35  ;;  %v887_v10 = vadd.f32 %v886_v8, %v2983_v35  ;;  %v808_v11 = vpop.f32.mrb[5].mxu0  ;;  %v888_v14 = vpop.f32.mrb[5].mxu1 }
 0x156   :  { %1598 = vst [vmem:[#allocation8 + $0x8] sm:$0xff] %v2319_v3  ;;  %1614 = vst [vmem:[#allocation8 + $0x88] sm:$0xff] %v2335_v4  ;;  %v809_v16 = vadd.f32 %v808_v11, %v2985_v43  ;;  %v889_v20 = vadd.f32 %v888_v14, %v2985_v43  ;;  %v810_v21 = vpop.f32.mrb[6].mxu0  ;;  %v890_v22 = vpop.f32.mrb[6].mxu1 }
 0x157   :  { %v1345_v25 = vmul.f32 0.125, %v807_v9  ;;  %v1377_v26 = vmul.f32 0.125, %v887_v10  ;;  %v811_v27 = vadd.f32 %v810_v21, %v2983_v35  ;;  %v891_v28 = vadd.f32 %v890_v22, %v2983_v35  ;;  %v812_v29 = vpop.f32.mrb[7].mxu0  ;;  %v892_v30 = vpop.f32.mrb[7].mxu1 }
 0x158   :  { %v1346_v33 = vmul.f32 0.125, %v809_v16  ;;  %v1378_v36 = vmul.f32 0.125, %v889_v20  ;;  %v813_v37 = vadd.f32 %v812_v29, %v2985_v43  ;;  %v893_v38 = vadd.f32 %v892_v30, %v2985_v43 }
 0x159   :  { %v1347_v39 = vmul.f32 0.125, %v811_v27  ;;  %v1379_v15 = vmul.f32 0.125, %v891_v28 }
 0x15a   :  { %v2320_v45 = vpack.c.bf16 %v1346_v33, %v1345_v25  ;;  %v2336_v19 = vpack.c.bf16 %v1378_v36, %v1377_v26  ;;  %v1348_v46 = vmul.f32 0.125, %v813_v37  ;;  %v1380_v56 = vmul.f32 0.125, %v893_v38 }
 0x15c   :  { %1599 = vst [vmem:[#allocation8 + $0x10] sm:$0xff] %v2320_v45  ;;  %1615 = vst [vmem:[#allocation8 + $0x90] sm:$0xff] %v2336_v19  ;;  %v2321_v57 = vpack.c.bf16 %v1348_v46, %v1347_v39  ;;  %v2337_v1 = vpack.c.bf16 %v1380_v56, %v1379_v15  ;;  %v816_v24 = vpop.f32.mrb[8].mxu0  ;;  %v896_v34 = vpop.f32.mrb[8].mxu1 }
 0x15d   :  { %v817_v44 = vadd.f32 %v816_v24, %v2983_v35  ;;  %v897_v54 = vadd.f32 %v896_v34, %v2983_v35  ;;  %v818_v55 = vpop.f32.mrb[9].mxu0  ;;  %v898_v5 = vpop.f32.mrb[9].mxu1 }
 0x15e   :  { %1600 = vst [vmem:[#allocation8 + $0x18] sm:$0xff] %v2321_v57  ;;  %1616 = vst [vmem:[#allocation8 + $0x98] sm:$0xff] %v2337_v1  ;;  %v819_v6 = vadd.f32 %v818_v55, %v2985_v43  ;;  %v899_v17 = vadd.f32 %v898_v5, %v2985_v43  ;;  %v820_v18 = vpop.f32.mrb[10].mxu0  ;;  %v900_v31 = vpop.f32.mrb[10].mxu1 }
 0x15f   :  { %v1349_v32 = vmul.f32 0.125, %v817_v44  ;;  %v1381_v40 = vmul.f32 0.125, %v897_v54  ;;  %v821_v41 = vadd.f32 %v820_v18, %v2983_v35  ;;  %v901_v42 = vadd.f32 %v900_v31, %v2983_v35  ;;  %v822_v47 = vpop.f32.mrb[11].mxu0  ;;  %v902_v48 = vpop.f32.mrb[11].mxu1 }
 0x160   :  { %v1350_v49 = vmul.f32 0.125, %v819_v6  ;;  %v1382_v50 = vmul.f32 0.125, %v899_v17  ;;  %v823_v51 = vadd.f32 %v822_v47, %v2985_v43  ;;  %v903_v52 = vadd.f32 %v902_v48, %v2985_v43 }
 0x161   :  { %v1351_v53 = vmul.f32 0.125, %v821_v41  ;;  %v1383_v58 = vmul.f32 0.125, %v901_v42 }
 0x162   :  { %v2322_v59 = vpack.c.bf16 %v1350_v49, %v1349_v32  ;;  %v2338_v60 = vpack.c.bf16 %v1382_v50, %v1381_v40  ;;  %v1352_v61 = vmul.f32 0.125, %v823_v51  ;;  %v1384_v62 = vmul.f32 0.125, %v903_v52 }
 0x164   :  { %1601 = vst [vmem:[#allocation8 + $0x20] sm:$0xff] %v2322_v59  ;;  %1617 = vst [vmem:[#allocation8 + $0xa0] sm:$0xff] %v2338_v60  ;;  %v2323_v63 = vpack.c.bf16 %v1352_v61, %v1351_v53  ;;  %v2339_v0 = vpack.c.bf16 %v1384_v62, %v1383_v58  ;;  %v826_v3 = vpop.f32.mrb[12].mxu0  ;;  %v906_v4 = vpop.f32.mrb[12].mxu1 }
 0x165   :  { %v827_v7 = vadd.f32 %v826_v3, %v2983_v35  ;;  %v907_v8 = vadd.f32 %v906_v4, %v2983_v35  ;;  %v828_v9 = vpop.f32.mrb[13].mxu0  ;;  %v908_v10 = vpop.f32.mrb[13].mxu1 }
 0x166   :  { %1602 = vst [vmem:[#allocation8 + $0x28] sm:$0xff] %v2323_v63  ;;  %1618 = vst [vmem:[#allocation8 + $0xa8] sm:$0xff] %v2339_v0  ;;  %v829_v11 = vadd.f32 %v828_v9, %v2985_v43  ;;  %v909_v14 = vadd.f32 %v908_v10, %v2985_v43  ;;  %v830_v16 = vpop.f32.mrb[14].mxu0  ;;  %v910_v20 = vpop.f32.mrb[14].mxu1 }
 0x167   :  { %v1353_v21 = vmul.f32 0.125, %v827_v7  ;;  %v1385_v22 = vmul.f32 0.125, %v907_v8  ;;  %v831_v25 = vadd.f32 %v830_v16, %v2983_v35  ;;  %v911_v26 = vadd.f32 %v910_v20, %v2983_v35  ;;  %v832_v27 = vpop.f32.mrb[15].mxu0  ;;  %v912_v28 = vpop.f32.mrb[15].mxu1 }
 0x168   :  { %v1354_v29 = vmul.f32 0.125, %v829_v11  ;;  %v1386_v30 = vmul.f32 0.125, %v909_v14  ;;  %v833_v33 = vadd.f32 %v832_v27, %v2985_v43  ;;  %v913_v36 = vadd.f32 %v912_v28, %v2985_v43 }
 0x169   :  { %v1355_v37 = vmul.f32 0.125, %v831_v25  ;;  %v1387_v38 = vmul.f32 0.125, %v911_v26 }
 0x16a   :  { %v2324_v39 = vpack.c.bf16 %v1354_v29, %v1353_v21  ;;  %v2340_v15 = vpack.c.bf16 %v1386_v30, %v1385_v22  ;;  %v1356_v45 = vmul.f32 0.125, %v833_v33  ;;  %v1388_v19 = vmul.f32 0.125, %v913_v36 }
 0x16c   :  { %1603 = vst [vmem:[#allocation8 + $0x30] sm:$0xff] %v2324_v39  ;;  %1619 = vst [vmem:[#allocation8 + $0xb0] sm:$0xff] %v2340_v15  ;;  %v2325_v46 = vpack.c.bf16 %v1356_v45, %v1355_v37  ;;  %v2341_v56 = vpack.c.bf16 %v1388_v19, %v1387_v38  ;;  %v836_v57 = vpop.f32.mrb[16].mxu0  ;;  %v916_v1 = vpop.f32.mrb[16].mxu1 }
 0x16d   :  { %v837_v24 = vadd.f32 %v836_v57, %v2983_v35  ;;  %v917_v34 = vadd.f32 %v916_v1, %v2983_v35  ;;  %v838_v44 = vpop.f32.mrb[17].mxu0  ;;  %v918_v54 = vpop.f32.mrb[17].mxu1 }
 0x16e   :  { %1604 = vst [vmem:[#allocation8 + $0x38] sm:$0xff] %v2325_v46  ;;  %1620 = vst [vmem:[#allocation8 + $0xb8] sm:$0xff] %v2341_v56  ;;  %v839_v55 = vadd.f32 %v838_v44, %v2985_v43  ;;  %v919_v5 = vadd.f32 %v918_v54, %v2985_v43  ;;  %v840_v6 = vpop.f32.mrb[18].mxu0  ;;  %v920_v17 = vpop.f32.mrb[18].mxu1 }
 0x16f   :  { %v1357_v18 = vmul.f32 0.125, %v837_v24  ;;  %v1389_v31 = vmul.f32 0.125, %v917_v34  ;;  %v841_v32 = vadd.f32 %v840_v6, %v2983_v35  ;;  %v921_v40 = vadd.f32 %v920_v17, %v2983_v35  ;;  %v842_v41 = vpop.f32.mrb[19].mxu0  ;;  %v922_v42 = vpop.f32.mrb[19].mxu1 }
 0x170   :  { %v1358_v47 = vmul.f32 0.125, %v839_v55  ;;  %v1390_v48 = vmul.f32 0.125, %v919_v5  ;;  %v843_v49 = vadd.f32 %v842_v41, %v2985_v43  ;;  %v923_v50 = vadd.f32 %v922_v42, %v2985_v43 }
 0x171   :  { %v1359_v51 = vmul.f32 0.125, %v841_v32  ;;  %v1391_v52 = vmul.f32 0.125, %v921_v40 }
 0x172   :  { %v2326_v53 = vpack.c.bf16 %v1358_v47, %v1357_v18  ;;  %v2342_v58 = vpack.c.bf16 %v1390_v48, %v1389_v31  ;;  %v1360_v59 = vmul.f32 0.125, %v843_v49  ;;  %v1392_v60 = vmul.f32 0.125, %v923_v50 }
 0x174   :  { %1605 = vst [vmem:[#allocation8 + $0x40] sm:$0xff] %v2326_v53  ;;  %1621 = vst [vmem:[#allocation8 + $0xc0] sm:$0xff] %v2342_v58  ;;  %v2327_v61 = vpack.c.bf16 %v1360_v59, %v1359_v51  ;;  %v2343_v62 = vpack.c.bf16 %v1392_v60, %v1391_v52  ;;  %v846_v63 = vpop.f32.mrb[20].mxu0  ;;  %v926_v0 = vpop.f32.mrb[20].mxu1 }
 0x175   :  { %v847_v3 = vadd.f32 %v846_v63, %v2983_v35  ;;  %v927_v4 = vadd.f32 %v926_v0, %v2983_v35  ;;  %v848_v7 = vpop.f32.mrb[21].mxu0  ;;  %v928_v8 = vpop.f32.mrb[21].mxu1 }
 0x176   :  { %1606 = vst [vmem:[#allocation8 + $0x48] sm:$0xff] %v2327_v61  ;;  %1622 = vst [vmem:[#allocation8 + $0xc8] sm:$0xff] %v2343_v62  ;;  %v849_v9 = vadd.f32 %v848_v7, %v2985_v43  ;;  %v929_v10 = vadd.f32 %v928_v8, %v2985_v43  ;;  %v850_v11 = vpop.f32.mrb[22].mxu0  ;;  %v930_v14 = vpop.f32.mrb[22].mxu1 }
 0x177   :  { %v1361_v16 = vmul.f32 0.125, %v847_v3  ;;  %v1393_v20 = vmul.f32 0.125, %v927_v4  ;;  %v851_v21 = vadd.f32 %v850_v11, %v2983_v35  ;;  %v931_v22 = vadd.f32 %v930_v14, %v2983_v35  ;;  %v852_v25 = vpop.f32.mrb[23].mxu0  ;;  %v932_v26 = vpop.f32.mrb[23].mxu1 }
 0x178   :  { %v1362_v27 = vmul.f32 0.125, %v849_v9  ;;  %v1394_v28 = vmul.f32 0.125, %v929_v10  ;;  %v853_v29 = vadd.f32 %v852_v25, %v2985_v43  ;;  %v933_v30 = vadd.f32 %v932_v26, %v2985_v43 }
 0x179   :  { %v1363_v33 = vmul.f32 0.125, %v851_v21  ;;  %v1395_v36 = vmul.f32 0.125, %v931_v22 }
 0x17a   :  { %v2328_v37 = vpack.c.bf16 %v1362_v27, %v1361_v16  ;;  %v2344_v38 = vpack.c.bf16 %v1394_v28, %v1393_v20  ;;  %v1364_v39 = vmul.f32 0.125, %v853_v29  ;;  %v1396_v15 = vmul.f32 0.125, %v933_v30 }
 0x17c   :  { %1607 = vst [vmem:[#allocation8 + $0x50] sm:$0xff] %v2328_v37  ;;  %1623 = vst [vmem:[#allocation8 + $0xd0] sm:$0xff] %v2344_v38  ;;  %v2329_v45 = vpack.c.bf16 %v1364_v39, %v1363_v33  ;;  %v2345_v19 = vpack.c.bf16 %v1396_v15, %v1395_v36  ;;  %v856_v46 = vpop.f32.mrb[24].mxu0  ;;  %v936_v56 = vpop.f32.mrb[24].mxu1 }
 0x17d   :  { %v857_v57 = vadd.f32 %v856_v46, %v2983_v35  ;;  %v937_v1 = vadd.f32 %v936_v56, %v2983_v35  ;;  %v858_v24 = vpop.f32.mrb[25].mxu0  ;;  %v938_v34 = vpop.f32.mrb[25].mxu1 }
 0x17e   :  { %1608 = vst [vmem:[#allocation8 + $0x58] sm:$0xff] %v2329_v45  ;;  %1624 = vst [vmem:[#allocation8 + $0xd8] sm:$0xff] %v2345_v19  ;;  %v859_v44 = vadd.f32 %v858_v24, %v2985_v43  ;;  %v939_v54 = vadd.f32 %v938_v34, %v2985_v43  ;;  %v860_v55 = vpop.f32.mrb[26].mxu0  ;;  %v940_v5 = vpop.f32.mrb[26].mxu1 }
 0x17f   :  { %v1365_v6 = vmul.f32 0.125, %v857_v57  ;;  %v1397_v17 = vmul.f32 0.125, %v937_v1  ;;  %v861_v18 = vadd.f32 %v860_v55, %v2983_v35  ;;  %v941_v31 = vadd.f32 %v940_v5, %v2983_v35  ;;  %v862_v32 = vpop.f32.mrb[27].mxu0  ;;  %v942_v40 = vpop.f32.mrb[27].mxu1 }
 0x180   :  { %v1366_v41 = vmul.f32 0.125, %v859_v44  ;;  %v1398_v42 = vmul.f32 0.125, %v939_v54  ;;  %v863_v47 = vadd.f32 %v862_v32, %v2985_v43  ;;  %v943_v48 = vadd.f32 %v942_v40, %v2985_v43 }
 0x181   :  { %v1367_v49 = vmul.f32 0.125, %v861_v18  ;;  %v1399_v50 = vmul.f32 0.125, %v941_v31 }
 0x182   :  { %v2330_v51 = vpack.c.bf16 %v1366_v41, %v1365_v6  ;;  %v2346_v52 = vpack.c.bf16 %v1398_v42, %v1397_v17  ;;  %v1368_v53 = vmul.f32 0.125, %v863_v47  ;;  %v1400_v58 = vmul.f32 0.125, %v943_v48 }
 0x184   :  { %1609 = vst [vmem:[#allocation8 + $0x60] sm:$0xff] %v2330_v51  ;;  %1625 = vst [vmem:[#allocation8 + $0xe0] sm:$0xff] %v2346_v52  ;;  %v2331_v59 = vpack.c.bf16 %v1368_v53, %v1367_v49  ;;  %v2347_v60 = vpack.c.bf16 %v1400_v58, %v1399_v50  ;;  %v866_v61 = vpop.f32.mrb[28].mxu0  ;;  %v946_v62 = vpop.f32.mrb[28].mxu1 }
 0x185   :  { %v867_v63 = vadd.f32 %v866_v61, %v2983_v35  ;;  %v947_v0 = vadd.f32 %v946_v62, %v2983_v35  ;;  %v868_v3 = vpop.f32.mrb[29].mxu0  ;;  %v948_v4 = vpop.f32.mrb[29].mxu1 }
 0x186   :  { %1610 = vst [vmem:[#allocation8 + $0x68] sm:$0xff] %v2331_v59  ;;  %1626 = vst [vmem:[#allocation8 + $0xe8] sm:$0xff] %v2347_v60  ;;  %v869_v7 = vadd.f32 %v868_v3, %v2985_v43  ;;  %v949_v8 = vadd.f32 %v948_v4, %v2985_v43  ;;  %v870_v9 = vpop.f32.mrb[30].mxu0  ;;  %v950_v10 = vpop.f32.mrb[30].mxu1 }
 0x187   :  { %v1369_v11 = vmul.f32 0.125, %v867_v63  ;;  %v1401_v14 = vmul.f32 0.125, %v947_v0  ;;  %v871_v16 = vadd.f32 %v870_v9, %v2983_v35  ;;  %v951_v20 = vadd.f32 %v950_v10, %v2983_v35  ;;  %v872_v21 = vpop.f32.mrb[31].mxu0  ;;  %v952_v22 = vpop.f32.mrb[31].mxu1 }
 0x188   :  { %v1370_v25 = vmul.f32 0.125, %v869_v7  ;;  %v1402_v26 = vmul.f32 0.125, %v949_v8  ;;  %v873_v27 = vadd.f32 %v872_v21, %v2985_v43  ;;  %v953_v28 = vadd.f32 %v952_v22, %v2985_v43 }
 0x189   :  { %v1371_v29 = vmul.f32 0.125, %v871_v16  ;;  %v1403_v30 = vmul.f32 0.125, %v951_v20 }
 0x18a   :  { %v2332_v33 = vpack.c.bf16 %v1370_v25, %v1369_v11  ;;  %v2348_v36 = vpack.c.bf16 %v1402_v26, %v1401_v14  ;;  %v1372_v37 = vmul.f32 0.125, %v873_v27  ;;  %v1404_v38 = vmul.f32 0.125, %v953_v28 }
 0x18c   :  { %1611 = vst [vmem:[#allocation8 + $0x70] sm:$0xff] %v2332_v33  ;;  %1627 = vst [vmem:[#allocation8 + $0xf0] sm:$0xff] %v2348_v36  ;;  %v2333_v39 = vpack.c.bf16 %v1372_v37, %v1371_v29  ;;  %v2349_v15 = vpack.c.bf16 %v1404_v38, %v1403_v30  ;;  %v989_v45 = vpop.f32.mrb[32].mxu1  ;;  %v1182_v35 = vpop.f32.mrb[32].mxu0 }
 0x18d   :  { %v990_v19 = vadd.f32 %v989_v45, %v2957_v2  ;;  %v1183_v46 = vadd.f32 %v1182_v35, %v2959_v12  ;;  %v991_v56 = vpop.f32.mrb[33].mxu1  ;;  %v1184_v57 = vpop.f32.mrb[33].mxu0 }
 0x18e   :  { %1612 = vst [vmem:[#allocation8 + $0x78] sm:$0xff] %v2333_v39  ;;  %1628 = vst [vmem:[#allocation8 + $0xf8] sm:$0xff] %v2349_v15  ;;  %v992_v43 = vadd.f32 %v991_v56, %v2961_v13  ;;  %v1185_v1 = vadd.f32 %v1184_v57, %v2963_v23  ;;  %v993_v24 = vpop.f32.mrb[34].mxu1  ;;  %v1186_v34 = vpop.f32.mrb[34].mxu0 }
 0x18f   :  { %v994_v44 = vadd.f32 %v993_v24, %v2957_v2  ;;  %v1187_v54 = vadd.f32 %v1186_v34, %v2959_v12  ;;  %v995_v55 = vpop.f32.mrb[35].mxu1  ;;  %v1188_v5 = vpop.f32.mrb[35].mxu0 }
 0x190   :  { %2679 = shalt.err (!%p2676_p0)
}
 0x191   :  { %s2680_s10 = scalar_lea.hbm %s3234_s3, 4096 }
 0x192   :  { %p2681_p1 = scmp.ne.s32.totalorder %s3234_s3, %s2680_s10  ;;  %p2684_p2 = scmp.lt.u32.totalorder %s2680_s10, %s3234_s3 }
 0x194   :  { %p2686_p3 = pnand %p2684_p2, %p2681_p1 }
 0x196   :  { %2689 = shalt.err (!%p2686_p3)
}
 0x197   :  { %s2750_s15 = smov 128   ;;  %s2751_s16 = smov 8   ;;  %v2350_v6 = vpack.c.bf16 %v992_v43, %v990_v19  ;;  %v2382_v17 = vpack.c.bf16 %v1185_v1, %v1183_v46  ;;  %v996_v18 = vadd.f32 %v995_v55, %v2961_v13  ;;  %v1189_v31 = vadd.f32 %v1188_v5, %v2963_v23  ;;  %v999_v41 = vpop.f32.mrb[36].mxu1  ;;  %v1192_v42 = vpop.f32.mrb[36].mxu0 }
 0x198   :  { %2088 = dma.vmem_to_hbm [thread:$0]  %s2083_s6, 4096, %s3234_s3, [#allocation4], %s2750_s15, %s2750_s15, %s2751_s16   ;;  %v1000_v47 = vadd.f32 %v999_v41, %v2957_v2  ;;  %v1193_v48 = vadd.f32 %v1192_v42, %v2959_v12  ;;  %v1001_v49 = vpop.f32.mrb[37].mxu1  ;;  %v1194_v50 = vpop.f32.mrb[37].mxu0 }
 0x199   :  { %1821 = vst [vmem:[#allocation9] sm:$0xff] %v2350_v6  ;;  %2045 = vst [vmem:[#allocation11] sm:$0xff] %v2382_v17  ;;  %v2351_v32 = vpack.c.bf16 %v996_v18, %v994_v44  ;;  %v2383_v40 = vpack.c.bf16 %v1189_v31, %v1187_v54  ;;  %v1002_v51 = vadd.f32 %v1001_v49, %v2961_v13  ;;  %v1003_v53 = vpop.f32.mrb[38].mxu1  ;;  %v1196_v58 = vpop.f32.mrb[38].mxu0  ;;  %s2752_s3 = smov [#allocation9]   ;;  %s2753_s19 = smov [#allocation11]  }
 0x19a   :  { %v1195_v52 = vadd.f32 %v1194_v50, %v2963_v23  ;;  %v1004_v59 = vadd.f32 %v1003_v53, %v2957_v2  ;;  %v1197_v60 = vadd.f32 %v1196_v58, %v2959_v12  ;;  %v1005_v61 = vpop.f32.mrb[39].mxu1  ;;  %v1198_v62 = vpop.f32.mrb[39].mxu0  ;;  %s2094_s18 = sshll.u32 %s2752_s3, 4  ;;  %s2106_s20 = sshll.u32 %s2753_s19, 4  ;;  %s2095_s18 = int_to_ptr.vmem [resolvable:$true] %s2094_s18  ;;  %s3194_s20 = int_to_ptr.vmem [resolvable:$true] %s2106_s20 }
 0x19b   :  { %1822 = vst [vmem:[#allocation9 + $0x8] sm:$0xff] %v2351_v32  ;;  %2046 = vst [vmem:[#allocation11 + $0x8] sm:$0xff] %v2383_v40  ;;  %v2352_v63 = vpack.c.bf16 %v1002_v51, %v1000_v47  ;;  %v1006_v3 = vadd.f32 %v1005_v61, %v2961_v13  ;;  %v1199_v4 = vadd.f32 %v1198_v62, %v2963_v23  ;;  %s2690_s21 = scalar_lea.vmem %s2095_s18, 4096  ;;  %p2695_p5 = scmp.lt.s32.totalorder %s2095_s18, %s2095_s18 }
 0x19c   :  { %v2384_v0 = vpack.c.bf16 %v1195_v52, %v1193_v48  ;;  %v1009_v9 = vpop.f32.mrb[40].mxu1  ;;  %v1202_v10 = vpop.f32.mrb[40].mxu0  ;;  %p2691_p4 = scmp.ne.s32.totalorder %s2095_s18, %s2690_s21  ;;  %p2696_p6 = scmp.lt.s32.totalorder %s2690_s21, %s2690_s21 }
 0x19d   :  { %1823 = vst [vmem:[#allocation9 + $0x10] sm:$0xff] %v2352_v63  ;;  %v2353_v7 = vpack.c.bf16 %v1006_v3, %v1004_v59  ;;  %v2385_v8 = vpack.c.bf16 %v1199_v4, %v1197_v60  ;;  %v1010_v11 = vadd.f32 %v1009_v9, %v2957_v2  ;;  %v1203_v14 = vadd.f32 %v1202_v10, %v2959_v12  ;;  %v1011_v16 = vpop.f32.mrb[41].mxu1  ;;  %v1204_v20 = vpop.f32.mrb[41].mxu0 }
 0x19e   :  { %2047 = vst [vmem:[#allocation11 + $0x10] sm:$0xff] %v2384_v0  ;;  %v1012_v21 = vadd.f32 %v1011_v16, %v2961_v13  ;;  %v1205_v22 = vadd.f32 %v1204_v20, %v2963_v23  ;;  %v1013_v25 = vpop.f32.mrb[42].mxu1  ;;  %v1206_v26 = vpop.f32.mrb[42].mxu0  ;;  %p2697_p7 = por %p2696_p6, %p2695_p5 }
 0x19f   :  { %1824 = vst [vmem:[#allocation9 + $0x18] sm:$0xff] %v2353_v7  ;;  %2048 = vst [vmem:[#allocation11 + $0x18] sm:$0xff] %v2385_v8  ;;  %v1014_v27 = vadd.f32 %v1013_v25, %v2957_v2  ;;  %v1207_v28 = vadd.f32 %v1206_v26, %v2959_v12  ;;  %v1015_v29 = vpop.f32.mrb[43].mxu1  ;;  %v1208_v30 = vpop.f32.mrb[43].mxu0 }
 0x1a0   :  { %v2354_v33 = vpack.c.bf16 %v1012_v21, %v1010_v11  ;;  %v2386_v36 = vpack.c.bf16 %v1205_v22, %v1203_v14  ;;  %v1016_v37 = vadd.f32 %v1015_v29, %v2961_v13  ;;  %v1209_v38 = vadd.f32 %v1208_v30, %v2963_v23  ;;  %p2698_p8 = pnand %p2697_p7, %p2691_p4 }
 0x1a2   :  { %1825 = vst [vmem:[#allocation9 + $0x20] sm:$0xff] %v2354_v33  ;;  %2049 = vst [vmem:[#allocation11 + $0x20] sm:$0xff] %v2386_v36  ;;  %v2355_v39 = vpack.c.bf16 %v1016_v37, %v1014_v27  ;;  %v2387_v15 = vpack.c.bf16 %v1209_v38, %v1207_v28 }
 0x1a4   :  { %1826 = vst [vmem:[#allocation9 + $0x28] sm:$0xff] %v2355_v39  ;;  %2050 = vst [vmem:[#allocation11 + $0x28] sm:$0xff] %v2387_v15  ;;  %v1019_v45 = vpop.f32.mrb[44].mxu1  ;;  %v1212_v35 = vpop.f32.mrb[44].mxu0 }
 0x1a5   :  { %v1020_v19 = vadd.f32 %v1019_v45, %v2957_v2  ;;  %v1213_v46 = vadd.f32 %v1212_v35, %v2959_v12  ;;  %v1021_v56 = vpop.f32.mrb[45].mxu1  ;;  %v1214_v57 = vpop.f32.mrb[45].mxu0 }
 0x1a6   :  { %v1022_v43 = vadd.f32 %v1021_v56, %v2961_v13  ;;  %v1215_v1 = vadd.f32 %v1214_v57, %v2963_v23  ;;  %v1023_v24 = vpop.f32.mrb[46].mxu1  ;;  %v1216_v34 = vpop.f32.mrb[46].mxu0 }
 0x1a7   :  { %v1024_v44 = vadd.f32 %v1023_v24, %v2957_v2  ;;  %v1217_v54 = vadd.f32 %v1216_v34, %v2959_v12  ;;  %v1025_v55 = vpop.f32.mrb[47].mxu1  ;;  %v1218_v5 = vpop.f32.mrb[47].mxu0 }
 0x1a8   :  { %v2356_v6 = vpack.c.bf16 %v1022_v43, %v1020_v19  ;;  %v2388_v17 = vpack.c.bf16 %v1215_v1, %v1213_v46  ;;  %v1026_v18 = vadd.f32 %v1025_v55, %v2961_v13  ;;  %v1219_v31 = vadd.f32 %v1218_v5, %v2963_v23 }
 0x1aa   :  { %1827 = vst [vmem:[#allocation9 + $0x30] sm:$0xff] %v2356_v6  ;;  %2051 = vst [vmem:[#allocation11 + $0x30] sm:$0xff] %v2388_v17  ;;  %v2357_v32 = vpack.c.bf16 %v1026_v18, %v1024_v44  ;;  %v2389_v40 = vpack.c.bf16 %v1219_v31, %v1217_v54 }
 0x1ac   :  { %1828 = vst [vmem:[#allocation9 + $0x38] sm:$0xff] %v2357_v32  ;;  %2052 = vst [vmem:[#allocation11 + $0x38] sm:$0xff] %v2389_v40  ;;  %v1029_v41 = vpop.f32.mrb[48].mxu1  ;;  %v1222_v42 = vpop.f32.mrb[48].mxu0 }
 0x1ad   :  { %v1030_v47 = vadd.f32 %v1029_v41, %v2957_v2  ;;  %v1223_v48 = vadd.f32 %v1222_v42, %v2959_v12  ;;  %v1031_v49 = vpop.f32.mrb[49].mxu1  ;;  %v1224_v50 = vpop.f32.mrb[49].mxu0 }
 0x1ae   :  { %v1032_v51 = vadd.f32 %v1031_v49, %v2961_v13  ;;  %v1225_v52 = vadd.f32 %v1224_v50, %v2963_v23  ;;  %v1033_v53 = vpop.f32.mrb[50].mxu1  ;;  %v1226_v58 = vpop.f32.mrb[50].mxu0 }
 0x1af   :  { %v1034_v59 = vadd.f32 %v1033_v53, %v2957_v2  ;;  %v1227_v60 = vadd.f32 %v1226_v58, %v2959_v12  ;;  %v1035_v61 = vpop.f32.mrb[51].mxu1  ;;  %v1228_v62 = vpop.f32.mrb[51].mxu0 }
 0x1b0   :  { %v2358_v63 = vpack.c.bf16 %v1032_v51, %v1030_v47  ;;  %v2390_v0 = vpack.c.bf16 %v1225_v52, %v1223_v48  ;;  %v1036_v3 = vadd.f32 %v1035_v61, %v2961_v13  ;;  %v1229_v4 = vadd.f32 %v1228_v62, %v2963_v23 }
 0x1b2   :  { %1829 = vst [vmem:[#allocation9 + $0x40] sm:$0xff] %v2358_v63  ;;  %2053 = vst [vmem:[#allocation11 + $0x40] sm:$0xff] %v2390_v0  ;;  %v2359_v7 = vpack.c.bf16 %v1036_v3, %v1034_v59  ;;  %v2391_v8 = vpack.c.bf16 %v1229_v4, %v1227_v60 }
 0x1b4   :  { %1830 = vst [vmem:[#allocation9 + $0x48] sm:$0xff] %v2359_v7  ;;  %2054 = vst [vmem:[#allocation11 + $0x48] sm:$0xff] %v2391_v8  ;;  %v1039_v9 = vpop.f32.mrb[52].mxu1  ;;  %v1232_v10 = vpop.f32.mrb[52].mxu0 }
 0x1b5   :  { %v1040_v11 = vadd.f32 %v1039_v9, %v2957_v2  ;;  %v1233_v14 = vadd.f32 %v1232_v10, %v2959_v12  ;;  %v1041_v16 = vpop.f32.mrb[53].mxu1  ;;  %v1234_v20 = vpop.f32.mrb[53].mxu0 }
 0x1b6   :  { %v1042_v21 = vadd.f32 %v1041_v16, %v2961_v13  ;;  %v1235_v22 = vadd.f32 %v1234_v20, %v2963_v23  ;;  %v1043_v25 = vpop.f32.mrb[54].mxu1  ;;  %v1236_v26 = vpop.f32.mrb[54].mxu0 }
 0x1b7   :  { %v1044_v27 = vadd.f32 %v1043_v25, %v2957_v2  ;;  %v1237_v28 = vadd.f32 %v1236_v26, %v2959_v12  ;;  %v1045_v29 = vpop.f32.mrb[55].mxu1  ;;  %v1238_v30 = vpop.f32.mrb[55].mxu0 }
 0x1b8   :  { %v2360_v33 = vpack.c.bf16 %v1042_v21, %v1040_v11  ;;  %v2392_v36 = vpack.c.bf16 %v1235_v22, %v1233_v14  ;;  %v1046_v37 = vadd.f32 %v1045_v29, %v2961_v13  ;;  %v1239_v38 = vadd.f32 %v1238_v30, %v2963_v23 }
 0x1ba   :  { %1831 = vst [vmem:[#allocation9 + $0x50] sm:$0xff] %v2360_v33  ;;  %2055 = vst [vmem:[#allocation11 + $0x50] sm:$0xff] %v2392_v36  ;;  %v2361_v39 = vpack.c.bf16 %v1046_v37, %v1044_v27  ;;  %v2393_v15 = vpack.c.bf16 %v1239_v38, %v1237_v28 }
 0x1bc   :  { %1832 = vst [vmem:[#allocation9 + $0x58] sm:$0xff] %v2361_v39  ;;  %2056 = vst [vmem:[#allocation11 + $0x58] sm:$0xff] %v2393_v15  ;;  %v1049_v45 = vpop.f32.mrb[56].mxu1  ;;  %v1242_v35 = vpop.f32.mrb[56].mxu0 }
 0x1bd   :  { %v1050_v19 = vadd.f32 %v1049_v45, %v2957_v2  ;;  %v1243_v46 = vadd.f32 %v1242_v35, %v2959_v12  ;;  %v1051_v56 = vpop.f32.mrb[57].mxu1  ;;  %v1244_v57 = vpop.f32.mrb[57].mxu0 }
 0x1be   :  { %v1052_v43 = vadd.f32 %v1051_v56, %v2961_v13  ;;  %v1245_v1 = vadd.f32 %v1244_v57, %v2963_v23  ;;  %v1053_v24 = vpop.f32.mrb[58].mxu1  ;;  %v1246_v34 = vpop.f32.mrb[58].mxu0 }
 0x1bf   :  { %v1054_v44 = vadd.f32 %v1053_v24, %v2957_v2  ;;  %v1247_v54 = vadd.f32 %v1246_v34, %v2959_v12  ;;  %v1055_v55 = vpop.f32.mrb[59].mxu1  ;;  %v1248_v5 = vpop.f32.mrb[59].mxu0 }
 0x1c0   :  { %v2362_v6 = vpack.c.bf16 %v1052_v43, %v1050_v19  ;;  %v2394_v17 = vpack.c.bf16 %v1245_v1, %v1243_v46  ;;  %v1056_v18 = vadd.f32 %v1055_v55, %v2961_v13  ;;  %v1249_v31 = vadd.f32 %v1248_v5, %v2963_v23 }
 0x1c2   :  { %1833 = vst [vmem:[#allocation9 + $0x60] sm:$0xff] %v2362_v6  ;;  %2057 = vst [vmem:[#allocation11 + $0x60] sm:$0xff] %v2394_v17  ;;  %v2363_v32 = vpack.c.bf16 %v1056_v18, %v1054_v44  ;;  %v2395_v40 = vpack.c.bf16 %v1249_v31, %v1247_v54 }
 0x1c4   :  { %1834 = vst [vmem:[#allocation9 + $0x68] sm:$0xff] %v2363_v32  ;;  %2058 = vst [vmem:[#allocation11 + $0x68] sm:$0xff] %v2395_v40  ;;  %v1059_v41 = vpop.f32.mrb[60].mxu1  ;;  %v1252_v42 = vpop.f32.mrb[60].mxu0 }
 0x1c5   :  { %v1060_v47 = vadd.f32 %v1059_v41, %v2957_v2  ;;  %v1253_v48 = vadd.f32 %v1252_v42, %v2959_v12  ;;  %v1061_v49 = vpop.f32.mrb[61].mxu1  ;;  %v1254_v50 = vpop.f32.mrb[61].mxu0 }
 0x1c6   :  { %v1062_v51 = vadd.f32 %v1061_v49, %v2961_v13  ;;  %v1255_v52 = vadd.f32 %v1254_v50, %v2963_v23  ;;  %v1063_v53 = vpop.f32.mrb[62].mxu1  ;;  %v1256_v58 = vpop.f32.mrb[62].mxu0 }
 0x1c7   :  { %v1064_v59 = vadd.f32 %v1063_v53, %v2957_v2  ;;  %v1257_v60 = vadd.f32 %v1256_v58, %v2959_v12  ;;  %v1065_v61 = vpop.f32.mrb[63].mxu1  ;;  %v1258_v62 = vpop.f32.mrb[63].mxu0 }
 0x1c8   :  { %v2364_v63 = vpack.c.bf16 %v1062_v51, %v1060_v47  ;;  %v2396_v0 = vpack.c.bf16 %v1255_v52, %v1253_v48  ;;  %v1066_v3 = vadd.f32 %v1065_v61, %v2961_v13  ;;  %v1259_v4 = vadd.f32 %v1258_v62, %v2963_v23 }
 0x1ca   :  { %1835 = vst [vmem:[#allocation9 + $0x70] sm:$0xff] %v2364_v63  ;;  %2059 = vst [vmem:[#allocation11 + $0x70] sm:$0xff] %v2396_v0  ;;  %v2365_v7 = vpack.c.bf16 %v1066_v3, %v1064_v59  ;;  %v2397_v8 = vpack.c.bf16 %v1259_v4, %v1257_v60 }
 0x1cc   :  { %1836 = vst [vmem:[#allocation9 + $0x78] sm:$0xff] %v2365_v7  ;;  %2060 = vst [vmem:[#allocation11 + $0x78] sm:$0xff] %v2397_v8  ;;  %v1069_v9 = vpop.f32.mrb[64].mxu1  ;;  %v1262_v10 = vpop.f32.mrb[64].mxu0 }
 0x1cd   :  { %v1070_v11 = vadd.f32 %v1069_v9, %v2957_v2  ;;  %v1263_v14 = vadd.f32 %v1262_v10, %v2959_v12  ;;  %v1071_v16 = vpop.f32.mrb[65].mxu1  ;;  %v1264_v20 = vpop.f32.mrb[65].mxu0 }
 0x1ce   :  { %v1072_v21 = vadd.f32 %v1071_v16, %v2961_v13  ;;  %v1265_v22 = vadd.f32 %v1264_v20, %v2963_v23  ;;  %v1073_v25 = vpop.f32.mrb[66].mxu1  ;;  %v1266_v26 = vpop.f32.mrb[66].mxu0 }
 0x1cf   :  { %v1074_v27 = vadd.f32 %v1073_v25, %v2957_v2  ;;  %v1267_v28 = vadd.f32 %v1266_v26, %v2959_v12  ;;  %v1075_v29 = vpop.f32.mrb[67].mxu1  ;;  %v1268_v30 = vpop.f32.mrb[67].mxu0 }
 0x1d0   :  { %v2366_v33 = vpack.c.bf16 %v1072_v21, %v1070_v11  ;;  %v2398_v36 = vpack.c.bf16 %v1265_v22, %v1263_v14  ;;  %v1076_v37 = vadd.f32 %v1075_v29, %v2961_v13  ;;  %v1269_v38 = vadd.f32 %v1268_v30, %v2963_v23 }
 0x1d2   :  { %1837 = vst [vmem:[#allocation9 + $0x80] sm:$0xff] %v2366_v33  ;;  %2061 = vst [vmem:[#allocation11 + $0x80] sm:$0xff] %v2398_v36  ;;  %v2367_v39 = vpack.c.bf16 %v1076_v37, %v1074_v27  ;;  %v2399_v15 = vpack.c.bf16 %v1269_v38, %v1267_v28 }
 0x1d4   :  { %1838 = vst [vmem:[#allocation9 + $0x88] sm:$0xff] %v2367_v39  ;;  %2062 = vst [vmem:[#allocation11 + $0x88] sm:$0xff] %v2399_v15  ;;  %v1079_v45 = vpop.f32.mrb[68].mxu1  ;;  %v1272_v35 = vpop.f32.mrb[68].mxu0 }
 0x1d5   :  { %v1080_v19 = vadd.f32 %v1079_v45, %v2957_v2  ;;  %v1273_v46 = vadd.f32 %v1272_v35, %v2959_v12  ;;  %v1081_v56 = vpop.f32.mrb[69].mxu1  ;;  %v1274_v57 = vpop.f32.mrb[69].mxu0 }
 0x1d6   :  { %v1082_v43 = vadd.f32 %v1081_v56, %v2961_v13  ;;  %v1275_v1 = vadd.f32 %v1274_v57, %v2963_v23  ;;  %v1083_v24 = vpop.f32.mrb[70].mxu1  ;;  %v1276_v34 = vpop.f32.mrb[70].mxu0 }
 0x1d7   :  { %v1084_v44 = vadd.f32 %v1083_v24, %v2957_v2  ;;  %v1277_v54 = vadd.f32 %v1276_v34, %v2959_v12  ;;  %v1085_v55 = vpop.f32.mrb[71].mxu1  ;;  %v1278_v5 = vpop.f32.mrb[71].mxu0 }
 0x1d8   :  { %v2368_v6 = vpack.c.bf16 %v1082_v43, %v1080_v19  ;;  %v2400_v17 = vpack.c.bf16 %v1275_v1, %v1273_v46  ;;  %v1086_v18 = vadd.f32 %v1085_v55, %v2961_v13  ;;  %v1279_v31 = vadd.f32 %v1278_v5, %v2963_v23 }
 0x1da   :  { %1839 = vst [vmem:[#allocation9 + $0x90] sm:$0xff] %v2368_v6  ;;  %2063 = vst [vmem:[#allocation11 + $0x90] sm:$0xff] %v2400_v17  ;;  %v2369_v32 = vpack.c.bf16 %v1086_v18, %v1084_v44  ;;  %v2401_v40 = vpack.c.bf16 %v1279_v31, %v1277_v54 }
 0x1dc   :  { %1840 = vst [vmem:[#allocation9 + $0x98] sm:$0xff] %v2369_v32  ;;  %2064 = vst [vmem:[#allocation11 + $0x98] sm:$0xff] %v2401_v40  ;;  %v1089_v41 = vpop.f32.mrb[72].mxu1  ;;  %v1282_v42 = vpop.f32.mrb[72].mxu0 }
 0x1dd   :  { %v1090_v47 = vadd.f32 %v1089_v41, %v2957_v2  ;;  %v1283_v48 = vadd.f32 %v1282_v42, %v2959_v12  ;;  %v1091_v49 = vpop.f32.mrb[73].mxu1  ;;  %v1284_v50 = vpop.f32.mrb[73].mxu0 }
 0x1de   :  { %v1092_v51 = vadd.f32 %v1091_v49, %v2961_v13  ;;  %v1285_v52 = vadd.f32 %v1284_v50, %v2963_v23  ;;  %v1093_v53 = vpop.f32.mrb[74].mxu1  ;;  %v1286_v58 = vpop.f32.mrb[74].mxu0 }
 0x1df   :  { %v1094_v59 = vadd.f32 %v1093_v53, %v2957_v2  ;;  %v1287_v60 = vadd.f32 %v1286_v58, %v2959_v12  ;;  %v1095_v61 = vpop.f32.mrb[75].mxu1  ;;  %v1288_v62 = vpop.f32.mrb[75].mxu0 }
 0x1e0   :  { %v2370_v63 = vpack.c.bf16 %v1092_v51, %v1090_v47  ;;  %v2402_v0 = vpack.c.bf16 %v1285_v52, %v1283_v48  ;;  %v1096_v3 = vadd.f32 %v1095_v61, %v2961_v13  ;;  %v1289_v4 = vadd.f32 %v1288_v62, %v2963_v23 }
 0x1e2   :  { %1841 = vst [vmem:[#allocation9 + $0xa0] sm:$0xff] %v2370_v63  ;;  %2065 = vst [vmem:[#allocation11 + $0xa0] sm:$0xff] %v2402_v0  ;;  %v2371_v7 = vpack.c.bf16 %v1096_v3, %v1094_v59  ;;  %v2403_v8 = vpack.c.bf16 %v1289_v4, %v1287_v60 }
 0x1e4   :  { %1842 = vst [vmem:[#allocation9 + $0xa8] sm:$0xff] %v2371_v7  ;;  %2066 = vst [vmem:[#allocation11 + $0xa8] sm:$0xff] %v2403_v8  ;;  %v1099_v9 = vpop.f32.mrb[76].mxu1  ;;  %v1292_v10 = vpop.f32.mrb[76].mxu0 }
 0x1e5   :  { %v1100_v11 = vadd.f32 %v1099_v9, %v2957_v2  ;;  %v1293_v14 = vadd.f32 %v1292_v10, %v2959_v12  ;;  %v1101_v16 = vpop.f32.mrb[77].mxu1  ;;  %v1294_v20 = vpop.f32.mrb[77].mxu0 }
 0x1e6   :  { %v1102_v21 = vadd.f32 %v1101_v16, %v2961_v13  ;;  %v1295_v22 = vadd.f32 %v1294_v20, %v2963_v23  ;;  %v1103_v25 = vpop.f32.mrb[78].mxu1  ;;  %v1296_v26 = vpop.f32.mrb[78].mxu0 }
 0x1e7   :  { %v1104_v27 = vadd.f32 %v1103_v25, %v2957_v2  ;;  %v1297_v28 = vadd.f32 %v1296_v26, %v2959_v12  ;;  %v1105_v29 = vpop.f32.mrb[79].mxu1  ;;  %v1298_v30 = vpop.f32.mrb[79].mxu0 }
 0x1e8   :  { %v2372_v33 = vpack.c.bf16 %v1102_v21, %v1100_v11  ;;  %v2404_v36 = vpack.c.bf16 %v1295_v22, %v1293_v14  ;;  %v1106_v37 = vadd.f32 %v1105_v29, %v2961_v13  ;;  %v1299_v38 = vadd.f32 %v1298_v30, %v2963_v23 }
 0x1ea   :  { %1843 = vst [vmem:[#allocation9 + $0xb0] sm:$0xff] %v2372_v33  ;;  %2067 = vst [vmem:[#allocation11 + $0xb0] sm:$0xff] %v2404_v36  ;;  %v2373_v39 = vpack.c.bf16 %v1106_v37, %v1104_v27  ;;  %v2405_v15 = vpack.c.bf16 %v1299_v38, %v1297_v28 }
 0x1ec   :  { %1844 = vst [vmem:[#allocation9 + $0xb8] sm:$0xff] %v2373_v39  ;;  %2068 = vst [vmem:[#allocation11 + $0xb8] sm:$0xff] %v2405_v15  ;;  %v1109_v45 = vpop.f32.mrb[80].mxu1  ;;  %v1302_v35 = vpop.f32.mrb[80].mxu0 }
 0x1ed   :  { %v1110_v19 = vadd.f32 %v1109_v45, %v2957_v2  ;;  %v1303_v46 = vadd.f32 %v1302_v35, %v2959_v12  ;;  %v1111_v56 = vpop.f32.mrb[81].mxu1  ;;  %v1304_v57 = vpop.f32.mrb[81].mxu0 }
 0x1ee   :  { %v1112_v43 = vadd.f32 %v1111_v56, %v2961_v13  ;;  %v1305_v1 = vadd.f32 %v1304_v57, %v2963_v23  ;;  %v1113_v24 = vpop.f32.mrb[82].mxu1  ;;  %v1306_v34 = vpop.f32.mrb[82].mxu0 }
 0x1ef   :  { %v1114_v44 = vadd.f32 %v1113_v24, %v2957_v2  ;;  %v1307_v54 = vadd.f32 %v1306_v34, %v2959_v12  ;;  %v1115_v55 = vpop.f32.mrb[83].mxu1  ;;  %v1308_v5 = vpop.f32.mrb[83].mxu0 }
 0x1f0   :  { %v2374_v6 = vpack.c.bf16 %v1112_v43, %v1110_v19  ;;  %v2406_v17 = vpack.c.bf16 %v1305_v1, %v1303_v46  ;;  %v1116_v18 = vadd.f32 %v1115_v55, %v2961_v13  ;;  %v1309_v31 = vadd.f32 %v1308_v5, %v2963_v23 }
 0x1f2   :  { %1845 = vst [vmem:[#allocation9 + $0xc0] sm:$0xff] %v2374_v6  ;;  %2069 = vst [vmem:[#allocation11 + $0xc0] sm:$0xff] %v2406_v17  ;;  %v2375_v32 = vpack.c.bf16 %v1116_v18, %v1114_v44  ;;  %v2407_v40 = vpack.c.bf16 %v1309_v31, %v1307_v54 }
 0x1f4   :  { %1846 = vst [vmem:[#allocation9 + $0xc8] sm:$0xff] %v2375_v32  ;;  %2070 = vst [vmem:[#allocation11 + $0xc8] sm:$0xff] %v2407_v40  ;;  %v1119_v41 = vpop.f32.mrb[84].mxu1  ;;  %v1312_v42 = vpop.f32.mrb[84].mxu0 }
 0x1f5   :  { %v1120_v47 = vadd.f32 %v1119_v41, %v2957_v2  ;;  %v1313_v48 = vadd.f32 %v1312_v42, %v2959_v12  ;;  %v1121_v49 = vpop.f32.mrb[85].mxu1  ;;  %v1314_v50 = vpop.f32.mrb[85].mxu0 }
 0x1f6   :  { %v1122_v51 = vadd.f32 %v1121_v49, %v2961_v13  ;;  %v1315_v52 = vadd.f32 %v1314_v50, %v2963_v23  ;;  %v1123_v53 = vpop.f32.mrb[86].mxu1  ;;  %v1316_v58 = vpop.f32.mrb[86].mxu0 }
 0x1f7   :  { %v1124_v59 = vadd.f32 %v1123_v53, %v2957_v2  ;;  %v1317_v60 = vadd.f32 %v1316_v58, %v2959_v12  ;;  %v1125_v61 = vpop.f32.mrb[87].mxu1  ;;  %v1318_v62 = vpop.f32.mrb[87].mxu0 }
 0x1f8   :  { %v2376_v63 = vpack.c.bf16 %v1122_v51, %v1120_v47  ;;  %v2408_v0 = vpack.c.bf16 %v1315_v52, %v1313_v48  ;;  %v1126_v3 = vadd.f32 %v1125_v61, %v2961_v13  ;;  %v1319_v4 = vadd.f32 %v1318_v62, %v2963_v23 }
 0x1fa   :  { %1847 = vst [vmem:[#allocation9 + $0xd0] sm:$0xff] %v2376_v63  ;;  %2071 = vst [vmem:[#allocation11 + $0xd0] sm:$0xff] %v2408_v0  ;;  %v2377_v7 = vpack.c.bf16 %v1126_v3, %v1124_v59  ;;  %v2409_v8 = vpack.c.bf16 %v1319_v4, %v1317_v60 }
 0x1fc   :  { %1848 = vst [vmem:[#allocation9 + $0xd8] sm:$0xff] %v2377_v7  ;;  %2072 = vst [vmem:[#allocation11 + $0xd8] sm:$0xff] %v2409_v8  ;;  %v1129_v9 = vpop.f32.mrb[88].mxu1  ;;  %v1322_v10 = vpop.f32.mrb[88].mxu0 }
 0x1fd   :  { %v1130_v11 = vadd.f32 %v1129_v9, %v2957_v2  ;;  %v1323_v14 = vadd.f32 %v1322_v10, %v2959_v12  ;;  %v1131_v16 = vpop.f32.mrb[89].mxu1  ;;  %v1324_v20 = vpop.f32.mrb[89].mxu0 }
 0x1fe   :  { %v1132_v21 = vadd.f32 %v1131_v16, %v2961_v13  ;;  %v1325_v22 = vadd.f32 %v1324_v20, %v2963_v23  ;;  %v1133_v25 = vpop.f32.mrb[90].mxu1  ;;  %v1326_v26 = vpop.f32.mrb[90].mxu0 }
 0x1ff   :  { %v1134_v27 = vadd.f32 %v1133_v25, %v2957_v2  ;;  %v1327_v28 = vadd.f32 %v1326_v26, %v2959_v12  ;;  %v1135_v29 = vpop.f32.mrb[91].mxu1  ;;  %v1328_v30 = vpop.f32.mrb[91].mxu0 }
 0x200   :  { %v2378_v33 = vpack.c.bf16 %v1132_v21, %v1130_v11  ;;  %v2410_v36 = vpack.c.bf16 %v1325_v22, %v1323_v14  ;;  %v1136_v37 = vadd.f32 %v1135_v29, %v2961_v13  ;;  %v1329_v38 = vadd.f32 %v1328_v30, %v2963_v23 }
 0x202   :  { %1849 = vst [vmem:[#allocation9 + $0xe0] sm:$0xff] %v2378_v33  ;;  %2073 = vst [vmem:[#allocation11 + $0xe0] sm:$0xff] %v2410_v36  ;;  %v2379_v39 = vpack.c.bf16 %v1136_v37, %v1134_v27  ;;  %v2411_v15 = vpack.c.bf16 %v1329_v38, %v1327_v28 }
 0x204   :  { %1850 = vst [vmem:[#allocation9 + $0xe8] sm:$0xff] %v2379_v39  ;;  %2074 = vst [vmem:[#allocation11 + $0xe8] sm:$0xff] %v2411_v15  ;;  %v1139_v45 = vpop.f32.mrb[92].mxu1  ;;  %v1332_v35 = vpop.f32.mrb[92].mxu0 }
 0x205   :  { %v1140_v19 = vadd.f32 %v1139_v45, %v2957_v2  ;;  %v1333_v46 = vadd.f32 %v1332_v35, %v2959_v12  ;;  %v1141_v56 = vpop.f32.mrb[93].mxu1  ;;  %v1334_v57 = vpop.f32.mrb[93].mxu0 }
 0x206   :  { %v1142_v43 = vadd.f32 %v1141_v56, %v2961_v13  ;;  %v1335_v1 = vadd.f32 %v1334_v57, %v2963_v23  ;;  %v1143_v24 = vpop.f32.mrb[94].mxu1  ;;  %v1336_v34 = vpop.f32.mrb[94].mxu0 }
 0x207   :  { %v1144_v44 = vadd.f32 %v1143_v24, %v2957_v2  ;;  %v1337_v54 = vadd.f32 %v1336_v34, %v2959_v12  ;;  %v1145_v55 = vpop.f32.mrb[95].mxu1  ;;  %v1338_v5 = vpop.f32.mrb[95].mxu0 }
 0x208   :  { %v2380_v6 = vpack.c.bf16 %v1142_v43, %v1140_v19  ;;  %v2412_v17 = vpack.c.bf16 %v1335_v1, %v1333_v46  ;;  %v1146_v18 = vadd.f32 %v1145_v55, %v2961_v13  ;;  %v1339_v31 = vadd.f32 %v1338_v5, %v2963_v23 }
 0x20a   :  { %1851 = vst [vmem:[#allocation9 + $0xf0] sm:$0xff] %v2380_v6  ;;  %2075 = vst [vmem:[#allocation11 + $0xf0] sm:$0xff] %v2412_v17  ;;  %v2381_v32 = vpack.c.bf16 %v1146_v18, %v1144_v44  ;;  %v2413_v40 = vpack.c.bf16 %v1339_v31, %v1337_v54 }
 0x20c   :  { %1852 = vst [vmem:[#allocation9 + $0xf8] sm:$0xff] %v2381_v32  ;;  %2076 = vst [vmem:[#allocation11 + $0xf8] sm:$0xff] %v2413_v40 }
 0x20d   :  { %2701 = shalt.err (!%p2698_p8)
}
 0x20e   :  { %s2702_s24 = scalar_lea.hbm %s3235_s4, 4096 }
 0x20f   :  { %p2703_p9 = scmp.ne.s32.totalorder %s3235_s4, %s2702_s24  ;;  %p2706_p10 = scmp.lt.u32.totalorder %s2702_s24, %s3235_s4 }
 0x211   :  { %p2708_p11 = pnand %p2706_p10, %p2703_p9 }
 0x213   :  { %2711 = shalt.err (!%p2708_p11)
}
 0x214   :  { %2100 = dma.vmem_to_hbm [thread:$0]  %s2095_s18, 4096, %s3235_s4, [#allocation10], %s2750_s15, %s2750_s15, %s2751_s16  }
 0x215   :  { %s2712_s30 = scalar_lea.vmem %s3194_s20, 4096  ;;  %p2717_p13 = scmp.lt.s32.totalorder %s3194_s20, %s3194_s20 }
 0x216   :  { %p2713_p12 = scmp.ne.s32.totalorder %s3194_s20, %s2712_s30  ;;  %p2718_p0 = scmp.lt.s32.totalorder %s2712_s30, %s2712_s30 }
 0x218   :  { %p2719_p1 = por %p2718_p0, %p2717_p13 }
 0x21a   :  { %p2720_p2 = pnand %p2719_p1, %p2713_p12 }
 0x21c   :  { %2723 = shalt.err (!%p2720_p2)
}
 0x21d   :  { %s2724_s7 = scalar_lea.hbm %s3236_s5, 4096 }
 0x21e   :  { %p2725_p3 = scmp.ne.s32.totalorder %s3236_s5, %s2724_s7  ;;  %p2728_p4 = scmp.lt.u32.totalorder %s2724_s7, %s3236_s5 }
 0x220   :  { %p2730_p5 = pnand %p2728_p4, %p2725_p3 }
 0x222   :  { %2733 = shalt.err (!%p2730_p5)
}
 0x223   :  { %2112 = dma.vmem_to_hbm [thread:$0]  %s3194_s20, 4096, %s3236_s5, [#allocation10], %s2750_s15, %s2750_s15, %s2751_s16  }
 0x224   :  { %2738 = dma.done.wait [#allocation4], 4096  }
 0x225   :  { %2739 = vsyncadd [#allocation4], 4294963200 }
 0x226   :  { %2740 = dma.done.wait [#allocation10], 8192  }
 0x227   :  { %2741 = vsyncadd [#allocation10], 4294959104 }
 0x228   :  { %2122 = vsyncpa [#allocation3], 1 }
 0x229   :  { %2123 = vsyncpa [#allocation6], 1 }
 0x22a   :  { %2124 = vsyncpa [#allocation4], 1 }
 0x22b   :  { %2125 = vsyncpa [#allocation10], 1 }

</bundles_post_ra>
